<compile_context>
chip_gen: v7x
topology: tpu7x:2x2x1
jax: 0.10.0
libtpu: 0.0.40
codegen_flags: <defaults>
</compile_context>

<pallas_src>
import functools
import math

import jax
import jax.numpy as jnp
from jax.experimental import pallas as pl
from jax.experimental.pallas import tpu as pltpu

_LN_EPS = 1e-5  # torch.nn.LayerNorm default


# ----------------------------------------------------------------------------
# In-kernel building blocks (traced inline inside the fused kernels)
# ----------------------------------------------------------------------------
def _layer_norm(y, gamma, beta):
    mu = jnp.mean(y, axis=-1, keepdims=True)
    var = jnp.mean((y - mu) ** 2, axis=-1, keepdims=True)
    return (y - mu) * jax.lax.rsqrt(var + _LN_EPS) * gamma + beta


def _ffn(y, w1, b1, w2, b2):
    h = jnp.dot(y.astype(jnp.bfloat16), w1, preferred_element_type=jnp.float32) + b1
    h = jnp.maximum(h, 0.0)
    return jnp.dot(h.astype(jnp.bfloat16), w2, preferred_element_type=jnp.float32) + b2


def _mha_core(qp, kp, vp, wo, num_heads):
    """Per-head softmax attention + single fused output projection.

    qp: (Lq, D) f32, kp/vp: (Lk, D) f32, wo: (D, D) bf16.
    """
    _, D = qp.shape
    hd = D // num_heads
    scale = 1.0 / math.sqrt(hd)
    qp_b = qp.astype(jnp.bfloat16)
    vp_b = vp.astype(jnp.bfloat16)
    kt = kp.T                                    # K transpose hoisted out of head loop
    outs = []
    # TODO(synk): head_dim = D/num_heads = 8 keeps each head a sub-vreg lane
    # slice; at these toy dims a head-major batched contraction would still be
    # far below one MXU tile, so the static head loop is kept.
    for h in range(num_heads):
        sl = slice(h * hd, (h + 1) * hd)
        s = jnp.dot(qp_b[:, sl], kt[sl, :].astype(jnp.bfloat16),
                    preferred_element_type=jnp.float32) * scale
        s = s - jnp.max(s, axis=-1, keepdims=True)
        e = jnp.exp(s)
        p = e * pl.reciprocal(jnp.sum(e, axis=-1, keepdims=True), approx=True)
        outs.append(jnp.dot(p.astype(jnp.bfloat16), vp_b[:, sl],
                            preferred_element_type=jnp.float32))
    o_cat = jnp.concatenate(outs, axis=1).astype(jnp.bfloat16)      # (Lq, D)
    return jnp.dot(o_cat, wo, preferred_element_type=jnp.float32)   # output proj


def _self_attention(qk_in, v_in, wqkv, wo, num_heads):
    """q = k = qk_in, v = v_in.  One fused QKV matmul via row concatenation."""
    L, D = qk_in.shape
    inp = jnp.concatenate([qk_in, v_in], axis=0).astype(jnp.bfloat16)    # (2L, D)
    proj = jnp.dot(inp, wqkv, preferred_element_type=jnp.float32)        # (2L, 3D)
    qp = proj[:L, 0:D]
    kp = proj[:L, D:2 * D]
    vp = proj[L:, 2 * D:3 * D]
    return _mha_core(qp, kp, vp, wo, num_heads)


def _cross_attention(q_in, k_in, v_in, wqkv, wo, num_heads):
    Lk, D = k_in.shape
    kv_in = jnp.concatenate([k_in, v_in], axis=0).astype(jnp.bfloat16)   # (2Lk, D)
    kv = jnp.dot(kv_in, wqkv[:, D:], preferred_element_type=jnp.float32)  # (2Lk, 2D)
    kp = kv[:Lk, 0:D]
    vp = kv[Lk:, D:2 * D]
    qp = jnp.dot(q_in.astype(jnp.bfloat16), wqkv[:, 0:D],
                 preferred_element_type=jnp.float32)
    return _mha_core(qp, kp, vp, wo, num_heads)


# ----------------------------------------------------------------------------
# Fused Pallas kernels
# ----------------------------------------------------------------------------
def _patch_proj_kernel(p_ref, w_ref, b_ref, o_ref):
    # Backbone stand-in projection folded with the 1x1 to_sequence conv.
    o_ref[...] = jnp.dot(p_ref[...].astype(jnp.bfloat16), w_ref[...],
                         preferred_element_type=jnp.float32) + b_ref[...]


def _encoder_layer_kernel(x_ref, pe_ref, wqkv_ref, wo_ref,
                          g1_ref, be1_ref, w1_ref, b1_ref, w2_ref, b2_ref,
                          g2_ref, be2_ref, o_ref, *, batch, seq_len, num_heads):
    L = seq_len
    x = x_ref[...]                      # (B*L, D) f32, token-major
    pe = pe_ref[...]                    # (L, D)
    x0 = x[0:L, :]                      # batch-0 tokens
    # NOTE: the reference applies attention(...)[0] (batch 0 only) inside
    # ResidualConnection and broadcasts it across the batch; reproduced here,
    # which also removes dead per-batch attention work.
    attn0 = _self_attention(x0 + pe, x0, wqkv_ref[...], wo_ref[...], num_heads)
    attn = jnp.concatenate([attn0] * batch, axis=0)                  # (B*L, D)
    y = _layer_norm(attn + x, g1_ref[...], be1_ref[...])
    z = _ffn(y, w1_ref[...], b1_ref[...], w2_ref[...], b2_ref[...])
    o_ref[...] = _layer_norm(z + y, g2_ref[...], be2_ref[...])


def _decoder_layer_kernel(x_ref, ope_ref, mem_ref, pe_ref,
                          sa_wqkv_ref, sa_wo_ref, g1_ref, be1_ref,
                          ca_wqkv_ref, ca_wo_ref, g2_ref, be2_ref,
                          w1_ref, b1_ref, w2_ref, b2_ref, g3_ref, be3_ref,
                          o_ref, *, batch, n_queries, num_heads):
    N = n_queries
    x = x_ref[...]                      # (B*N, D)
    ope = ope_ref[...]                  # (N, D) object queries
    mem0 = mem_ref[...]                 # (L, D) encoder memory (batch 0)
    pe = pe_ref[...]                    # (L, D)
    x0 = x[0:N, :]
    # self-attention (batch 0, broadcast — see reference semantics note above)
    a0 = _self_attention(x0 + ope, x0, sa_wqkv_ref[...], sa_wo_ref[...], num_heads)
    y1 = _layer_norm(jnp.concatenate([a0] * batch, axis=0) + x,
                     g1_ref[...], be1_ref[...])
    # encoder-decoder cross attention (batch 0, broadcast)
    a1 = _cross_attention(y1[0:N, :] + ope, mem0 + pe, mem0,
                          ca_wqkv_ref[...], ca_wo_ref[...], num_heads)
    y2 = _layer_norm(jnp.concatenate([a1] * batch, axis=0) + y1,
                     g2_ref[...], be2_ref[...])
    z = _ffn(y2, w1_ref[...], b1_ref[...], w2_ref[...], b2_ref[...])
    o_ref[...] = _layer_norm(z + y2, g3_ref[...], be3_ref[...])


def _heads_kernel(x_ref, w1_ref, b1_ref, w2_ref, b2_ref, w3_ref, b3_ref,
                  wc_ref, bc_ref, bbox_ref, cls_ref):
    x = x_ref[...]
    xb = x.astype(jnp.bfloat16)
    h1 = jnp.maximum(jnp.dot(xb, w1_ref[...], preferred_element_type=jnp.float32)
                     + b1_ref[...], 0.0)
    h2 = jnp.maximum(jnp.dot(h1.astype(jnp.bfloat16), w2_ref[...],
                             preferred_element_type=jnp.float32) + b2_ref[...], 0.0)
    box = jnp.dot(h2.astype(jnp.bfloat16), w3_ref[...],
                  preferred_element_type=jnp.float32) + b3_ref[...]
    bbox_ref[...] = 1.0 / (1.0 + jnp.exp(-box))                       # sigmoid, cxcywh
    logits = jnp.dot(xb, wc_ref[...], preferred_element_type=jnp.float32) + bc_ref[...]
    logits = logits - jnp.max(logits, axis=-1, keepdims=True)
    e = jnp.exp(logits)
    cls_ref[...] = e * pl.reciprocal(jnp.sum(e, axis=-1, keepdims=True), approx=True)


# ----------------------------------------------------------------------------
# pallas_call wrapper: whole-array blocks, single grid step
# ----------------------------------------------------------------------------
def _fused_call(kernel, inputs, out_shapes):
    multi = isinstance(out_shapes, list)
    shapes = out_shapes if multi else [out_shapes]
    out_shape = [jax.ShapeDtypeStruct(s, jnp.float32) for s in shapes]
    out_specs = [pl.BlockSpec(s, lambda i, n=len(s): (0,) * n) for s in shapes]
    in_specs = [pl.BlockSpec(a.shape, lambda i, n=a.ndim: (0,) * n) for a in inputs]
    fn = pl.pallas_call(
        kernel,
        out_shape=out_shape if multi else out_shape[0],
        grid=(1,),
        in_specs=in_specs,
        out_specs=out_specs if multi else out_specs[0],
        compiler_params=pltpu.CompilerParams(dimension_semantics=("parallel",)),
    )
    return fn(*inputs)


# ----------------------------------------------------------------------------
# Plain-JAX glue
# ----------------------------------------------------------------------------
def positional_encoding(max_len, d):
    pos = jnp.arange(max_len, dtype=jnp.float32)[:, None]
    i = jnp.arange(d // 2, dtype=jnp.float32)[None, :]
    angle = pos / jnp.power(10000.0, 2.0 * i / d)
    pe = jnp.zeros((max_len, d), jnp.float32)
    pe = pe.at[:, 0::2].set(jnp.sin(angle))
    pe = pe.at[:, 1::2].set(jnp.cos(angle))
    return pe


def init_params(key, cfg):
    D = cfg["embed_dim"]
    # TODO(synk): the reference passes `dropout` into Encoder/Decoder's
    # `latent_dim` slot (nn.Linear(embed_dim, 0.1) would not construct);
    # the intended FFN width embed_dim*4 is used here.
    F = D * 4
    C1 = cfg["num_classes"] + 1
    keys = iter(jax.random.split(key, 256))

    def w(shape, scale=0.05):
        return (scale * jax.random.normal(next(keys), shape)).astype(jnp.float32)

    def bf(x):
        return x.astype(jnp.bfloat16)

    def zeros(shape):
        return jnp.zeros(shape, jnp.float32)

    def attn():
        wq, wk, wv, wo = w((D, D)), w((D, D)), w((D, D)), w((D, D))
        return dict(wqkv=bf(jnp.concatenate([wq, wk, wv], axis=1)), wo=bf(wo))

    def ln():
        return dict(g=jnp.ones((1, D), jnp.float32), b=zeros((1, D)))

    def ff():
        return dict(w1=bf(w((D, F))), b1=zeros((1, F)),
                    w2=bf(w((F, D))), b2=zeros((1, D)))

    patch_in = 3 * cfg["stride"] * cfg["stride"]
    # TODO(synk): the pretrained ResNet-50 backbone is not reproduced; a single
    # strided patchify projection stands in.  Being linear, it is folded with
    # the 1x1 to_sequence conv into one (patch_in, D) matmul at init time.
    backbone_w = w((patch_in, cfg["latent_dim"]))
    backbone_b = zeros((cfg["latent_dim"],))
    conv_w = w((cfg["latent_dim"], D))
    conv_b = zeros((D,))
    img_w = backbone_w @ conv_w
    img_b = backbone_b @ conv_w + conv_b

    params = dict(
        img_w=bf(img_w), img_b=img_b.reshape(1, D),
        pe=positional_encoding(2 ** 12, D),
        object_q=jax.random.normal(next(keys), (cfg["N"], D)).astype(jnp.float32),
        encoder=[dict(sa=attn(), ln1=ln(), ff=ff(), ln2=ln())
                 for _ in range(cfg["num_encoder_layers"])],
        decoder=[dict(sa=attn(), ln1=ln(), ca=attn(), ln2=ln(), ff=ff(), ln3=ln())
                 for _ in range(cfg["num_decoder_layers"])],
        bbox=dict(w1=bf(w((D, D))), b1=zeros((1, D)),
                  w2=bf(w((D, D))), b2=zeros((1, D)),
                  w3=bf(w((D, 4))), b3=zeros((1, 4))),
        cls=dict(w=bf(w((D, C1))), b=zeros((1, C1))),
    )
    return params


def detr_forward(params, image, cfg):
    B = image.shape[0]
    stride = cfg["stride"]
    H = W = cfg["image_size"] // stride
    L = H * W
    D, N = cfg["embed_dim"], cfg["N"]
    C1 = cfg["num_classes"] + 1
    pe_L = params["pe"][:L]

    # ---- backbone + to_sequence: one fused matmul, token-major layout ----
    patches = image.reshape(B, 3, H, stride, W, stride)
    patches = patches.transpose(0, 2, 4, 1, 3, 5).reshape(B * L, 3 * stride * stride)
    x = _fused_call(_patch_proj_kernel,
                    [patches, params["img_w"], params["img_b"]], (B * L, D))

    # ---- encoder: one fused pallas_call per layer ----
    enc_kernel = functools.partial(_encoder_layer_kernel, batch=B, seq_len=L,
                                   num_heads=cfg["num_encoder_heads"])
    for lyr in params["encoder"]:
        x = _fused_call(
            enc_kernel,
            [x, pe_L, lyr["sa"]["wqkv"], lyr["sa"]["wo"],
             lyr["ln1"]["g"], lyr["ln1"]["b"],
             lyr["ff"]["w1"], lyr["ff"]["b1"], lyr["ff"]["w2"], lyr["ff"]["b2"],
             lyr["ln2"]["g"], lyr["ln2"]["b"]],
            (B * L, D))
    memory0 = x[:L]      # only batch-0 memory feeds cross-attention ([0] semantics)

    # ---- decoder: one fused pallas_call per layer ----
    dec_kernel = functools.partial(_decoder_layer_kernel, batch=B, n_queries=N,
                                   num_heads=cfg["num_decoder_heads"])
    q = jnp.zeros((B * N, D), jnp.float32)           # self.q (zeros), token-major
    ope = params["object_q"]                          # (N, D) object queries
    for lyr in params["decoder"]:
        q = _fused_call(
            dec_kernel,
            [q, ope, memory0, pe_L,
             lyr["sa"]["wqkv"], lyr["sa"]["wo"], lyr["ln1"]["g"], lyr["ln1"]["b"],
             lyr["ca"]["wqkv"], lyr["ca"]["wo"], lyr["ln2"]["g"], lyr["ln2"]["b"],
             lyr["ff"]["w1"], lyr["ff"]["b1"], lyr["ff"]["w2"], lyr["ff"]["b2"],
             lyr["ln3"]["g"], lyr["ln3"]["b"]],
            (B * N, D))

    # ---- fused bbox MLP + class head (one pallas_call, two outputs) ----
    bbox_cxcywh, cls = _fused_call(
        _heads_kernel,
        [q, params["bbox"]["w1"], params["bbox"]["b1"],
         params["bbox"]["w2"], params["bbox"]["b2"],
         params["bbox"]["w3"], params["bbox"]["b3"],
         params["cls"]["w"], params["cls"]["b"]],
        [(B * N, 4), (B * N, C1)])
    bbox_cxcywh = bbox_cxcywh.reshape(B, N, 4)
    cls = cls.reshape(B, N, C1)

    # box_convert cxcywh -> xyxy (tiny elementwise glue, fused by XLA under jit)
    cx, cy, w, h = (bbox_cxcywh[..., 0], bbox_cxcywh[..., 1],
                    bbox_cxcywh[..., 2], bbox_cxcywh[..., 3])
    xyxy = jnp.stack([cx - 0.5 * w, cy - 0.5 * h, cx + 0.5 * w, cy + 0.5 * h], axis=-1)
    return xyxy, cls


# ----------------------------------------------------------------------------
if __name__ == "__main__":
    cfg = dict(
        N=8, num_classes=8, embed_dim=32,
        num_encoder_heads=4, num_decoder_heads=4,
        num_encoder_layers=2, num_decoder_layers=2,
        image_size=64, stride=16, latent_dim=64,
    )
    key = jax.random.PRNGKey(0)
    k_img, k_par = jax.random.split(key)
    image = jax.random.normal(k_img, (2, 3, cfg["image_size"], cfg["image_size"]),
                              dtype=jnp.float32)
    params = init_params(k_par, cfg)

    fwd = jax.jit(lambda p, img: detr_forward(p, img, cfg))
    boxes_xyxy, class_probs = fwd(params, image)
    jax.block_until_ready((boxes_xyxy, class_probs))
    assert boxes_xyxy.shape == (2, cfg["N"], 4)
    assert class_probs.shape == (2, cfg["N"], cfg["num_classes"] + 1)
    assert bool(jnp.all(jnp.isfinite(boxes_xyxy)))
    assert bool(jnp.all(jnp.isfinite(class_probs)))
    print("KERNEL_OK")
</pallas_src>

<mosaic_0001>
module attributes {stable_mosaic.version = 11 : i64} {
  func.func @_patch_proj_kernel(%arg0: i32, %arg1: memref<32x768xf32, #tpu.memory_space<vmem>>, %arg2: memref<768x32xbf16, #tpu.memory_space<vmem>>, %arg3: memref<1x32xf32, #tpu.memory_space<vmem>>, %arg4: memref<32x32xf32, #tpu.memory_space<vmem>>) attributes {dimension_semantics = [#tpu.dimension_semantics<parallel>], iteration_bounds = array<i64: 1>, scalar_prefetch = 0 : i64, scratch_operands = 0 : i64, tpu.core_type = #tpu.core_type<tc>, window_params = [{pipeline_mode = #tpu.pipeline_mode<synchronous>, transform_indices = @transform_0, window_bounds = array<i64: 32, 768>}, {pipeline_mode = #tpu.pipeline_mode<synchronous>, transform_indices = @transform_1, window_bounds = array<i64: 768, 32>}, {pipeline_mode = #tpu.pipeline_mode<synchronous>, transform_indices = @transform_2, window_bounds = array<i64: 1, 32>}, {pipeline_mode = #tpu.pipeline_mode<synchronous>, transform_indices = @transform_3, window_bounds = array<i64: 32, 32>}]} {
    %c0 = arith.constant 0 : index
    %c0_0 = arith.constant 0 : index
    %0 = vector.load %arg1[%c0, %c0_0] : memref<32x768xf32, #tpu.memory_space<vmem>>, vector<32x768xf32>
    %1 = arith.truncf %0 : vector<32x768xf32> to vector<32x768xbf16>
    %c0_1 = arith.constant 0 : index
    %c0_2 = arith.constant 0 : index
    %2 = vector.load %arg2[%c0_1, %c0_2] : memref<768x32xbf16, #tpu.memory_space<vmem>>, vector<768x32xbf16>
    %cst = arith.constant dense<0.000000e+00> : vector<32x32xf32>
    %3 = tpu.matmul %1, %2, %cst {dimension_numbers = #tpu.dot_dimension_numbers<[1], [0], [0], [1], [0, 0, 1, 1], [], []>} : vector<32x768xbf16>, vector<768x32xbf16>, vector<32x32xf32> -> vector<32x32xf32>
    %c0_3 = arith.constant 0 : index
    %c0_4 = arith.constant 0 : index
    %4 = vector.load %arg3[%c0_3, %c0_4] : memref<1x32xf32, #tpu.memory_space<vmem>>, vector<1x32xf32>
    %5 = vector.broadcast %4 : vector<1x32xf32> to vector<32x32xf32>
    %6 = arith.addf %3, %5 : vector<32x32xf32>
    %c0_5 = arith.constant 0 : index
    %c0_6 = arith.constant 0 : index
    %7 = vector.load %arg4[%c0_5, %c0_6] : memref<32x32xf32, #tpu.memory_space<vmem>>, vector<32x32xf32>
    tpu.vector_store %arg4[%c0_5, %c0_6], %6 {strides = array<i32>} : memref<32x32xf32, #tpu.memory_space<vmem>>, vector<32x32xf32>,
    return
  }
  func.func @transform_0(%arg0: i32) -> (i32, i32) {
    %c0_i32 = arith.constant 0 : i32
    %c0_i32_0 = arith.constant 0 : i32
    %c0_i32_1 = arith.constant 0 : i32
    return %c0_i32, %c0_i32_0 : i32, i32
  }
  func.func @transform_1(%arg0: i32) -> (i32, i32) {
    %c0_i32 = arith.constant 0 : i32
    %c0_i32_0 = arith.constant 0 : i32
    %c0_i32_1 = arith.constant 0 : i32
    return %c0_i32, %c0_i32_0 : i32, i32
  }
  func.func @transform_2(%arg0: i32) -> (i32, i32) {
    %c0_i32 = arith.constant 0 : i32
    %c0_i32_0 = arith.constant 0 : i32
    %c0_i32_1 = arith.constant 0 : i32
    return %c0_i32, %c0_i32_0 : i32, i32
  }
  func.func @transform_3(%arg0: i32) -> (i32, i32) {
    %c0_i32 = arith.constant 0 : i32
    %c0_i32_0 = arith.constant 0 : i32
    %c0_i32_1 = arith.constant 0 : i32
    return %c0_i32, %c0_i32_0 : i32, i32
  }
}

module attributes {stable_mosaic.version = 11 : i64} {
  func.func @_encoder_layer_kernel(%arg0: i32, %arg1: memref<32x32xf32, #tpu.memory_space<vmem>>, %arg2: memref<16x32xf32, #tpu.memory_space<vmem>>, %arg3: memref<32x96xbf16, #tpu.memory_space<vmem>>, %arg4: memref<32x32xbf16, #tpu.memory_space<vmem>>, %arg5: memref<1x32xf32, #tpu.memory_space<vmem>>, %arg6: memref<1x32xf32, #tpu.memory_space<vmem>>, %arg7: memref<32x128xbf16, #tpu.memory_space<vmem>>, %arg8: memref<1x128xf32, #tpu.memory_space<vmem>>, %arg9: memref<128x32xbf16, #tpu.memory_space<vmem>>, %arg10: memref<1x32xf32, #tpu.memory_space<vmem>>, %arg11: memref<1x32xf32, #tpu.memory_space<vmem>>, %arg12: memref<1x32xf32, #tpu.memory_space<vmem>>, %arg13: memref<32x32xf32, #tpu.memory_space<vmem>>) attributes {dimension_semantics = [#tpu.dimension_semantics<parallel>], iteration_bounds = array<i64: 1>, scalar_prefetch = 0 : i64, scratch_operands = 0 : i64, tpu.core_type = #tpu.core_type<tc>, window_params = [{pipeline_mode = #tpu.pipeline_mode<synchronous>, transform_indices = @transform_0, window_bounds = array<i64: 32, 32>}, {pipeline_mode = #tpu.pipeline_mode<synchronous>, transform_indices = @transform_1, window_bounds = array<i64: 16, 32>}, {pipeline_mode = #tpu.pipeline_mode<synchronous>, transform_indices = @transform_2, window_bounds = array<i64: 32, 96>}, {pipeline_mode = #tpu.pipeline_mode<synchronous>, transform_indices = @transform_3, window_bounds = array<i64: 32, 32>}, {pipeline_mode = #tpu.pipeline_mode<synchronous>, transform_indices = @transform_4, window_bounds = array<i64: 1, 32>}, {pipeline_mode = #tpu.pipeline_mode<synchronous>, transform_indices = @transform_5, window_bounds = array<i64: 1, 32>}, {pipeline_mode = #tpu.pipeline_mode<synchronous>, transform_indices = @transform_6, window_bounds = array<i64: 32, 128>}, {pipeline_mode = #tpu.pipeline_mode<synchronous>, transform_indices = @transform_7, window_bounds = array<i64: 1, 128>}, {pipeline_mode = #tpu.pipeline_mode<synchronous>, transform_indices = @transform_8, window_bounds = array<i64: 128, 32>}, {pipeline_mode = #tpu.pipeline_mode<synchronous>, transform_indices = @transform_9, window_bounds = array<i64: 1, 32>}, {pipeline_mode = #tpu.pipeline_mode<synchronous>, transform_indices = @transform_10, window_bounds = array<i64: 1, 32>}, {pipeline_mode = #tpu.pipeline_mode<synchronous>, transform_indices = @transform_11, window_bounds = array<i64: 1, 32>}, {pipeline_mode = #tpu.pipeline_mode<synchronous>, transform_indices = @transform_12, window_bounds = array<i64: 32, 32>}]} {
    %c0 = arith.constant 0 : index
    %c0_0 = arith.constant 0 : index
    %0 = vector.load %arg1[%c0, %c0_0] : memref<32x32xf32, #tpu.memory_space<vmem>>, vector<32x32xf32>
    %c0_1 = arith.constant 0 : index
    %c0_2 = arith.constant 0 : index
    %1 = vector.load %arg2[%c0_1, %c0_2] : memref<16x32xf32, #tpu.memory_space<vmem>>, vector<16x32xf32>
    %2 = vector.extract_strided_slice %0 {offsets = [0, 0], sizes = [16, 32], strides = [1, 1]} : vector<32x32xf32> to vector<16x32xf32>
    %3 = arith.addf %2, %1 : vector<16x32xf32>
    %c0_3 = arith.constant 0 : index
    %c0_4 = arith.constant 0 : index
    %4 = vector.load %arg3[%c0_3, %c0_4] : memref<32x96xbf16, #tpu.memory_space<vmem>>, vector<32x96xbf16>
    %c0_5 = arith.constant 0 : index
    %c0_6 = arith.constant 0 : index
    %5 = vector.load %arg4[%c0_5, %c0_6] : memref<32x32xbf16, #tpu.memory_space<vmem>>, vector<32x32xbf16>
    %6 = tpu.concatenate %3, %2 in 0 : vector<16x32xf32>, vector<16x32xf32> -> vector<32x32xf32>
    %7 = arith.truncf %6 : vector<32x32xf32> to vector<32x32xbf16>
    %cst = arith.constant dense<0.000000e+00> : vector<32x96xf32>
    %8 = tpu.matmul %7, %4, %cst {dimension_numbers = #tpu.dot_dimension_numbers<[1], [0], [0], [1], [0, 0, 1, 1], [], []>} : vector<32x32xbf16>, vector<32x96xbf16>, vector<32x96xf32> -> vector<32x96xf32>
    %9 = vector.extract_strided_slice %8 {offsets = [0, 0], sizes = [16, 32], strides = [1, 1]} : vector<32x96xf32> to vector<16x32xf32>
    %10 = vector.extract_strided_slice %8 {offsets = [0, 32], sizes = [16, 32], strides = [1, 1]} : vector<32x96xf32> to vector<16x32xf32>
    %11 = vector.extract_strided_slice %8 {offsets = [16, 64], sizes = [16, 32], strides = [1, 1]} : vector<32x96xf32> to vector<16x32xf32>
    %12 = arith.truncf %9 : vector<16x32xf32> to vector<16x32xbf16>
    %13 = arith.truncf %11 : vector<16x32xf32> to vector<16x32xbf16>
    %14 = tpu.transpose %10, [1, 0] : vector<16x32xf32> -> vector<32x16xf32>
    %15 = vector.extract_strided_slice %12 {offsets = [0, 0], sizes = [16, 8], strides = [1, 1]} : vector<16x32xbf16> to vector<16x8xbf16>
    %16 = vector.extract_strided_slice %14 {offsets = [0, 0], sizes = [8, 16], strides = [1, 1]} : vector<32x16xf32> to vector<8x16xf32>
    %17 = arith.truncf %16 : vector<8x16xf32> to vector<8x16xbf16>
    %cst_7 = arith.constant dense<0.000000e+00> : vector<16x16xf32>
    %18 = tpu.matmul %15, %17, %cst_7 {dimension_numbers = #tpu.dot_dimension_numbers<[1], [0], [0], [1], [0, 0, 1, 1], [], []>} : vector<16x8xbf16>, vector<8x16xbf16>, vector<16x16xf32> -> vector<16x16xf32>
    %cst_8 = arith.constant 0.353553385 : f32
    %19 = vector.broadcast %cst_8 : f32 to vector<16x16xf32>
    %20 = arith.mulf %18, %19 : vector<16x16xf32>
    %cst_9 = arith.constant dense<0xFF800000> : vector<16xf32>
    %21 = vector.multi_reduction <maximumf>, %20, %cst_9 [1] : vector<16x16xf32> to vector<16xf32>
    %22 = vector.shape_cast %21 : vector<16xf32> to vector<16x1xf32>
    %23 = vector.broadcast %22 : vector<16x1xf32> to vector<16x16xf32>
    %24 = arith.subf %20, %23 : vector<16x16xf32>
    %25 = math.exp %24 : vector<16x16xf32>
    %cst_10 = arith.constant dense<0.000000e+00> : vector<16xf32>
    %26 = vector.multi_reduction <add>, %25, %cst_10 [1] : vector<16x16xf32> to vector<16xf32>
    %27 = vector.shape_cast %26 : vector<16xf32> to vector<16x1xf32>
    %28 = tpu.reciprocal %27 {approx = true} : vector<16x1xf32> -> vector<16x1xf32>
    %29 = vector.broadcast %28 : vector<16x1xf32> to vector<16x16xf32>
    %30 = arith.mulf %25, %29 : vector<16x16xf32>
    %31 = arith.truncf %30 : vector<16x16xf32> to vector<16x16xbf16>
    %32 = vector.extract_strided_slice %13 {offsets = [0, 0], sizes = [16, 8], strides = [1, 1]} : vector<16x32xbf16> to vector<16x8xbf16>
    %cst_11 = arith.constant dense<0.000000e+00> : vector<16x8xf32>
    %33 = tpu.matmul %31, %32, %cst_11 {dimension_numbers = #tpu.dot_dimension_numbers<[1], [0], [0], [1], [0, 0, 1, 1], [], []>} : vector<16x16xbf16>, vector<16x8xbf16>, vector<16x8xf32> -> vector<16x8xf32>
    %34 = vector.extract_strided_slice %12 {offsets = [0, 8], sizes = [16, 8], strides = [1, 1]} : vector<16x32xbf16> to vector<16x8xbf16>
    %35 = vector.extract_strided_slice %14 {offsets = [8, 0], sizes = [8, 16], strides = [1, 1]} : vector<32x16xf32> to vector<8x16xf32>
    %36 = arith.truncf %35 : vector<8x16xf32> to vector<8x16xbf16>
    %cst_12 = arith.constant dense<0.000000e+00> : vector<16x16xf32>
    %37 = tpu.matmul %34, %36, %cst_12 {dimension_numbers = #tpu.dot_dimension_numbers<[1], [0], [0], [1], [0, 0, 1, 1], [], []>} : vector<16x8xbf16>, vector<8x16xbf16>, vector<16x16xf32> -> vector<16x16xf32>
    %cst_13 = arith.constant 0.353553385 : f32
    %38 = vector.broadcast %cst_13 : f32 to vector<16x16xf32>
    %39 = arith.mulf %37, %38 : vector<16x16xf32>
    %cst_14 = arith.constant dense<0xFF800000> : vector<16xf32>
    %40 = vector.multi_reduction <maximumf>, %39, %cst_14 [1] : vector<16x16xf32> to vector<16xf32>
    %41 = vector.shape_cast %40 : vector<16xf32> to vector<16x1xf32>
    %42 = vector.broadcast %41 : vector<16x1xf32> to vector<16x16xf32>
    %43 = arith.subf %39, %42 : vector<16x16xf32>
    %44 = math.exp %43 : vector<16x16xf32>
    %cst_15 = arith.constant dense<0.000000e+00> : vector<16xf32>
    %45 = vector.multi_reduction <add>, %44, %cst_15 [1] : vector<16x16xf32> to vector<16xf32>
    %46 = vector.shape_cast %45 : vector<16xf32> to vector<16x1xf32>
    %47 = tpu.reciprocal %46 {approx = true} : vector<16x1xf32> -> vector<16x1xf32>
    %48 = vector.broadcast %47 : vector<16x1xf32> to vector<16x16xf32>
    %49 = arith.mulf %44, %48 : vector<16x16xf32>
    %50 = arith.truncf %49 : vector<16x16xf32> to vector<16x16xbf16>
    %51 = vector.extract_strided_slice %13 {offsets = [0, 8], sizes = [16, 8], strides = [1, 1]} : vector<16x32xbf16> to vector<16x8xbf16>
    %cst_16 = arith.constant dense<0.000000e+00> : vector<16x8xf32>
    %52 = tpu.matmul %50, %51, %cst_16 {dimension_numbers = #tpu.dot_dimension_numbers<[1], [0], [0], [1], [0, 0, 1, 1], [], []>} : vector<16x16xbf16>, vector<16x8xbf16>, vector<16x8xf32> -> vector<16x8xf32>
    %53 = vector.extract_strided_slice %12 {offsets = [0, 16], sizes = [16, 8], strides = [1, 1]} : vector<16x32xbf16> to vector<16x8xbf16>
    %54 = vector.extract_strided_slice %14 {offsets = [16, 0], sizes = [8, 16], strides = [1, 1]} : vector<32x16xf32> to vector<8x16xf32>
    %55 = arith.truncf %54 : vector<8x16xf32> to vector<8x16xbf16>
    %cst_17 = arith.constant dense<0.000000e+00> : vector<16x16xf32>
    %56 = tpu.matmul %53, %55, %cst_17 {dimension_numbers = #tpu.dot_dimension_numbers<[1], [0], [0], [1], [0, 0, 1, 1], [], []>} : vector<16x8xbf16>, vector<8x16xbf16>, vector<16x16xf32> -> vector<16x16xf32>
    %cst_18 = arith.constant 0.353553385 : f32
    %57 = vector.broadcast %cst_18 : f32 to vector<16x16xf32>
    %58 = arith.mulf %56, %57 : vector<16x16xf32>
    %cst_19 = arith.constant dense<0xFF800000> : vector<16xf32>
    %59 = vector.multi_reduction <maximumf>, %58, %cst_19 [1] : vector<16x16xf32> to vector<16xf32>
    %60 = vector.shape_cast %59 : vector<16xf32> to vector<16x1xf32>
    %61 = vector.broadcast %60 : vector<16x1xf32> to vector<16x16xf32>
    %62 = arith.subf %58, %61 : vector<16x16xf32>
    %63 = math.exp %62 : vector<16x16xf32>
    %cst_20 = arith.constant dense<0.000000e+00> : vector<16xf32>
    %64 = vector.multi_reduction <add>, %63, %cst_20 [1] : vector<16x16xf32> to vector<16xf32>
    %65 = vector.shape_cast %64 : vector<16xf32> to vector<16x1xf32>
    %66 = tpu.reciprocal %65 {approx = true} : vector<16x1xf32> -> vector<16x1xf32>
    %67 = vector.broadcast %66 : vector<16x1xf32> to vector<16x16xf32>
    %68 = arith.mulf %63, %67 : vector<16x16xf32>
    %69 = arith.truncf %68 : vector<16x16xf32> to vector<16x16xbf16>
    %70 = vector.extract_strided_slice %13 {offsets = [0, 16], sizes = [16, 8], strides = [1, 1]} : vector<16x32xbf16> to vector<16x8xbf16>
    %cst_21 = arith.constant dense<0.000000e+00> : vector<16x8xf32>
    %71 = tpu.matmul %69, %70, %cst_21 {dimension_numbers = #tpu.dot_dimension_numbers<[1], [0], [0], [1], [0, 0, 1, 1], [], []>} : vector<16x16xbf16>, vector<16x8xbf16>, vector<16x8xf32> -> vector<16x8xf32>
    %72 = vector.extract_strided_slice %12 {offsets = [0, 24], sizes = [16, 8], strides = [1, 1]} : vector<16x32xbf16> to vector<16x8xbf16>
    %73 = vector.extract_strided_slice %14 {offsets = [24, 0], sizes = [8, 16], strides = [1, 1]} : vector<32x16xf32> to vector<8x16xf32>
    %74 = arith.truncf %73 : vector<8x16xf32> to vector<8x16xbf16>
    %cst_22 = arith.constant dense<0.000000e+00> : vector<16x16xf32>
    %75 = tpu.matmul %72, %74, %cst_22 {dimension_numbers = #tpu.dot_dimension_numbers<[1], [0], [0], [1], [0, 0, 1, 1], [], []>} : vector<16x8xbf16>, vector<8x16xbf16>, vector<16x16xf32> -> vector<16x16xf32>
    %cst_23 = arith.constant 0.353553385 : f32
    %76 = vector.broadcast %cst_23 : f32 to vector<16x16xf32>
    %77 = arith.mulf %75, %76 : vector<16x16xf32>
    %cst_24 = arith.constant dense<0xFF800000> : vector<16xf32>
    %78 = vector.multi_reduction <maximumf>, %77, %cst_24 [1] : vector<16x16xf32> to vector<16xf32>
    %79 = vector.shape_cast %78 : vector<16xf32> to vector<16x1xf32>
    %80 = vector.broadcast %79 : vector<16x1xf32> to vector<16x16xf32>
    %81 = arith.subf %77, %80 : vector<16x16xf32>
    %82 = math.exp %81 : vector<16x16xf32>
    %cst_25 = arith.constant dense<0.000000e+00> : vector<16xf32>
    %83 = vector.multi_reduction <add>, %82, %cst_25 [1] : vector<16x16xf32> to vector<16xf32>
    %84 = vector.shape_cast %83 : vector<16xf32> to vector<16x1xf32>
    %85 = tpu.reciprocal %84 {approx = true} : vector<16x1xf32> -> vector<16x1xf32>
    %86 = vector.broadcast %85 : vector<16x1xf32> to vector<16x16xf32>
    %87 = arith.mulf %82, %86 : vector<16x16xf32>
    %88 = arith.truncf %87 : vector<16x16xf32> to vector<16x16xbf16>
    %89 = vector.extract_strided_slice %13 {offsets = [0, 24], sizes = [16, 8], strides = [1, 1]} : vector<16x32xbf16> to vector<16x8xbf16>
    %cst_26 = arith.constant dense<0.000000e+00> : vector<16x8xf32>
    %90 = tpu.matmul %88, %89, %cst_26 {dimension_numbers = #tpu.dot_dimension_numbers<[1], [0], [0], [1], [0, 0, 1, 1], [], []>} : vector<16x16xbf16>, vector<16x8xbf16>, vector<16x8xf32> -> vector<16x8xf32>
    %91 = tpu.concatenate %33, %52, %71, %90 in 1 : vector<16x8xf32>, vector<16x8xf32>, vector<16x8xf32>, vector<16x8xf32> -> vector<16x32xf32>
    %92 = arith.truncf %91 : vector<16x32xf32> to vector<16x32xbf16>
    %cst_27 = arith.constant dense<0.000000e+00> : vector<16x32xf32>
    %93 = tpu.matmul %92, %5, %cst_27 {dimension_numbers = #tpu.dot_dimension_numbers<[1], [0], [0], [1], [0, 0, 1, 1], [], []>} : vector<16x32xbf16>, vector<32x32xbf16>, vector<16x32xf32> -> vector<16x32xf32>
    %94 = tpu.concatenate %93, %93 in 0 : vector<16x32xf32>, vector<16x32xf32> -> vector<32x32xf32>
    %95 = arith.addf %94, %0 : vector<32x32xf32>
    %c0_28 = arith.constant 0 : index
    %c0_29 = arith.constant 0 : index
    %96 = vector.load %arg5[%c0_28, %c0_29] : memref<1x32xf32, #tpu.memory_space<vmem>>, vector<1x32xf32>
    %c0_30 = arith.constant 0 : index
    %c0_31 = arith.constant 0 : index
    %97 = vector.load %arg6[%c0_30, %c0_31] : memref<1x32xf32, #tpu.memory_space<vmem>>, vector<1x32xf32>
    %cst_32 = arith.constant dense<0.000000e+00> : vector<32xf32>
    %98 = vector.multi_reduction <add>, %95, %cst_32 [1] : vector<32x32xf32> to vector<32xf32>
    %99 = vector.shape_cast %98 : vector<32xf32> to vector<32x1xf32>
    %cst_33 = arith.constant 3.200000e+01 : f32
    %100 = vector.broadcast %cst_33 : f32 to vector<32x1xf32>
    %101 = arith.divf %99, %100 : vector<32x1xf32>
    %102 = vector.broadcast %101 : vector<32x1xf32> to vector<32x32xf32>
    %103 = arith.subf %95, %102 : vector<32x32xf32>
    %104 = arith.mulf %103, %103 : vector<32x32xf32>
    %cst_34 = arith.constant dense<0.000000e+00> : vector<32xf32>
    %105 = vector.multi_reduction <add>, %104, %cst_34 [1] : vector<32x32xf32> to vector<32xf32>
    %106 = vector.shape_cast %105 : vector<32xf32> to vector<32x1xf32>
    %cst_35 = arith.constant 3.200000e+01 : f32
    %107 = vector.broadcast %cst_35 : f32 to vector<32x1xf32>
    %108 = arith.divf %106, %107 : vector<32x1xf32>
    %109 = vector.broadcast %101 : vector<32x1xf32> to vector<32x32xf32>
    %110 = arith.subf %95, %109 : vector<32x32xf32>
    %cst_36 = arith.constant 9.99999974E-6 : f32
    %111 = vector.broadcast %cst_36 : f32 to vector<32x1xf32>
    %112 = arith.addf %108, %111 : vector<32x1xf32>
    %113 = math.rsqrt %112 : vector<32x1xf32>
    %114 = vector.broadcast %113 : vector<32x1xf32> to vector<32x32xf32>
    %115 = arith.mulf %110, %114 : vector<32x32xf32>
    %116 = vector.broadcast %96 : vector<1x32xf32> to vector<32x32xf32>
    %117 = arith.mulf %115, %116 : vector<32x32xf32>
    %118 = vector.broadcast %97 : vector<1x32xf32> to vector<32x32xf32>
    %119 = arith.addf %117, %118 : vector<32x32xf32>
    %c0_37 = arith.constant 0 : index
    %c0_38 = arith.constant 0 : index
    %120 = vector.load %arg7[%c0_37, %c0_38] : memref<32x128xbf16, #tpu.memory_space<vmem>>, vector<32x128xbf16>
    %c0_39 = arith.constant 0 : index
    %c0_40 = arith.constant 0 : index
    %121 = vector.load %arg8[%c0_39, %c0_40] : memref<1x128xf32, #tpu.memory_space<vmem>>, vector<1x128xf32>
    %c0_41 = arith.constant 0 : index
    %c0_42 = arith.constant 0 : index
    %122 = vector.load %arg9[%c0_41, %c0_42] : memref<128x32xbf16, #tpu.memory_space<vmem>>, vector<128x32xbf16>
    %c0_43 = arith.constant 0 : index
    %c0_44 = arith.constant 0 : index
    %123 = vector.load %arg10[%c0_43, %c0_44] : memref<1x32xf32, #tpu.memory_space<vmem>>, vector<1x32xf32>
    %124 = arith.truncf %119 : vector<32x32xf32> to vector<32x32xbf16>
    %cst_45 = arith.constant dense<0.000000e+00> : vector<32x128xf32>
    %125 = tpu.matmul %124, %120, %cst_45 {dimension_numbers = #tpu.dot_dimension_numbers<[1], [0], [0], [1], [0, 0, 1, 1], [], []>} : vector<32x32xbf16>, vector<32x128xbf16>, vector<32x128xf32> -> vector<32x128xf32>
    %126 = vector.broadcast %121 : vector<1x128xf32> to vector<32x128xf32>
    %127 = arith.addf %125, %126 : vector<32x128xf32>
    %cst_46 = arith.constant 0.000000e+00 : f32
    %128 = vector.broadcast %cst_46 : f32 to vector<32x128xf32>
    %129 = arith.maximumf %127, %128 : vector<32x128xf32>
    %130 = arith.truncf %129 : vector<32x128xf32> to vector<32x128xbf16>
    %cst_47 = arith.constant dense<0.000000e+00> : vector<32x32xf32>
    %131 = tpu.matmul %130, %122, %cst_47 {dimension_numbers = #tpu.dot_dimension_numbers<[1], [0], [0], [1], [0, 0, 1, 1], [], []>} : vector<32x128xbf16>, vector<128x32xbf16>, vector<32x32xf32> -> vector<32x32xf32>
    %132 = vector.broadcast %123 : vector<1x32xf32> to vector<32x32xf32>
    %133 = arith.addf %131, %132 : vector<32x32xf32>
    %134 = arith.addf %133, %119 : vector<32x32xf32>
    %c0_48 = arith.constant 0 : index
    %c0_49 = arith.constant 0 : index
    %135 = vector.load %arg11[%c0_48, %c0_49] : memref<1x32xf32, #tpu.memory_space<vmem>>, vector<1x32xf32>
    %c0_50 = arith.constant 0 : index
    %c0_51 = arith.constant 0 : index
    %136 = vector.load %arg12[%c0_50, %c0_51] : memref<1x32xf32, #tpu.memory_space<vmem>>, vector<1x32xf32>
    %cst_52 = arith.constant dense<0.000000e+00> : vector<32xf32>
    %137 = vector.multi_reduction <add>, %134, %cst_52 [1] : vector<32x32xf32> to vector<32xf32>
    %138 = vector.shape_cast %137 : vector<32xf32> to vector<32x1xf32>
    %cst_53 = arith.constant 3.200000e+01 : f32
    %139 = vector.broadcast %cst_53 : f32 to vector<32x1xf32>
    %140 = arith.divf %138, %139 : vector<32x1xf32>
    %141 = vector.broadcast %140 : vector<32x1xf32> to vector<32x32xf32>
    %142 = arith.subf %134, %141 : vector<32x32xf32>
    %143 = arith.mulf %142, %142 : vector<32x32xf32>
    %cst_54 = arith.constant dense<0.000000e+00> : vector<32xf32>
    %144 = vector.multi_reduction <add>, %143, %cst_54 [1] : vector<32x32xf32> to vector<32xf32>
    %145 = vector.shape_cast %144 : vector<32xf32> to vector<32x1xf32>
    %cst_55 = arith.constant 3.200000e+01 : f32
    %146 = vector.broadcast %cst_55 : f32 to vector<32x1xf32>
    %147 = arith.divf %145, %146 : vector<32x1xf32>
    %148 = vector.broadcast %140 : vector<32x1xf32> to vector<32x32xf32>
    %149 = arith.subf %134, %148 : vector<32x32xf32>
    %cst_56 = arith.constant 9.99999974E-6 : f32
    %150 = vector.broadcast %cst_56 : f32 to vector<32x1xf32>
    %151 = arith.addf %147, %150 : vector<32x1xf32>
    %152 = math.rsqrt %151 : vector<32x1xf32>
    %153 = vector.broadcast %152 : vector<32x1xf32> to vector<32x32xf32>
    %154 = arith.mulf %149, %153 : vector<32x32xf32>
    %155 = vector.broadcast %135 : vector<1x32xf32> to vector<32x32xf32>
    %156 = arith.mulf %154, %155 : vector<32x32xf32>
    %157 = vector.broadcast %136 : vector<1x32xf32> to vector<32x32xf32>
    %158 = arith.addf %156, %157 : vector<32x32xf32>
    %c0_57 = arith.constant 0 : index
    %c0_58 = arith.constant 0 : index
    %159 = vector.load %arg13[%c0_57, %c0_58] : memref<32x32xf32, #tpu.memory_space<vmem>>, vector<32x32xf32>
    tpu.vector_store %arg13[%c0_57, %c0_58], %158 {strides = array<i32>} : memref<32x32xf32, #tpu.memory_space<vmem>>, vector<32x32xf32>,
    return
  }
  func.func @transform_0(%arg0: i32) -> (i32, i32) {
    %c0_i32 = arith.constant 0 : i32
    %c0_i32_0 = arith.constant 0 : i32
    %c0_i32_1 = arith.constant 0 : i32
    return %c0_i32, %c0_i32_0 : i32, i32
  }
  func.func @transform_1(%arg0: i32) -> (i32, i32) {
    %c0_i32 = arith.constant 0 : i32
    %c0_i32_0 = arith.constant 0 : i32
    %c0_i32_1 = arith.constant 0 : i32
    return %c0_i32, %c0_i32_0 : i32, i32
  }
  func.func @transform_2(%arg0: i32) -> (i32, i32) {
    %c0_i32 = arith.constant 0 : i32
    %c0_i32_0 = arith.constant 0 : i32
    %c0_i32_1 = arith.constant 0 : i32
    return %c0_i32, %c0_i32_0 : i32, i32
  }
  func.func @transform_3(%arg0: i32) -> (i32, i32) {
    %c0_i32 = arith.constant 0 : i32
    %c0_i32_0 = arith.constant 0 : i32
    %c0_i32_1 = arith.constant 0 : i32
    return %c0_i32, %c0_i32_0 : i32, i32
  }
  func.func @transform_4(%arg0: i32) -> (i32, i32) {
    %c0_i32 = arith.constant 0 : i32
    %c0_i32_0 = arith.constant 0 : i32
    %c0_i32_1 = arith.constant 0 : i32
    return %c0_i32, %c0_i32_0 : i32, i32
  }
  func.func @transform_5(%arg0: i32) -> (i32, i32) {
    %c0_i32 = arith.constant 0 : i32
    %c0_i32_0 = arith.constant 0 : i32
    %c0_i32_1 = arith.constant 0 : i32
    return %c0_i32, %c0_i32_0 : i32, i32
  }
  func.func @transform_6(%arg0: i32) -> (i32, i32) {
    %c0_i32 = arith.constant 0 : i32
    %c0_i32_0 = arith.constant 0 : i32
    %c0_i32_1 = arith.constant 0 : i32
    return %c0_i32, %c0_i32_0 : i32, i32
  }
  func.func @transform_7(%arg0: i32) -> (i32, i32) {
    %c0_i32 = arith.constant 0 : i32
    %c0_i32_0 = arith.constant 0 : i32
    %c0_i32_1 = arith.constant 0 : i32
    return %c0_i32, %c0_i32_0 : i32, i32
  }
  func.func @transform_8(%arg0: i32) -> (i32, i32) {
    %c0_i32 = arith.constant 0 : i32
    %c0_i32_0 = arith.constant 0 : i32
    %c0_i32_1 = arith.constant 0 : i32
    return %c0_i32, %c0_i32_0 : i32, i32
  }
  func.func @transform_9(%arg0: i32) -> (i32, i32) {
    %c0_i32 = arith.constant 0 : i32
    %c0_i32_0 = arith.constant 0 : i32
    %c0_i32_1 = arith.constant 0 : i32
    return %c0_i32, %c0_i32_0 : i32, i32
  }
  func.func @transform_10(%arg0: i32) -> (i32, i32) {
    %c0_i32 = arith.constant 0 : i32
    %c0_i32_0 = arith.constant 0 : i32
    %c0_i32_1 = arith.constant 0 : i32
    return %c0_i32, %c0_i32_0 : i32, i32
  }
  func.func @transform_11(%arg0: i32) -> (i32, i32) {
    %c0_i32 = arith.constant 0 : i32
    %c0_i32_0 = arith.constant 0 : i32
    %c0_i32_1 = arith.constant 0 : i32
    return %c0_i32, %c0_i32_0 : i32, i32
  }
  func.func @transform_12(%arg0: i32) -> (i32, i32) {
    %c0_i32 = arith.constant 0 : i32
    %c0_i32_0 = arith.constant 0 : i32
    %c0_i32_1 = arith.constant 0 : i32
    return %c0_i32, %c0_i32_0 : i32, i32
  }
}

module attributes {stable_mosaic.version = 11 : i64} {
  func.func @_decoder_layer_kernel(%arg0: i32, %arg1: memref<16x32xf32, #tpu.memory_space<vmem>>, %arg2: memref<8x32xf32, #tpu.memory_space<vmem>>, %arg3: memref<16x32xf32, #tpu.memory_space<vmem>>, %arg4: memref<16x32xf32, #tpu.memory_space<vmem>>, %arg5: memref<32x96xbf16, #tpu.memory_space<vmem>>, %arg6: memref<32x32xbf16, #tpu.memory_space<vmem>>, %arg7: memref<1x32xf32, #tpu.memory_space<vmem>>, %arg8: memref<1x32xf32, #tpu.memory_space<vmem>>, %arg9: memref<32x96xbf16, #tpu.memory_space<vmem>>, %arg10: memref<32x32xbf16, #tpu.memory_space<vmem>>, %arg11: memref<1x32xf32, #tpu.memory_space<vmem>>, %arg12: memref<1x32xf32, #tpu.memory_space<vmem>>, %arg13: memref<32x128xbf16, #tpu.memory_space<vmem>>, %arg14: memref<1x128xf32, #tpu.memory_space<vmem>>, %arg15: memref<128x32xbf16, #tpu.memory_space<vmem>>, %arg16: memref<1x32xf32, #tpu.memory_space<vmem>>, %arg17: memref<1x32xf32, #tpu.memory_space<vmem>>, %arg18: memref<1x32xf32, #tpu.memory_space<vmem>>, %arg19: memref<16x32xf32, #tpu.memory_space<vmem>>) attributes {dimension_semantics = [#tpu.dimension_semantics<parallel>], iteration_bounds = array<i64: 1>, scalar_prefetch = 0 : i64, scratch_operands = 0 : i64, tpu.core_type = #tpu.core_type<tc>, window_params = [{pipeline_mode = #tpu.pipeline_mode<synchronous>, transform_indices = @transform_0, window_bounds = array<i64: 16, 32>}, {pipeline_mode = #tpu.pipeline_mode<synchronous>, transform_indices = @transform_1, window_bounds = array<i64: 8, 32>}, {pipeline_mode = #tpu.pipeline_mode<synchronous>, transform_indices = @transform_2, window_bounds = array<i64: 16, 32>}, {pipeline_mode = #tpu.pipeline_mode<synchronous>, transform_indices = @transform_3, window_bounds = array<i64: 16, 32>}, {pipeline_mode = #tpu.pipeline_mode<synchronous>, transform_indices = @transform_4, window_bounds = array<i64: 32, 96>}, {pipeline_mode = #tpu.pipeline_mode<synchronous>, transform_indices = @transform_5, window_bounds = array<i64: 32, 32>}, {pipeline_mode = #tpu.pipeline_mode<synchronous>, transform_indices = @transform_6, window_bounds = array<i64: 1, 32>}, {pipeline_mode = #tpu.pipeline_mode<synchronous>, transform_indices = @transform_7, window_bounds = array<i64: 1, 32>}, {pipeline_mode = #tpu.pipeline_mode<synchronous>, transform_indices = @transform_8, window_bounds = array<i64: 32, 96>}, {pipeline_mode = #tpu.pipeline_mode<synchronous>, transform_indices = @transform_9, window_bounds = array<i64: 32, 32>}, {pipeline_mode = #tpu.pipeline_mode<synchronous>, transform_indices = @transform_10, window_bounds = array<i64: 1, 32>}, {pipeline_mode = #tpu.pipeline_mode<synchronous>, transform_indices = @transform_11, window_bounds = array<i64: 1, 32>}, {pipeline_mode = #tpu.pipeline_mode<synchronous>, transform_indices = @transform_12, window_bounds = array<i64: 32, 128>}, {pipeline_mode = #tpu.pipeline_mode<synchronous>, transform_indices = @transform_13, window_bounds = array<i64: 1, 128>}, {pipeline_mode = #tpu.pipeline_mode<synchronous>, transform_indices = @transform_14, window_bounds = array<i64: 128, 32>}, {pipeline_mode = #tpu.pipeline_mode<synchronous>, transform_indices = @transform_15, window_bounds = array<i64: 1, 32>}, {pipeline_mode = #tpu.pipeline_mode<synchronous>, transform_indices = @transform_16, window_bounds = array<i64: 1, 32>}, {pipeline_mode = #tpu.pipeline_mode<synchronous>, transform_indices = @transform_17, window_bounds = array<i64: 1, 32>}, {pipeline_mode = #tpu.pipeline_mode<synchronous>, transform_indices = @transform_18, window_bounds = array<i64: 16, 32>}]} {
    %c0 = arith.constant 0 : index
    %c0_0 = arith.constant 0 : index
    %0 = vector.load %arg1[%c0, %c0_0] : memref<16x32xf32, #tpu.memory_space<vmem>>, vector<16x32xf32>
    %c0_1 = arith.constant 0 : index
    %c0_2 = arith.constant 0 : index
    %1 = vector.load %arg2[%c0_1, %c0_2] : memref<8x32xf32, #tpu.memory_space<vmem>>, vector<8x32xf32>
    %c0_3 = arith.constant 0 : index
    %c0_4 = arith.constant 0 : index
    %2 = vector.load %arg3[%c0_3, %c0_4] : memref<16x32xf32, #tpu.memory_space<vmem>>, vector<16x32xf32>
    %c0_5 = arith.constant 0 : index
    %c0_6 = arith.constant 0 : index
    %3 = vector.load %arg4[%c0_5, %c0_6] : memref<16x32xf32, #tpu.memory_space<vmem>>, vector<16x32xf32>
    %4 = vector.extract_strided_slice %0 {offsets = [0, 0], sizes = [8, 32], strides = [1, 1]} : vector<16x32xf32> to vector<8x32xf32>
    %5 = arith.addf %4, %1 : vector<8x32xf32>
    %c0_7 = arith.constant 0 : index
    %c0_8 = arith.constant 0 : index
    %6 = vector.load %arg5[%c0_7, %c0_8] : memref<32x96xbf16, #tpu.memory_space<vmem>>, vector<32x96xbf16>
    %c0_9 = arith.constant 0 : index
    %c0_10 = arith.constant 0 : index
    %7 = vector.load %arg6[%c0_9, %c0_10] : memref<32x32xbf16, #tpu.memory_space<vmem>>, vector<32x32xbf16>
    %8 = tpu.concatenate %5, %4 in 0 : vector<8x32xf32>, vector<8x32xf32> -> vector<16x32xf32>
    %9 = arith.truncf %8 : vector<16x32xf32> to vector<16x32xbf16>
    %cst = arith.constant dense<0.000000e+00> : vector<16x96xf32>
    %10 = tpu.matmul %9, %6, %cst {dimension_numbers = #tpu.dot_dimension_numbers<[1], [0], [0], [1], [0, 0, 1, 1], [], []>} : vector<16x32xbf16>, vector<32x96xbf16>, vector<16x96xf32> -> vector<16x96xf32>
    %11 = vector.extract_strided_slice %10 {offsets = [0, 0], sizes = [8, 32], strides = [1, 1]} : vector<16x96xf32> to vector<8x32xf32>
    %12 = vector.extract_strided_slice %10 {offsets = [0, 32], sizes = [8, 32], strides = [1, 1]} : vector<16x96xf32> to vector<8x32xf32>
    %13 = vector.extract_strided_slice %10 {offsets = [8, 64], sizes = [8, 32], strides = [1, 1]} : vector<16x96xf32> to vector<8x32xf32>
    %14 = arith.truncf %11 : vector<8x32xf32> to vector<8x32xbf16>
    %15 = arith.truncf %13 : vector<8x32xf32> to vector<8x32xbf16>
    %16 = tpu.transpose %12, [1, 0] : vector<8x32xf32> -> vector<32x8xf32>
    %17 = vector.extract_strided_slice %14 {offsets = [0, 0], sizes = [8, 8], strides = [1, 1]} : vector<8x32xbf16> to vector<8x8xbf16>
    %18 = vector.extract_strided_slice %16 {offsets = [0, 0], sizes = [8, 8], strides = [1, 1]} : vector<32x8xf32> to vector<8x8xf32>
    %19 = arith.truncf %18 : vector<8x8xf32> to vector<8x8xbf16>
    %cst_11 = arith.constant dense<0.000000e+00> : vector<8x8xf32>
    %20 = tpu.matmul %17, %19, %cst_11 {dimension_numbers = #tpu.dot_dimension_numbers<[1], [0], [0], [1], [0, 0, 1, 1], [], []>} : vector<8x8xbf16>, vector<8x8xbf16>, vector<8x8xf32> -> vector<8x8xf32>
    %cst_12 = arith.constant 0.353553385 : f32
    %21 = vector.broadcast %cst_12 : f32 to vector<8x8xf32>
    %22 = arith.mulf %20, %21 : vector<8x8xf32>
    %cst_13 = arith.constant dense<0xFF800000> : vector<8xf32>
    %23 = vector.multi_reduction <maximumf>, %22, %cst_13 [1] : vector<8x8xf32> to vector<8xf32>
    %24 = vector.shape_cast %23 : vector<8xf32> to vector<8x1xf32>
    %25 = vector.broadcast %24 : vector<8x1xf32> to vector<8x8xf32>
    %26 = arith.subf %22, %25 : vector<8x8xf32>
    %27 = math.exp %26 : vector<8x8xf32>
    %cst_14 = arith.constant dense<0.000000e+00> : vector<8xf32>
    %28 = vector.multi_reduction <add>, %27, %cst_14 [1] : vector<8x8xf32> to vector<8xf32>
    %29 = vector.shape_cast %28 : vector<8xf32> to vector<8x1xf32>
    %30 = tpu.reciprocal %29 {approx = true} : vector<8x1xf32> -> vector<8x1xf32>
    %31 = vector.broadcast %30 : vector<8x1xf32> to vector<8x8xf32>
    %32 = arith.mulf %27, %31 : vector<8x8xf32>
    %33 = arith.truncf %32 : vector<8x8xf32> to vector<8x8xbf16>
    %34 = vector.extract_strided_slice %15 {offsets = [0, 0], sizes = [8, 8], strides = [1, 1]} : vector<8x32xbf16> to vector<8x8xbf16>
    %cst_15 = arith.constant dense<0.000000e+00> : vector<8x8xf32>
    %35 = tpu.matmul %33, %34, %cst_15 {dimension_numbers = #tpu.dot_dimension_numbers<[1], [0], [0], [1], [0, 0, 1, 1], [], []>} : vector<8x8xbf16>, vector<8x8xbf16>, vector<8x8xf32> -> vector<8x8xf32>
    %36 = vector.extract_strided_slice %14 {offsets = [0, 8], sizes = [8, 8], strides = [1, 1]} : vector<8x32xbf16> to vector<8x8xbf16>
    %37 = vector.extract_strided_slice %16 {offsets = [8, 0], sizes = [8, 8], strides = [1, 1]} : vector<32x8xf32> to vector<8x8xf32>
    %38 = arith.truncf %37 : vector<8x8xf32> to vector<8x8xbf16>
    %cst_16 = arith.constant dense<0.000000e+00> : vector<8x8xf32>
    %39 = tpu.matmul %36, %38, %cst_16 {dimension_numbers = #tpu.dot_dimension_numbers<[1], [0], [0], [1], [0, 0, 1, 1], [], []>} : vector<8x8xbf16>, vector<8x8xbf16>, vector<8x8xf32> -> vector<8x8xf32>
    %cst_17 = arith.constant 0.353553385 : f32
    %40 = vector.broadcast %cst_17 : f32 to vector<8x8xf32>
    %41 = arith.mulf %39, %40 : vector<8x8xf32>
    %cst_18 = arith.constant dense<0xFF800000> : vector<8xf32>
    %42 = vector.multi_reduction <maximumf>, %41, %cst_18 [1] : vector<8x8xf32> to vector<8xf32>
    %43 = vector.shape_cast %42 : vector<8xf32> to vector<8x1xf32>
    %44 = vector.broadcast %43 : vector<8x1xf32> to vector<8x8xf32>
    %45 = arith.subf %41, %44 : vector<8x8xf32>
    %46 = math.exp %45 : vector<8x8xf32>
    %cst_19 = arith.constant dense<0.000000e+00> : vector<8xf32>
    %47 = vector.multi_reduction <add>, %46, %cst_19 [1] : vector<8x8xf32> to vector<8xf32>
    %48 = vector.shape_cast %47 : vector<8xf32> to vector<8x1xf32>
    %49 = tpu.reciprocal %48 {approx = true} : vector<8x1xf32> -> vector<8x1xf32>
    %50 = vector.broadcast %49 : vector<8x1xf32> to vector<8x8xf32>
    %51 = arith.mulf %46, %50 : vector<8x8xf32>
    %52 = arith.truncf %51 : vector<8x8xf32> to vector<8x8xbf16>
    %53 = vector.extract_strided_slice %15 {offsets = [0, 8], sizes = [8, 8], strides = [1, 1]} : vector<8x32xbf16> to vector<8x8xbf16>
    %cst_20 = arith.constant dense<0.000000e+00> : vector<8x8xf32>
    %54 = tpu.matmul %52, %53, %cst_20 {dimension_numbers = #tpu.dot_dimension_numbers<[1], [0], [0], [1], [0, 0, 1, 1], [], []>} : vector<8x8xbf16>, vector<8x8xbf16>, vector<8x8xf32> -> vector<8x8xf32>
    %55 = vector.extract_strided_slice %14 {offsets = [0, 16], sizes = [8, 8], strides = [1, 1]} : vector<8x32xbf16> to vector<8x8xbf16>
    %56 = vector.extract_strided_slice %16 {offsets = [16, 0], sizes = [8, 8], strides = [1, 1]} : vector<32x8xf32> to vector<8x8xf32>
    %57 = arith.truncf %56 : vector<8x8xf32> to vector<8x8xbf16>
    %cst_21 = arith.constant dense<0.000000e+00> : vector<8x8xf32>
    %58 = tpu.matmul %55, %57, %cst_21 {dimension_numbers = #tpu.dot_dimension_numbers<[1], [0], [0], [1], [0, 0, 1, 1], [], []>} : vector<8x8xbf16>, vector<8x8xbf16>, vector<8x8xf32> -> vector<8x8xf32>
    %cst_22 = arith.constant 0.353553385 : f32
    %59 = vector.broadcast %cst_22 : f32 to vector<8x8xf32>
    %60 = arith.mulf %58, %59 : vector<8x8xf32>
    %cst_23 = arith.constant dense<0xFF800000> : vector<8xf32>
    %61 = vector.multi_reduction <maximumf>, %60, %cst_23 [1] : vector<8x8xf32> to vector<8xf32>
    %62 = vector.shape_cast %61 : vector<8xf32> to vector<8x1xf32>
    %63 = vector.broadcast %62 : vector<8x1xf32> to vector<8x8xf32>
    %64 = arith.subf %60, %63 : vector<8x8xf32>
    %65 = math.exp %64 : vector<8x8xf32>
    %cst_24 = arith.constant dense<0.000000e+00> : vector<8xf32>
    %66 = vector.multi_reduction <add>, %65, %cst_24 [1] : vector<8x8xf32> to vector<8xf32>
    %67 = vector.shape_cast %66 : vector<8xf32> to vector<8x1xf32>
    %68 = tpu.reciprocal %67 {approx = true} : vector<8x1xf32> -> vector<8x1xf32>
    %69 = vector.broadcast %68 : vector<8x1xf32> to vector<8x8xf32>
    %70 = arith.mulf %65, %69 : vector<8x8xf32>
    %71 = arith.truncf %70 : vector<8x8xf32> to vector<8x8xbf16>
    %72 = vector.extract_strided_slice %15 {offsets = [0, 16], sizes = [8, 8], strides = [1, 1]} : vector<8x32xbf16> to vector<8x8xbf16>
    %cst_25 = arith.constant dense<0.000000e+00> : vector<8x8xf32>
    %73 = tpu.matmul %71, %72, %cst_25 {dimension_numbers = #tpu.dot_dimension_numbers<[1], [0], [0], [1], [0, 0, 1, 1], [], []>} : vector<8x8xbf16>, vector<8x8xbf16>, vector<8x8xf32> -> vector<8x8xf32>
    %74 = vector.extract_strided_slice %14 {offsets = [0, 24], sizes = [8, 8], strides = [1, 1]} : vector<8x32xbf16> to vector<8x8xbf16>
    %75 = vector.extract_strided_slice %16 {offsets = [24, 0], sizes = [8, 8], strides = [1, 1]} : vector<32x8xf32> to vector<8x8xf32>
    %76 = arith.truncf %75 : vector<8x8xf32> to vector<8x8xbf16>
    %cst_26 = arith.constant dense<0.000000e+00> : vector<8x8xf32>
    %77 = tpu.matmul %74, %76, %cst_26 {dimension_numbers = #tpu.dot_dimension_numbers<[1], [0], [0], [1], [0, 0, 1, 1], [], []>} : vector<8x8xbf16>, vector<8x8xbf16>, vector<8x8xf32> -> vector<8x8xf32>
    %cst_27 = arith.constant 0.353553385 : f32
    %78 = vector.broadcast %cst_27 : f32 to vector<8x8xf32>
    %79 = arith.mulf %77, %78 : vector<8x8xf32>
    %cst_28 = arith.constant dense<0xFF800000> : vector<8xf32>
    %80 = vector.multi_reduction <maximumf>, %79, %cst_28 [1] : vector<8x8xf32> to vector<8xf32>
    %81 = vector.shape_cast %80 : vector<8xf32> to vector<8x1xf32>
    %82 = vector.broadcast %81 : vector<8x1xf32> to vector<8x8xf32>
    %83 = arith.subf %79, %82 : vector<8x8xf32>
    %84 = math.exp %83 : vector<8x8xf32>
    %cst_29 = arith.constant dense<0.000000e+00> : vector<8xf32>
    %85 = vector.multi_reduction <add>, %84, %cst_29 [1] : vector<8x8xf32> to vector<8xf32>
    %86 = vector.shape_cast %85 : vector<8xf32> to vector<8x1xf32>
    %87 = tpu.reciprocal %86 {approx = true} : vector<8x1xf32> -> vector<8x1xf32>
    %88 = vector.broadcast %87 : vector<8x1xf32> to vector<8x8xf32>
    %89 = arith.mulf %84, %88 : vector<8x8xf32>
    %90 = arith.truncf %89 : vector<8x8xf32> to vector<8x8xbf16>
    %91 = vector.extract_strided_slice %15 {offsets = [0, 24], sizes = [8, 8], strides = [1, 1]} : vector<8x32xbf16> to vector<8x8xbf16>
    %cst_30 = arith.constant dense<0.000000e+00> : vector<8x8xf32>
    %92 = tpu.matmul %90, %91, %cst_30 {dimension_numbers = #tpu.dot_dimension_numbers<[1], [0], [0], [1], [0, 0, 1, 1], [], []>} : vector<8x8xbf16>, vector<8x8xbf16>, vector<8x8xf32> -> vector<8x8xf32>
    %93 = tpu.concatenate %35, %54, %73, %92 in 1 : vector<8x8xf32>, vector<8x8xf32>, vector<8x8xf32>, vector<8x8xf32> -> vector<8x32xf32>
    %94 = arith.truncf %93 : vector<8x32xf32> to vector<8x32xbf16>
    %cst_31 = arith.constant dense<0.000000e+00> : vector<8x32xf32>
    %95 = tpu.matmul %94, %7, %cst_31 {dimension_numbers = #tpu.dot_dimension_numbers<[1], [0], [0], [1], [0, 0, 1, 1], [], []>} : vector<8x32xbf16>, vector<32x32xbf16>, vector<8x32xf32> -> vector<8x32xf32>
    %96 = tpu.concatenate %95, %95 in 0 : vector<8x32xf32>, vector<8x32xf32> -> vector<16x32xf32>
    %97 = arith.addf %96, %0 : vector<16x32xf32>
    %c0_32 = arith.constant 0 : index
    %c0_33 = arith.constant 0 : index
    %98 = vector.load %arg7[%c0_32, %c0_33] : memref<1x32xf32, #tpu.memory_space<vmem>>, vector<1x32xf32>
    %c0_34 = arith.constant 0 : index
    %c0_35 = arith.constant 0 : index
    %99 = vector.load %arg8[%c0_34, %c0_35] : memref<1x32xf32, #tpu.memory_space<vmem>>, vector<1x32xf32>
    %cst_36 = arith.constant dense<0.000000e+00> : vector<16xf32>
    %100 = vector.multi_reduction <add>, %97, %cst_36 [1] : vector<16x32xf32> to vector<16xf32>
    %101 = vector.shape_cast %100 : vector<16xf32> to vector<16x1xf32>
    %cst_37 = arith.constant 3.200000e+01 : f32
    %102 = vector.broadcast %cst_37 : f32 to vector<16x1xf32>
    %103 = arith.divf %101, %102 : vector<16x1xf32>
    %104 = vector.broadcast %103 : vector<16x1xf32> to vector<16x32xf32>
    %105 = arith.subf %97, %104 : vector<16x32xf32>
    %106 = arith.mulf %105, %105 : vector<16x32xf32>
    %cst_38 = arith.constant dense<0.000000e+00> : vector<16xf32>
    %107 = vector.multi_reduction <add>, %106, %cst_38 [1] : vector<16x32xf32> to vector<16xf32>
    %108 = vector.shape_cast %107 : vector<16xf32> to vector<16x1xf32>
    %cst_39 = arith.constant 3.200000e+01 : f32
    %109 = vector.broadcast %cst_39 : f32 to vector<16x1xf32>
    %110 = arith.divf %108, %109 : vector<16x1xf32>
    %111 = vector.broadcast %103 : vector<16x1xf32> to vector<16x32xf32>
    %112 = arith.subf %97, %111 : vector<16x32xf32>
    %cst_40 = arith.constant 9.99999974E-6 : f32
    %113 = vector.broadcast %cst_40 : f32 to vector<16x1xf32>
    %114 = arith.addf %110, %113 : vector<16x1xf32>
    %115 = math.rsqrt %114 : vector<16x1xf32>
    %116 = vector.broadcast %115 : vector<16x1xf32> to vector<16x32xf32>
    %117 = arith.mulf %112, %116 : vector<16x32xf32>
    %118 = vector.broadcast %98 : vector<1x32xf32> to vector<16x32xf32>
    %119 = arith.mulf %117, %118 : vector<16x32xf32>
    %120 = vector.broadcast %99 : vector<1x32xf32> to vector<16x32xf32>
    %121 = arith.addf %119, %120 : vector<16x32xf32>
    %122 = vector.extract_strided_slice %121 {offsets = [0, 0], sizes = [8, 32], strides = [1, 1]} : vector<16x32xf32> to vector<8x32xf32>
    %123 = arith.addf %122, %1 : vector<8x32xf32>
    %124 = arith.addf %2, %3 : vector<16x32xf32>
    %c0_41 = arith.constant 0 : index
    %c0_42 = arith.constant 0 : index
    %125 = vector.load %arg9[%c0_41, %c0_42] : memref<32x96xbf16, #tpu.memory_space<vmem>>, vector<32x96xbf16>
    %c0_43 = arith.constant 0 : index
    %c0_44 = arith.constant 0 : index
    %126 = vector.load %arg10[%c0_43, %c0_44] : memref<32x32xbf16, #tpu.memory_space<vmem>>, vector<32x32xbf16>
    %127 = tpu.concatenate %124, %2 in 0 : vector<16x32xf32>, vector<16x32xf32> -> vector<32x32xf32>
    %128 = arith.truncf %127 : vector<32x32xf32> to vector<32x32xbf16>
    %129 = vector.extract_strided_slice %125 {offsets = [0, 32], sizes = [32, 64], strides = [1, 1]} : vector<32x96xbf16> to vector<32x64xbf16>
    %cst_45 = arith.constant dense<0.000000e+00> : vector<32x64xf32>
    %130 = tpu.matmul %128, %129, %cst_45 {dimension_numbers = #tpu.dot_dimension_numbers<[1], [0], [0], [1], [0, 0, 1, 1], [], []>} : vector<32x32xbf16>, vector<32x64xbf16>, vector<32x64xf32> -> vector<32x64xf32>
    %131 = vector.extract_strided_slice %130 {offsets = [0, 0], sizes = [16, 32], strides = [1, 1]} : vector<32x64xf32> to vector<16x32xf32>
    %132 = vector.extract_strided_slice %130 {offsets = [16, 32], sizes = [16, 32], strides = [1, 1]} : vector<32x64xf32> to vector<16x32xf32>
    %133 = arith.truncf %123 : vector<8x32xf32> to vector<8x32xbf16>
    %134 = vector.extract_strided_slice %125 {offsets = [0, 0], sizes = [32, 32], strides = [1, 1]} : vector<32x96xbf16> to vector<32x32xbf16>
    %cst_46 = arith.constant dense<0.000000e+00> : vector<8x32xf32>
    %135 = tpu.matmul %133, %134, %cst_46 {dimension_numbers = #tpu.dot_dimension_numbers<[1], [0], [0], [1], [0, 0, 1, 1], [], []>} : vector<8x32xbf16>, vector<32x32xbf16>, vector<8x32xf32> -> vector<8x32xf32>
    %136 = arith.truncf %135 : vector<8x32xf32> to vector<8x32xbf16>
    %137 = arith.truncf %132 : vector<16x32xf32> to vector<16x32xbf16>
    %138 = tpu.transpose %131, [1, 0] : vector<16x32xf32> -> vector<32x16xf32>
    %139 = vector.extract_strided_slice %136 {offsets = [0, 0], sizes = [8, 8], strides = [1, 1]} : vector<8x32xbf16> to vector<8x8xbf16>
    %140 = vector.extract_strided_slice %138 {offsets = [0, 0], sizes = [8, 16], strides = [1, 1]} : vector<32x16xf32> to vector<8x16xf32>
    %141 = arith.truncf %140 : vector<8x16xf32> to vector<8x16xbf16>
    %cst_47 = arith.constant dense<0.000000e+00> : vector<8x16xf32>
    %142 = tpu.matmul %139, %141, %cst_47 {dimension_numbers = #tpu.dot_dimension_numbers<[1], [0], [0], [1], [0, 0, 1, 1], [], []>} : vector<8x8xbf16>, vector<8x16xbf16>, vector<8x16xf32> -> vector<8x16xf32>
    %cst_48 = arith.constant 0.353553385 : f32
    %143 = vector.broadcast %cst_48 : f32 to vector<8x16xf32>
    %144 = arith.mulf %142, %143 : vector<8x16xf32>
    %cst_49 = arith.constant dense<0xFF800000> : vector<8xf32>
    %145 = vector.multi_reduction <maximumf>, %144, %cst_49 [1] : vector<8x16xf32> to vector<8xf32>
    %146 = vector.shape_cast %145 : vector<8xf32> to vector<8x1xf32>
    %147 = vector.broadcast %146 : vector<8x1xf32> to vector<8x16xf32>
    %148 = arith.subf %144, %147 : vector<8x16xf32>
    %149 = math.exp %148 : vector<8x16xf32>
    %cst_50 = arith.constant dense<0.000000e+00> : vector<8xf32>
    %150 = vector.multi_reduction <add>, %149, %cst_50 [1] : vector<8x16xf32> to vector<8xf32>
    %151 = vector.shape_cast %150 : vector<8xf32> to vector<8x1xf32>
    %152 = tpu.reciprocal %151 {approx = true} : vector<8x1xf32> -> vector<8x1xf32>
    %153 = vector.broadcast %152 : vector<8x1xf32> to vector<8x16xf32>
    %154 = arith.mulf %149, %153 : vector<8x16xf32>
    %155 = arith.truncf %154 : vector<8x16xf32> to vector<8x16xbf16>
    %156 = vector.extract_strided_slice %137 {offsets = [0, 0], sizes = [16, 8], strides = [1, 1]} : vector<16x32xbf16> to vector<16x8xbf16>
    %cst_51 = arith.constant dense<0.000000e+00> : vector<8x8xf32>
    %157 = tpu.matmul %155, %156, %cst_51 {dimension_numbers = #tpu.dot_dimension_numbers<[1], [0], [0], [1], [0, 0, 1, 1], [], []>} : vector<8x16xbf16>, vector<16x8xbf16>, vector<8x8xf32> -> vector<8x8xf32>
    %158 = vector.extract_strided_slice %136 {offsets = [0, 8], sizes = [8, 8], strides = [1, 1]} : vector<8x32xbf16> to vector<8x8xbf16>
    %159 = vector.extract_strided_slice %138 {offsets = [8, 0], sizes = [8, 16], strides = [1, 1]} : vector<32x16xf32> to vector<8x16xf32>
    %160 = arith.truncf %159 : vector<8x16xf32> to vector<8x16xbf16>
    %cst_52 = arith.constant dense<0.000000e+00> : vector<8x16xf32>
    %161 = tpu.matmul %158, %160, %cst_52 {dimension_numbers = #tpu.dot_dimension_numbers<[1], [0], [0], [1], [0, 0, 1, 1], [], []>} : vector<8x8xbf16>, vector<8x16xbf16>, vector<8x16xf32> -> vector<8x16xf32>
    %cst_53 = arith.constant 0.353553385 : f32
    %162 = vector.broadcast %cst_53 : f32 to vector<8x16xf32>
    %163 = arith.mulf %161, %162 : vector<8x16xf32>
    %cst_54 = arith.constant dense<0xFF800000> : vector<8xf32>
    %164 = vector.multi_reduction <maximumf>, %163, %cst_54 [1] : vector<8x16xf32> to vector<8xf32>
    %165 = vector.shape_cast %164 : vector<8xf32> to vector<8x1xf32>
    %166 = vector.broadcast %165 : vector<8x1xf32> to vector<8x16xf32>
    %167 = arith.subf %163, %166 : vector<8x16xf32>
    %168 = math.exp %167 : vector<8x16xf32>
    %cst_55 = arith.constant dense<0.000000e+00> : vector<8xf32>
    %169 = vector.multi_reduction <add>, %168, %cst_55 [1] : vector<8x16xf32> to vector<8xf32>
    %170 = vector.shape_cast %169 : vector<8xf32> to vector<8x1xf32>
    %171 = tpu.reciprocal %170 {approx = true} : vector<8x1xf32> -> vector<8x1xf32>
    %172 = vector.broadcast %171 : vector<8x1xf32> to vector<8x16xf32>
    %173 = arith.mulf %168, %172 : vector<8x16xf32>
    %174 = arith.truncf %173 : vector<8x16xf32> to vector<8x16xbf16>
    %175 = vector.extract_strided_slice %137 {offsets = [0, 8], sizes = [16, 8], strides = [1, 1]} : vector<16x32xbf16> to vector<16x8xbf16>
    %cst_56 = arith.constant dense<0.000000e+00> : vector<8x8xf32>
    %176 = tpu.matmul %174, %175, %cst_56 {dimension_numbers = #tpu.dot_dimension_numbers<[1], [0], [0], [1], [0, 0, 1, 1], [], []>} : vector<8x16xbf16>, vector<16x8xbf16>, vector<8x8xf32> -> vector<8x8xf32>
    %177 = vector.extract_strided_slice %136 {offsets = [0, 16], sizes = [8, 8], strides = [1, 1]} : vector<8x32xbf16> to vector<8x8xbf16>
    %178 = vector.extract_strided_slice %138 {offsets = [16, 0], sizes = [8, 16], strides = [1, 1]} : vector<32x16xf32> to vector<8x16xf32>
    %179 = arith.truncf %178 : vector<8x16xf32> to vector<8x16xbf16>
    %cst_57 = arith.constant dense<0.000000e+00> : vector<8x16xf32>
    %180 = tpu.matmul %177, %179, %cst_57 {dimension_numbers = #tpu.dot_dimension_numbers<[1], [0], [0], [1], [0, 0, 1, 1], [], []>} : vector<8x8xbf16>, vector<8x16xbf16>, vector<8x16xf32> -> vector<8x16xf32>
    %cst_58 = arith.constant 0.353553385 : f32
    %181 = vector.broadcast %cst_58 : f32 to vector<8x16xf32>
    %182 = arith.mulf %180, %181 : vector<8x16xf32>
    %cst_59 = arith.constant dense<0xFF800000> : vector<8xf32>
    %183 = vector.multi_reduction <maximumf>, %182, %cst_59 [1] : vector<8x16xf32> to vector<8xf32>
    %184 = vector.shape_cast %183 : vector<8xf32> to vector<8x1xf32>
    %185 = vector.broadcast %184 : vector<8x1xf32> to vector<8x16xf32>
    %186 = arith.subf %182, %185 : vector<8x16xf32>
    %187 = math.exp %186 : vector<8x16xf32>
    %cst_60 = arith.constant dense<0.000000e+00> : vector<8xf32>
    %188 = vector.multi_reduction <add>, %187, %cst_60 [1] : vector<8x16xf32> to vector<8xf32>
    %189 = vector.shape_cast %188 : vector<8xf32> to vector<8x1xf32>
    %190 = tpu.reciprocal %189 {approx = true} : vector<8x1xf32> -> vector<8x1xf32>
    %191 = vector.broadcast %190 : vector<8x1xf32> to vector<8x16xf32>
    %192 = arith.mulf %187, %191 : vector<8x16xf32>
    %193 = arith.truncf %192 : vector<8x16xf32> to vector<8x16xbf16>
    %194 = vector.extract_strided_slice %137 {offsets = [0, 16], sizes = [16, 8], strides = [1, 1]} : vector<16x32xbf16> to vector<16x8xbf16>
    %cst_61 = arith.constant dense<0.000000e+00> : vector<8x8xf32>
    %195 = tpu.matmul %193, %194, %cst_61 {dimension_numbers = #tpu.dot_dimension_numbers<[1], [0], [0], [1], [0, 0, 1, 1], [], []>} : vector<8x16xbf16>, vector<16x8xbf16>, vector<8x8xf32> -> vector<8x8xf32>
    %196 = vector.extract_strided_slice %136 {offsets = [0, 24], sizes = [8, 8], strides = [1, 1]} : vector<8x32xbf16> to vector<8x8xbf16>
    %197 = vector.extract_strided_slice %138 {offsets = [24, 0], sizes = [8, 16], strides = [1, 1]} : vector<32x16xf32> to vector<8x16xf32>
    %198 = arith.truncf %197 : vector<8x16xf32> to vector<8x16xbf16>
    %cst_62 = arith.constant dense<0.000000e+00> : vector<8x16xf32>
    %199 = tpu.matmul %196, %198, %cst_62 {dimension_numbers = #tpu.dot_dimension_numbers<[1], [0], [0], [1], [0, 0, 1, 1], [], []>} : vector<8x8xbf16>, vector<8x16xbf16>, vector<8x16xf32> -> vector<8x16xf32>
    %cst_63 = arith.constant 0.353553385 : f32
    %200 = vector.broadcast %cst_63 : f32 to vector<8x16xf32>
    %201 = arith.mulf %199, %200 : vector<8x16xf32>
    %cst_64 = arith.constant dense<0xFF800000> : vector<8xf32>
    %202 = vector.multi_reduction <maximumf>, %201, %cst_64 [1] : vector<8x16xf32> to vector<8xf32>
    %203 = vector.shape_cast %202 : vector<8xf32> to vector<8x1xf32>
    %204 = vector.broadcast %203 : vector<8x1xf32> to vector<8x16xf32>
    %205 = arith.subf %201, %204 : vector<8x16xf32>
    %206 = math.exp %205 : vector<8x16xf32>
    %cst_65 = arith.constant dense<0.000000e+00> : vector<8xf32>
    %207 = vector.multi_reduction <add>, %206, %cst_65 [1] : vector<8x16xf32> to vector<8xf32>
    %208 = vector.shape_cast %207 : vector<8xf32> to vector<8x1xf32>
    %209 = tpu.reciprocal %208 {approx = true} : vector<8x1xf32> -> vector<8x1xf32>
    %210 = vector.broadcast %209 : vector<8x1xf32> to vector<8x16xf32>
    %211 = arith.mulf %206, %210 : vector<8x16xf32>
    %212 = arith.truncf %211 : vector<8x16xf32> to vector<8x16xbf16>
    %213 = vector.extract_strided_slice %137 {offsets = [0, 24], sizes = [16, 8], strides = [1, 1]} : vector<16x32xbf16> to vector<16x8xbf16>
    %cst_66 = arith.constant dense<0.000000e+00> : vector<8x8xf32>
    %214 = tpu.matmul %212, %213, %cst_66 {dimension_numbers = #tpu.dot_dimension_numbers<[1], [0], [0], [1], [0, 0, 1, 1], [], []>} : vector<8x16xbf16>, vector<16x8xbf16>, vector<8x8xf32> -> vector<8x8xf32>
    %215 = tpu.concatenate %157, %176, %195, %214 in 1 : vector<8x8xf32>, vector<8x8xf32>, vector<8x8xf32>, vector<8x8xf32> -> vector<8x32xf32>
    %216 = arith.truncf %215 : vector<8x32xf32> to vector<8x32xbf16>
    %cst_67 = arith.constant dense<0.000000e+00> : vector<8x32xf32>
    %217 = tpu.matmul %216, %126, %cst_67 {dimension_numbers = #tpu.dot_dimension_numbers<[1], [0], [0], [1], [0, 0, 1, 1], [], []>} : vector<8x32xbf16>, vector<32x32xbf16>, vector<8x32xf32> -> vector<8x32xf32>
    %218 = tpu.concatenate %217, %217 in 0 : vector<8x32xf32>, vector<8x32xf32> -> vector<16x32xf32>
    %219 = arith.addf %218, %121 : vector<16x32xf32>
    %c0_68 = arith.constant 0 : index
    %c0_69 = arith.constant 0 : index
    %220 = vector.load %arg11[%c0_68, %c0_69] : memref<1x32xf32, #tpu.memory_space<vmem>>, vector<1x32xf32>
    %c0_70 = arith.constant 0 : index
    %c0_71 = arith.constant 0 : index
    %221 = vector.load %arg12[%c0_70, %c0_71] : memref<1x32xf32, #tpu.memory_space<vmem>>, vector<1x32xf32>
    %cst_72 = arith.constant dense<0.000000e+00> : vector<16xf32>
    %222 = vector.multi_reduction <add>, %219, %cst_72 [1] : vector<16x32xf32> to vector<16xf32>
    %223 = vector.shape_cast %222 : vector<16xf32> to vector<16x1xf32>
    %cst_73 = arith.constant 3.200000e+01 : f32
    %224 = vector.broadcast %cst_73 : f32 to vector<16x1xf32>
    %225 = arith.divf %223, %224 : vector<16x1xf32>
    %226 = vector.broadcast %225 : vector<16x1xf32> to vector<16x32xf32>
    %227 = arith.subf %219, %226 : vector<16x32xf32>
    %228 = arith.mulf %227, %227 : vector<16x32xf32>
    %cst_74 = arith.constant dense<0.000000e+00> : vector<16xf32>
    %229 = vector.multi_reduction <add>, %228, %cst_74 [1] : vector<16x32xf32> to vector<16xf32>
    %230 = vector.shape_cast %229 : vector<16xf32> to vector<16x1xf32>
    %cst_75 = arith.constant 3.200000e+01 : f32
    %231 = vector.broadcast %cst_75 : f32 to vector<16x1xf32>
    %232 = arith.divf %230, %231 : vector<16x1xf32>
    %233 = vector.broadcast %225 : vector<16x1xf32> to vector<16x32xf32>
    %234 = arith.subf %219, %233 : vector<16x32xf32>
    %cst_76 = arith.constant 9.99999974E-6 : f32
    %235 = vector.broadcast %cst_76 : f32 to vector<16x1xf32>
    %236 = arith.addf %232, %235 : vector<16x1xf32>
    %237 = math.rsqrt %236 : vector<16x1xf32>
    %238 = vector.broadcast %237 : vector<16x1xf32> to vector<16x32xf32>
    %239 = arith.mulf %234, %238 : vector<16x32xf32>
    %240 = vector.broadcast %220 : vector<1x32xf32> to vector<16x32xf32>
    %241 = arith.mulf %239, %240 : vector<16x32xf32>
    %242 = vector.broadcast %221 : vector<1x32xf32> to vector<16x32xf32>
    %243 = arith.addf %241, %242 : vector<16x32xf32>
    %c0_77 = arith.constant 0 : index
    %c0_78 = arith.constant 0 : index
    %244 = vector.load %arg13[%c0_77, %c0_78] : memref<32x128xbf16, #tpu.memory_space<vmem>>, vector<32x128xbf16>
    %c0_79 = arith.constant 0 : index
    %c0_80 = arith.constant 0 : index
    %245 = vector.load %arg14[%c0_79, %c0_80] : memref<1x128xf32, #tpu.memory_space<vmem>>, vector<1x128xf32>
    %c0_81 = arith.constant 0 : index
    %c0_82 = arith.constant 0 : index
    %246 = vector.load %arg15[%c0_81, %c0_82] : memref<128x32xbf16, #tpu.memory_space<vmem>>, vector<128x32xbf16>
    %c0_83 = arith.constant 0 : index
    %c0_84 = arith.constant 0 : index
    %247 = vector.load %arg16[%c0_83, %c0_84] : memref<1x32xf32, #tpu.memory_space<vmem>>, vector<1x32xf32>
    %248 = arith.truncf %243 : vector<16x32xf32> to vector<16x32xbf16>
    %cst_85 = arith.constant dense<0.000000e+00> : vector<16x128xf32>
    %249 = tpu.matmul %248, %244, %cst_85 {dimension_numbers = #tpu.dot_dimension_numbers<[1], [0], [0], [1], [0, 0, 1, 1], [], []>} : vector<16x32xbf16>, vector<32x128xbf16>, vector<16x128xf32> -> vector<16x128xf32>
    %250 = vector.broadcast %245 : vector<1x128xf32> to vector<16x128xf32>
    %251 = arith.addf %249, %250 : vector<16x128xf32>
    %cst_86 = arith.constant 0.000000e+00 : f32
    %252 = vector.broadcast %cst_86 : f32 to vector<16x128xf32>
    %253 = arith.maximumf %251, %252 : vector<16x128xf32>
    %254 = arith.truncf %253 : vector<16x128xf32> to vector<16x128xbf16>
    %cst_87 = arith.constant dense<0.000000e+00> : vector<16x32xf32>
    %255 = tpu.matmul %254, %246, %cst_87 {dimension_numbers = #tpu.dot_dimension_numbers<[1], [0], [0], [1], [0, 0, 1, 1], [], []>} : vector<16x128xbf16>, vector<128x32xbf16>, vector<16x32xf32> -> vector<16x32xf32>
    %256 = vector.broadcast %247 : vector<1x32xf32> to vector<16x32xf32>
    %257 = arith.addf %255, %256 : vector<16x32xf32>
    %258 = arith.addf %257, %243 : vector<16x32xf32>
    %c0_88 = arith.constant 0 : index
    %c0_89 = arith.constant 0 : index
    %259 = vector.load %arg17[%c0_88, %c0_89] : memref<1x32xf32, #tpu.memory_space<vmem>>, vector<1x32xf32>
    %c0_90 = arith.constant 0 : index
    %c0_91 = arith.constant 0 : index
    %260 = vector.load %arg18[%c0_90, %c0_91] : memref<1x32xf32, #tpu.memory_space<vmem>>, vector<1x32xf32>
    %cst_92 = arith.constant dense<0.000000e+00> : vector<16xf32>
    %261 = vector.multi_reduction <add>, %258, %cst_92 [1] : vector<16x32xf32> to vector<16xf32>
    %262 = vector.shape_cast %261 : vector<16xf32> to vector<16x1xf32>
    %cst_93 = arith.constant 3.200000e+01 : f32
    %263 = vector.broadcast %cst_93 : f32 to vector<16x1xf32>
    %264 = arith.divf %262, %263 : vector<16x1xf32>
    %265 = vector.broadcast %264 : vector<16x1xf32> to vector<16x32xf32>
    %266 = arith.subf %258, %265 : vector<16x32xf32>
    %267 = arith.mulf %266, %266 : vector<16x32xf32>
    %cst_94 = arith.constant dense<0.000000e+00> : vector<16xf32>
    %268 = vector.multi_reduction <add>, %267, %cst_94 [1] : vector<16x32xf32> to vector<16xf32>
    %269 = vector.shape_cast %268 : vector<16xf32> to vector<16x1xf32>
    %cst_95 = arith.constant 3.200000e+01 : f32
    %270 = vector.broadcast %cst_95 : f32 to vector<16x1xf32>
    %271 = arith.divf %269, %270 : vector<16x1xf32>
    %272 = vector.broadcast %264 : vector<16x1xf32> to vector<16x32xf32>
    %273 = arith.subf %258, %272 : vector<16x32xf32>
    %cst_96 = arith.constant 9.99999974E-6 : f32
    %274 = vector.broadcast %cst_96 : f32 to vector<16x1xf32>
    %275 = arith.addf %271, %274 : vector<16x1xf32>
    %276 = math.rsqrt %275 : vector<16x1xf32>
    %277 = vector.broadcast %276 : vector<16x1xf32> to vector<16x32xf32>
    %278 = arith.mulf %273, %277 : vector<16x32xf32>
    %279 = vector.broadcast %259 : vector<1x32xf32> to vector<16x32xf32>
    %280 = arith.mulf %278, %279 : vector<16x32xf32>
    %281 = vector.broadcast %260 : vector<1x32xf32> to vector<16x32xf32>
    %282 = arith.addf %280, %281 : vector<16x32xf32>
    %c0_97 = arith.constant 0 : index
    %c0_98 = arith.constant 0 : index
    %283 = vector.load %arg19[%c0_97, %c0_98] : memref<16x32xf32, #tpu.memory_space<vmem>>, vector<16x32xf32>
    tpu.vector_store %arg19[%c0_97, %c0_98], %282 {strides = array<i32>} : memref<16x32xf32, #tpu.memory_space<vmem>>, vector<16x32xf32>,
    return
  }
  func.func @transform_0(%arg0: i32) -> (i32, i32) {
    %c0_i32 = arith.constant 0 : i32
    %c0_i32_0 = arith.constant 0 : i32
    %c0_i32_1 = arith.constant 0 : i32
    return %c0_i32, %c0_i32_0 : i32, i32
  }
  func.func @transform_1(%arg0: i32) -> (i32, i32) {
    %c0_i32 = arith.constant 0 : i32
    %c0_i32_0 = arith.constant 0 : i32
    %c0_i32_1 = arith.constant 0 : i32
    return %c0_i32, %c0_i32_0 : i32, i32
  }
  func.func @transform_2(%arg0: i32) -> (i32, i32) {
    %c0_i32 = arith.constant 0 : i32
    %c0_i32_0 = arith.constant 0 : i32
    %c0_i32_1 = arith.constant 0 : i32
    return %c0_i32, %c0_i32_0 : i32, i32
  }
  func.func @transform_3(%arg0: i32) -> (i32, i32) {
    %c0_i32 = arith.constant 0 : i32
    %c0_i32_0 = arith.constant 0 : i32
    %c0_i32_1 = arith.constant 0 : i32
    return %c0_i32, %c0_i32_0 : i32, i32
  }
  func.func @transform_4(%arg0: i32) -> (i32, i32) {
    %c0_i32 = arith.constant 0 : i32
    %c0_i32_0 = arith.constant 0 : i32
    %c0_i32_1 = arith.constant 0 : i32
    return %c0_i32, %c0_i32_0 : i32, i32
  }
  func.func @transform_5(%arg0: i32) -> (i32, i32) {
    %c0_i32 = arith.constant 0 : i32
    %c0_i32_0 = arith.constant 0 : i32
    %c0_i32_1 = arith.constant 0 : i32
    return %c0_i32, %c0_i32_0 : i32, i32
  }
  func.func @transform_6(%arg0: i32) -> (i32, i32) {
    %c0_i32 = arith.constant 0 : i32
    %c0_i32_0 = arith.constant 0 : i32
    %c0_i32_1 = arith.constant 0 : i32
    return %c0_i32, %c0_i32_0 : i32, i32
  }
  func.func @transform_7(%arg0: i32) -> (i32, i32) {
    %c0_i32 = arith.constant 0 : i32
    %c0_i32_0 = arith.constant 0 : i32
    %c0_i32_1 = arith.constant 0 : i32
    return %c0_i32, %c0_i32_0 : i32, i32
  }
  func.func @transform_8(%arg0: i32) -> (i32, i32) {
    %c0_i32 = arith.constant 0 : i32
    %c0_i32_0 = arith.constant 0 : i32
    %c0_i32_1 = arith.constant 0 : i32
    return %c0_i32, %c0_i32_0 : i32, i32
  }
  func.func @transform_9(%arg0: i32) -> (i32, i32) {
    %c0_i32 = arith.constant 0 : i32
    %c0_i32_0 = arith.constant 0 : i32
    %c0_i32_1 = arith.constant 0 : i32
    return %c0_i32, %c0_i32_0 : i32, i32
  }
  func.func @transform_10(%arg0: i32) -> (i32, i32) {
    %c0_i32 = arith.constant 0 : i32
    %c0_i32_0 = arith.constant 0 : i32
    %c0_i32_1 = arith.constant 0 : i32
    return %c0_i32, %c0_i32_0 : i32, i32
  }
  func.func @transform_11(%arg0: i32) -> (i32, i32) {
    %c0_i32 = arith.constant 0 : i32
    %c0_i32_0 = arith.constant 0 : i32
    %c0_i32_1 = arith.constant 0 : i32
    return %c0_i32, %c0_i32_0 : i32, i32
  }
  func.func @transform_12(%arg0: i32) -> (i32, i32) {
    %c0_i32 = arith.constant 0 : i32
    %c0_i32_0 = arith.constant 0 : i32
    %c0_i32_1 = arith.constant 0 : i32
    return %c0_i32, %c0_i32_0 : i32, i32
  }
  func.func @transform_13(%arg0: i32) -> (i32, i32) {
    %c0_i32 = arith.constant 0 : i32
    %c0_i32_0 = arith.constant 0 : i32
    %c0_i32_1 = arith.constant 0 : i32
    return %c0_i32, %c0_i32_0 : i32, i32
  }
  func.func @transform_14(%arg0: i32) -> (i32, i32) {
    %c0_i32 = arith.constant 0 : i32
    %c0_i32_0 = arith.constant 0 : i32
    %c0_i32_1 = arith.constant 0 : i32
    return %c0_i32, %c0_i32_0 : i32, i32
  }
  func.func @transform_15(%arg0: i32) -> (i32, i32) {
    %c0_i32 = arith.constant 0 : i32
    %c0_i32_0 = arith.constant 0 : i32
    %c0_i32_1 = arith.constant 0 : i32
    return %c0_i32, %c0_i32_0 : i32, i32
  }
  func.func @transform_16(%arg0: i32) -> (i32, i32) {
    %c0_i32 = arith.constant 0 : i32
    %c0_i32_0 = arith.constant 0 : i32
    %c0_i32_1 = arith.constant 0 : i32
    return %c0_i32, %c0_i32_0 : i32, i32
  }
  func.func @transform_17(%arg0: i32) -> (i32, i32) {
    %c0_i32 = arith.constant 0 : i32
    %c0_i32_0 = arith.constant 0 : i32
    %c0_i32_1 = arith.constant 0 : i32
    return %c0_i32, %c0_i32_0 : i32, i32
  }
  func.func @transform_18(%arg0: i32) -> (i32, i32) {
    %c0_i32 = arith.constant 0 : i32
    %c0_i32_0 = arith.constant 0 : i32
    %c0_i32_1 = arith.constant 0 : i32
    return %c0_i32, %c0_i32_0 : i32, i32
  }
}

module attributes {stable_mosaic.version = 11 : i64} {
  func.func @_heads_kernel(%arg0: i32, %arg1: memref<16x32xf32, #tpu.memory_space<vmem>>, %arg2: memref<32x32xbf16, #tpu.memory_space<vmem>>, %arg3: memref<1x32xf32, #tpu.memory_space<vmem>>, %arg4: memref<32x32xbf16, #tpu.memory_space<vmem>>, %arg5: memref<1x32xf32, #tpu.memory_space<vmem>>, %arg6: memref<32x4xbf16, #tpu.memory_space<vmem>>, %arg7: memref<1x4xf32, #tpu.memory_space<vmem>>, %arg8: memref<32x9xbf16, #tpu.memory_space<vmem>>, %arg9: memref<1x9xf32, #tpu.memory_space<vmem>>, %arg10: memref<16x4xf32, #tpu.memory_space<vmem>>, %arg11: memref<16x9xf32, #tpu.memory_space<vmem>>) attributes {dimension_semantics = [#tpu.dimension_semantics<parallel>], iteration_bounds = array<i64: 1>, scalar_prefetch = 0 : i64, scratch_operands = 0 : i64, tpu.core_type = #tpu.core_type<tc>, window_params = [{pipeline_mode = #tpu.pipeline_mode<synchronous>, transform_indices = @transform_0, window_bounds = array<i64: 16, 32>}, {pipeline_mode = #tpu.pipeline_mode<synchronous>, transform_indices = @transform_1, window_bounds = array<i64: 32, 32>}, {pipeline_mode = #tpu.pipeline_mode<synchronous>, transform_indices = @transform_2, window_bounds = array<i64: 1, 32>}, {pipeline_mode = #tpu.pipeline_mode<synchronous>, transform_indices = @transform_3, window_bounds = array<i64: 32, 32>}, {pipeline_mode = #tpu.pipeline_mode<synchronous>, transform_indices = @transform_4, window_bounds = array<i64: 1, 32>}, {pipeline_mode = #tpu.pipeline_mode<synchronous>, transform_indices = @transform_5, window_bounds = array<i64: 32, 4>}, {pipeline_mode = #tpu.pipeline_mode<synchronous>, transform_indices = @transform_6, window_bounds = array<i64: 1, 4>}, {pipeline_mode = #tpu.pipeline_mode<synchronous>, transform_indices = @transform_7, window_bounds = array<i64: 32, 9>}, {pipeline_mode = #tpu.pipeline_mode<synchronous>, transform_indices = @transform_8, window_bounds = array<i64: 1, 9>}, {pipeline_mode = #tpu.pipeline_mode<synchronous>, transform_indices = @transform_9, window_bounds = array<i64: 16, 4>}, {pipeline_mode = #tpu.pipeline_mode<synchronous>, transform_indices = @transform_10, window_bounds = array<i64: 16, 9>}]} {
    %c0 = arith.constant 0 : index
    %c0_0 = arith.constant 0 : index
    %0 = vector.load %arg1[%c0, %c0_0] : memref<16x32xf32, #tpu.memory_space<vmem>>, vector<16x32xf32>
    %1 = arith.truncf %0 : vector<16x32xf32> to vector<16x32xbf16>
    %c0_1 = arith.constant 0 : index
    %c0_2 = arith.constant 0 : index
    %2 = vector.load %arg2[%c0_1, %c0_2] : memref<32x32xbf16, #tpu.memory_space<vmem>>, vector<32x32xbf16>
    %cst = arith.constant dense<0.000000e+00> : vector<16x32xf32>
    %3 = tpu.matmul %1, %2, %cst {dimension_numbers = #tpu.dot_dimension_numbers<[1], [0], [0], [1], [0, 0, 1, 1], [], []>} : vector<16x32xbf16>, vector<32x32xbf16>, vector<16x32xf32> -> vector<16x32xf32>
    %c0_3 = arith.constant 0 : index
    %c0_4 = arith.constant 0 : index
    %4 = vector.load %arg3[%c0_3, %c0_4] : memref<1x32xf32, #tpu.memory_space<vmem>>, vector<1x32xf32>
    %5 = vector.broadcast %4 : vector<1x32xf32> to vector<16x32xf32>
    %6 = arith.addf %3, %5 : vector<16x32xf32>
    %cst_5 = arith.constant 0.000000e+00 : f32
    %7 = vector.broadcast %cst_5 : f32 to vector<16x32xf32>
    %8 = arith.maximumf %6, %7 : vector<16x32xf32>
    %9 = arith.truncf %8 : vector<16x32xf32> to vector<16x32xbf16>
    %c0_6 = arith.constant 0 : index
    %c0_7 = arith.constant 0 : index
    %10 = vector.load %arg4[%c0_6, %c0_7] : memref<32x32xbf16, #tpu.memory_space<vmem>>, vector<32x32xbf16>
    %cst_8 = arith.constant dense<0.000000e+00> : vector<16x32xf32>
    %11 = tpu.matmul %9, %10, %cst_8 {dimension_numbers = #tpu.dot_dimension_numbers<[1], [0], [0], [1], [0, 0, 1, 1], [], []>} : vector<16x32xbf16>, vector<32x32xbf16>, vector<16x32xf32> -> vector<16x32xf32>
    %c0_9 = arith.constant 0 : index
    %c0_10 = arith.constant 0 : index
    %12 = vector.load %arg5[%c0_9, %c0_10] : memref<1x32xf32, #tpu.memory_space<vmem>>, vector<1x32xf32>
    %13 = vector.broadcast %12 : vector<1x32xf32> to vector<16x32xf32>
    %14 = arith.addf %11, %13 : vector<16x32xf32>
    %cst_11 = arith.constant 0.000000e+00 : f32
    %15 = vector.broadcast %cst_11 : f32 to vector<16x32xf32>
    %16 = arith.maximumf %14, %15 : vector<16x32xf32>
    %17 = arith.truncf %16 : vector<16x32xf32> to vector<16x32xbf16>
    %c0_12 = arith.constant 0 : index
    %c0_13 = arith.constant 0 : index
    %18 = vector.load %arg6[%c0_12, %c0_13] : memref<32x4xbf16, #tpu.memory_space<vmem>>, vector<32x4xbf16>
    %cst_14 = arith.constant dense<0.000000e+00> : vector<16x4xf32>
    %19 = tpu.matmul %17, %18, %cst_14 {dimension_numbers = #tpu.dot_dimension_numbers<[1], [0], [0], [1], [0, 0, 1, 1], [], []>} : vector<16x32xbf16>, vector<32x4xbf16>, vector<16x4xf32> -> vector<16x4xf32>
    %c0_15 = arith.constant 0 : index
    %c0_16 = arith.constant 0 : index
    %20 = vector.load %arg7[%c0_15, %c0_16] : memref<1x4xf32, #tpu.memory_space<vmem>>, vector<1x4xf32>
    %21 = vector.broadcast %20 : vector<1x4xf32> to vector<16x4xf32>
    %22 = arith.addf %19, %21 : vector<16x4xf32>
    %cst_17 = arith.constant 0.000000e+00 : f32
    %23 = vector.broadcast %cst_17 : f32 to vector<16x4xf32>
    %24 = arith.subf %23, %22 : vector<16x4xf32>
    %25 = math.exp %24 : vector<16x4xf32>
    %cst_18 = arith.constant 1.000000e+00 : f32
    %26 = vector.broadcast %cst_18 : f32 to vector<16x4xf32>
    %27 = arith.addf %26, %25 : vector<16x4xf32>
    %cst_19 = arith.constant 1.000000e+00 : f32
    %28 = vector.broadcast %cst_19 : f32 to vector<16x4xf32>
    %29 = arith.divf %28, %27 : vector<16x4xf32>
    %c0_20 = arith.constant 0 : index
    %c0_21 = arith.constant 0 : index
    %30 = vector.load %arg10[%c0_20, %c0_21] : memref<16x4xf32, #tpu.memory_space<vmem>>, vector<16x4xf32>
    tpu.vector_store %arg10[%c0_20, %c0_21], %29 {strides = array<i32>} : memref<16x4xf32, #tpu.memory_space<vmem>>, vector<16x4xf32>,
    %c0_22 = arith.constant 0 : index
    %c0_23 = arith.constant 0 : index
    %31 = vector.load %arg8[%c0_22, %c0_23] : memref<32x9xbf16, #tpu.memory_space<vmem>>, vector<32x9xbf16>
    %cst_24 = arith.constant dense<0.000000e+00> : vector<16x9xf32>
    %32 = tpu.matmul %1, %31, %cst_24 {dimension_numbers = #tpu.dot_dimension_numbers<[1], [0], [0], [1], [0, 0, 1, 1], [], []>} : vector<16x32xbf16>, vector<32x9xbf16>, vector<16x9xf32> -> vector<16x9xf32>
    %c0_25 = arith.constant 0 : index
    %c0_26 = arith.constant 0 : index
    %33 = vector.load %arg9[%c0_25, %c0_26] : memref<1x9xf32, #tpu.memory_space<vmem>>, vector<1x9xf32>
    %34 = vector.broadcast %33 : vector<1x9xf32> to vector<16x9xf32>
    %35 = arith.addf %32, %34 : vector<16x9xf32>
    %cst_27 = arith.constant dense<0xFF800000> : vector<16xf32>
    %36 = vector.multi_reduction <maximumf>, %35, %cst_27 [1] : vector<16x9xf32> to vector<16xf32>
    %37 = vector.shape_cast %36 : vector<16xf32> to vector<16x1xf32>
    %38 = vector.broadcast %37 : vector<16x1xf32> to vector<16x9xf32>
    %39 = arith.subf %35, %38 : vector<16x9xf32>
    %40 = math.exp %39 : vector<16x9xf32>
    %cst_28 = arith.constant dense<0.000000e+00> : vector<16xf32>
    %41 = vector.multi_reduction <add>, %40, %cst_28 [1] : vector<16x9xf32> to vector<16xf32>
    %42 = vector.shape_cast %41 : vector<16xf32> to vector<16x1xf32>
    %43 = tpu.reciprocal %42 {approx = true} : vector<16x1xf32> -> vector<16x1xf32>
    %44 = vector.broadcast %43 : vector<16x1xf32> to vector<16x9xf32>
    %45 = arith.mulf %40, %44 : vector<16x9xf32>
    %c0_29 = arith.constant 0 : index
    %c0_30 = arith.constant 0 : index
    %46 = vector.load %arg11[%c0_29, %c0_30] : memref<16x9xf32, #tpu.memory_space<vmem>>, vector<16x9xf32>
    tpu.vector_store %arg11[%c0_29, %c0_30], %45 {strides = array<i32>} : memref<16x9xf32, #tpu.memory_space<vmem>>, vector<16x9xf32>,
    return
  }
  func.func @transform_0(%arg0: i32) -> (i32, i32) {
    %c0_i32 = arith.constant 0 : i32
    %c0_i32_0 = arith.constant 0 : i32
    %c0_i32_1 = arith.constant 0 : i32
    return %c0_i32, %c0_i32_0 : i32, i32
  }
  func.func @transform_1(%arg0: i32) -> (i32, i32) {
    %c0_i32 = arith.constant 0 : i32
    %c0_i32_0 = arith.constant 0 : i32
    %c0_i32_1 = arith.constant 0 : i32
    return %c0_i32, %c0_i32_0 : i32, i32
  }
  func.func @transform_2(%arg0: i32) -> (i32, i32) {
    %c0_i32 = arith.constant 0 : i32
    %c0_i32_0 = arith.constant 0 : i32
    %c0_i32_1 = arith.constant 0 : i32
    return %c0_i32, %c0_i32_0 : i32, i32
  }
  func.func @transform_3(%arg0: i32) -> (i32, i32) {
    %c0_i32 = arith.constant 0 : i32
    %c0_i32_0 = arith.constant 0 : i32
    %c0_i32_1 = arith.constant 0 : i32
    return %c0_i32, %c0_i32_0 : i32, i32
  }
  func.func @transform_4(%arg0: i32) -> (i32, i32) {
    %c0_i32 = arith.constant 0 : i32
    %c0_i32_0 = arith.constant 0 : i32
    %c0_i32_1 = arith.constant 0 : i32
    return %c0_i32, %c0_i32_0 : i32, i32
  }
  func.func @transform_5(%arg0: i32) -> (i32, i32) {
    %c0_i32 = arith.constant 0 : i32
    %c0_i32_0 = arith.constant 0 : i32
    %c0_i32_1 = arith.constant 0 : i32
    return %c0_i32, %c0_i32_0 : i32, i32
  }
  func.func @transform_6(%arg0: i32) -> (i32, i32) {
    %c0_i32 = arith.constant 0 : i32
    %c0_i32_0 = arith.constant 0 : i32
    %c0_i32_1 = arith.constant 0 : i32
    return %c0_i32, %c0_i32_0 : i32, i32
  }
  func.func @transform_7(%arg0: i32) -> (i32, i32) {
    %c0_i32 = arith.constant 0 : i32
    %c0_i32_0 = arith.constant 0 : i32
    %c0_i32_1 = arith.constant 0 : i32
    return %c0_i32, %c0_i32_0 : i32, i32
  }
  func.func @transform_8(%arg0: i32) -> (i32, i32) {
    %c0_i32 = arith.constant 0 : i32
    %c0_i32_0 = arith.constant 0 : i32
    %c0_i32_1 = arith.constant 0 : i32
    return %c0_i32, %c0_i32_0 : i32, i32
  }
  func.func @transform_9(%arg0: i32) -> (i32, i32) {
    %c0_i32 = arith.constant 0 : i32
    %c0_i32_0 = arith.constant 0 : i32
    %c0_i32_1 = arith.constant 0 : i32
    return %c0_i32, %c0_i32_0 : i32, i32
  }
  func.func @transform_10(%arg0: i32) -> (i32, i32) {
    %c0_i32 = arith.constant 0 : i32
    %c0_i32_0 = arith.constant 0 : i32
    %c0_i32_1 = arith.constant 0 : i32
    return %c0_i32, %c0_i32_0 : i32, i32
  }
}

</mosaic_0001>

<bundles_post_ra>
// kernel: _lambda_.6
= control target key start
LH: loop header
LB: loop body
LE: loop exit
PB: predicated region body
PF: predicated region fallthrough
CT: control target
= control target key end

     0   :  { %vm589_vm0 = vcmask 261120   ;;  %s1046_s1 = inlined_call_operand.vmem [shape: bf16[768,32], index: 1, kind: input, shape index: {}]   ;;  %s1047_s0 = inlined_call_operand.vmem [shape: f32[32,768], index: 0, kind: input, shape index: {}]   ;;  %s1048_s2 = inlined_call_operand.vmem [shape: f32[1,32], index: 2, kind: input, shape index: {}]   ;;  %s1049_s3 = inlined_call_operand.vmem [shape: f32[32,32], index: 3, kind: output, shape index: {}]  }
   0x1   :  { %v747_v0 = vld [vmem:[%s1046_s1 + $0x40] sm:$0xff]   ;;  %v751_v4 = vld [vmem:[%s1046_s1 + $0x48] sm:$0xff]   ;;  %v755_v8 = vld [vmem:[%s1046_s1 + $0x50] sm:$0xff]  }
   0x2   :  { %v748_v1 = vld [vmem:[%s1046_s1 + $0xc0] sm:$0xff]   ;;  %647 = vmatprep.subr.bf16.mxu0 %v747_v0  ;;  %v752_v5 = vld [vmem:[%s1046_s1 + $0xc8] sm:$0xff]   ;;  %v756_v9 = vld [vmem:[%s1046_s1 + $0xd0] sm:$0xff]  }
   0x3   :  { %v749_v2 = vld [vmem:[%s1046_s1] sm:$0xff]   ;;  %675 = vmatprep.subr.bf16.mxu1 %v748_v1  ;;  %v753_v6 = vld [vmem:[%s1046_s1 + $0x8] sm:$0xff]   ;;  %v757_v10 = vld [vmem:[%s1046_s1 + $0x10] sm:$0xff]  }
   0x4   :  { %v750_v3 = vld [vmem:[%s1046_s1 + $0x80] sm:$0xff]   ;;  %648 = vmatpush3.bf16.msra.mxu0 %v749_v2  ;;  %v754_v7 = vld [vmem:[%s1046_s1 + $0x88] sm:$0xff]   ;;  %v758_v11 = vld [vmem:[%s1046_s1 + $0x90] sm:$0xff]  }
   0x5   :  { %676 = vmatpush3.bf16.msra.mxu1 %v750_v3  ;;  %649 = vmatprep.subr.bf16.mxu0 %v751_v4  ;;  %v759_v12 = vld [vmem:[%s1046_s1 + $0x58] sm:$0xff]   ;;  %v763_v16 = vld [vmem:[%s1046_s1 + $0x60] sm:$0xff]   ;;  %v767_v20 = vld [vmem:[%s1046_s1 + $0x68] sm:$0xff]  }
   0x6   :  { %677 = vmatprep.subr.bf16.mxu1 %v752_v5  ;;  %v760_v13 = vld [vmem:[%s1046_s1 + $0xd8] sm:$0xff]   ;;  %v764_v17 = vld [vmem:[%s1046_s1 + $0xe0] sm:$0xff]   ;;  %v768_v21 = vld [vmem:[%s1046_s1 + $0xe8] sm:$0xff]  }
   0x7   :  { %v761_v14 = vld [vmem:[%s1046_s1 + $0x18] sm:$0xff]   ;;  %v765_v18 = vld [vmem:[%s1046_s1 + $0x20] sm:$0xff]   ;;  %v769_v22 = vld [vmem:[%s1046_s1 + $0x28] sm:$0xff]  }
   0x8   :  { %650 = vmatpush3.bf16.msra.mxu0 %v753_v6  ;;  %v762_v15 = vld [vmem:[%s1046_s1 + $0x98] sm:$0xff]   ;;  %v766_v19 = vld [vmem:[%s1046_s1 + $0xa0] sm:$0xff]   ;;  %v770_v23 = vld [vmem:[%s1046_s1 + $0xa8] sm:$0xff]  }
   0x9   :  { %678 = vmatpush3.bf16.msra.mxu1 %v754_v7  ;;  %651 = vmatprep.subr.bf16.mxu0 %v755_v8  ;;  %v771_v24 = vld [vmem:[%s1046_s1 + $0x70] sm:$0xff]   ;;  %v775_v28 = vld [vmem:[%s1046_s1 + $0x78] sm:$0xff]   ;;  %v16_v32 = vld [vmem:[%s1047_s0 + $0x8] sm:$0xff] }
   0xa   :  { %679 = vmatprep.subr.bf16.mxu1 %v756_v9  ;;  %v772_v25 = vld [vmem:[%s1046_s1 + $0xf0] sm:$0xff]   ;;  %v776_v29 = vld [vmem:[%s1046_s1 + $0xf8] sm:$0xff]   ;;  %v24_v36 = vld [vmem:[%s1047_s0 + $0x48] sm:$0xff] }
   0xb   :  { %v773_v26 = vld [vmem:[%s1046_s1 + $0x30] sm:$0xff]   ;;  %v777_v30 = vld [vmem:[%s1046_s1 + $0x38] sm:$0xff]   ;;  %v15_v37 = vld [vmem:[%s1047_s0] sm:$0xff] }
   0xc   :  { %652 = vmatpush3.bf16.msra.mxu0 %v757_v10  ;;  %v774_v27 = vld [vmem:[%s1046_s1 + $0xb0] sm:$0xff]   ;;  %v778_v31 = vld [vmem:[%s1046_s1 + $0xb8] sm:$0xff]   ;;  %v23_v42 = vld [vmem:[%s1047_s0 + $0x40] sm:$0xff] }
   0xd   :  { %680 = vmatpush3.bf16.msra.mxu1 %v758_v11  ;;  %653 = vmatprep.subr.bf16.mxu0 %v759_v12  ;;  %v22_v33 = vld [vmem:[%s1047_s0 + $0x38] sm:$0xff]  ;;  %v21_v38 = vld [vmem:[%s1047_s0 + $0x30] sm:$0xff]  ;;  %v779_v44 = vld [vmem:[%s1046_s1 + $0x140] sm:$0xff]  }
   0xe   :  { %681 = vmatprep.subr.bf16.mxu1 %v760_v13  ;;  %v18_v34 = vld [vmem:[%s1047_s0 + $0x18] sm:$0xff]  ;;  %v40_v35 = vpack.c.bf16 %v22_v33, %v16_v32  ;;  %v39_v40 = vpack.c.bf16 %v21_v38, %v15_v37  ;;  %v17_v41 = vld [vmem:[%s1047_s0 + $0x10] sm:$0xff]  ;;  %v780_v45 = vld [vmem:[%s1046_s1 + $0x100] sm:$0xff]  }
   0xf   :  { %v42_v39 = vpack.c.bf16 %v24_v36, %v18_v34  ;;  %v41_v43 = vpack.c.bf16 %v23_v42, %v17_v41  ;;  %v781_v46 = vld [vmem:[%s1046_s1 + $0x148] sm:$0xff]   ;;  %v783_v48 = vld [vmem:[%s1046_s1 + $0x150] sm:$0xff]   ;;  %v785_v50 = vld [vmem:[%s1046_s1 + $0x158] sm:$0xff]  }
  0x10   :  { %654 = vmatpush3.bf16.msra.mxu0 %v761_v14  ;;  %474 = vmatprep.mubr.bf16.mxu0 %v40_v35  ;;  %v782_v47 = vld [vmem:[%s1046_s1 + $0x108] sm:$0xff]   ;;  %v784_v49 = vld [vmem:[%s1046_s1 + $0x110] sm:$0xff]   ;;  %v786_v51 = vld [vmem:[%s1046_s1 + $0x118] sm:$0xff]  }
  0x11   :  { %682 = vmatpush3.bf16.msra.mxu1 %v762_v15  ;;  %655 = vmatprep.subr.bf16.mxu0 %v763_v16  ;;  %v28_v52 = vld [vmem:[%s1047_s0 + $0x68] sm:$0xff]  ;;  %v34_v53 = vld [vmem:[%s1047_s0 + $0x98] sm:$0xff]  ;;  %v27_v54 = vld [vmem:[%s1047_s0 + $0x60] sm:$0xff] }
  0x12   :  { %683 = vmatprep.subr.bf16.mxu1 %v764_v17  ;;  %523 = vmatprep.mubr.bf16.mxu1 %v42_v39  ;;  %v33_v55 = vld [vmem:[%s1047_s0 + $0x90] sm:$0xff]  ;;  %v46_v56 = vpack.c.bf16 %v34_v53, %v28_v52  ;;  %v30_v58 = vld [vmem:[%s1047_s0 + $0x78] sm:$0xff]  ;;  %v36_v59 = vld [vmem:[%s1047_s0 + $0xa8] sm:$0xff] }
  0x13   :  { %v45_v57 = vpack.c.bf16 %v33_v55, %v27_v54  ;;  %v787_v60 = vld [vmem:[%s1046_s1 + $0x160] sm:$0xff]   ;;  %v48_v61 = vpack.c.bf16 %v36_v59, %v30_v58  ;;  %v29_v62 = vld [vmem:[%s1047_s0 + $0x70] sm:$0xff]  ;;  %v789_v2 = vld [vmem:[%s1046_s1 + $0x168] sm:$0xff]  }
  0x14   :  { %656 = vmatpush3.bf16.msra.mxu0 %v765_v18  ;;  %v35_v63 = vld [vmem:[%s1047_s0 + $0xa0] sm:$0xff]  ;;  %v20_v3 = vld [vmem:[%s1047_s0 + $0x28] sm:$0xff]  ;;  %v26_v4 = vld [vmem:[%s1047_s0 + $0x58] sm:$0xff] }
  0x15   :  { %684 = vmatpush3.bf16.msra.mxu1 %v766_v19  ;;  %657 = vmatprep.subr.bf16.mxu0 %v767_v20  ;;  %v47_v0 = vpack.c.bf16 %v35_v63, %v29_v62  ;;  %v788_v1 = vld [vmem:[%s1046_s1 + $0x120] sm:$0xff]   ;;  %v790_v5 = vld [vmem:[%s1046_s1 + $0x128] sm:$0xff]   ;;  %v44_v6 = vpack.c.bf16 %v26_v4, %v20_v3  ;;  %v38_v8 = vld [vmem:[%s1047_s0 + $0xb8] sm:$0xff] }
  0x16   :  { %685 = vmatprep.subr.bf16.mxu1 %v768_v21  ;;  %v32_v7 = vld [vmem:[%s1047_s0 + $0x88] sm:$0xff]  ;;  %v791_v9 = vld [vmem:[%s1046_s1 + $0x170] sm:$0xff]   ;;  %v793_v12 = vld [vmem:[%s1046_s1 + $0x178] sm:$0xff]  }
  0x17   :  { %v50_v10 = vpack.c.bf16 %v38_v8, %v32_v7  ;;  %v792_v11 = vld [vmem:[%s1046_s1 + $0x130] sm:$0xff]   ;;  %v794_v13 = vld [vmem:[%s1046_s1 + $0x138] sm:$0xff]   ;;  %v19_v14 = vld [vmem:[%s1047_s0 + $0x20] sm:$0xff] }
  0x18   :  { %658 = vmatpush3.bf16.msra.mxu0 %v769_v22  ;;  %v25_v15 = vld [vmem:[%s1047_s0 + $0x50] sm:$0xff]  ;;  %v31_v16 = vld [vmem:[%s1047_s0 + $0x80] sm:$0xff] }
  0x19   :  { %686 = vmatpush3.bf16.msra.mxu1 %v770_v23  ;;  %659 = vmatprep.subr.bf16.mxu0 %v771_v24  ;;  %v37_v17 = vld [vmem:[%s1047_s0 + $0xb0] sm:$0xff]  ;;  %v43_v18 = vpack.c.bf16 %v25_v15, %v19_v14  ;;  %v598_v22 = vld [vmem:[%s1048_s2] ss:$0 sm:$0xff] }
  0x1a   :  { %687 = vmatprep.subr.bf16.mxu1 %v772_v25  ;;  %v49_v19 = vpack.c.bf16 %v37_v17, %v31_v16 }
  0x1c   :  { %660 = vmatpush3.bf16.msra.mxu0 %v773_v26 }
  0x1d   :  { %688 = vmatpush3.bf16.msra.mxu1 %v774_v27  ;;  %661 = vmatprep.subr.bf16.mxu0 %v775_v28 }
  0x1e   :  { %689 = vmatprep.subr.bf16.mxu1 %v776_v29 }
  0x20   :  { %662 = vmatpush3.bf16.msra.mxu0 %v777_v30 }
  0x21   :  { %690 = vmatpush3.bf16.msra.mxu1 %v778_v31  ;;  %703 = vmatprep.subr.bf16.mxu0 %v779_v44 }
  0x22   :  { %731 = vmatprep.subr.bf16.mxu1 %v779_v44 }
  0x23   :  { %475 = vmatmul.mubr.bf16.vlgmr.msra.gmra.mrb[0].mxu0 %v39_v40 }
  0x24   :  { %524 = vmatmul.mubr.bf16.vlgmr.msra.gmra.mrb[0].mxu1 %v41_v43  ;;  %704 = vmatpush3.bf16.msra.mxu0 %v780_v45 }
  0x25   :  { %739 = vmatpush3.bf16.msra.mxu1 %v780_v45  ;;  %705 = vmatprep.subr.bf16.mxu0 %v781_v46 }
  0x26   :  { %732 = vmatprep.subr.bf16.mxu1 %v781_v46  ;;  %482 = vmatprep.mubr.bf16.mxu0 %v46_v56 }
  0x27   :  { %531 = vmatprep.mubr.bf16.mxu1 %v48_v61 }
  0x28   :  { %706 = vmatpush3.bf16.msra.mxu0 %v782_v47 }
  0x29   :  { %740 = vmatpush3.bf16.msra.mxu1 %v782_v47  ;;  %707 = vmatprep.subr.bf16.mxu0 %v783_v48 }
  0x2a   :  { %733 = vmatprep.subr.bf16.mxu1 %v783_v48 }
  0x2b   :  { %483 = vmatmul.mubr.bf16.gmra.mrb[4].mxu0 %v45_v57 }
  0x2c   :  { %708 = vmatpush3.bf16.msra.mxu0 %v784_v49  ;;  %532 = vmatmul.mubr.bf16.gmra.mrb[4].mxu1 %v47_v0 }
  0x2d   :  { %741 = vmatpush3.bf16.msra.mxu1 %v784_v49  ;;  %709 = vmatprep.subr.bf16.mxu0 %v785_v50 }
  0x2e   :  { %734 = vmatprep.subr.bf16.mxu1 %v785_v50  ;;  %572 = vmatprep.mubr.bf16.mxu0 %v44_v6 }
  0x2f   :  { %580 = vmatprep.mubr.bf16.mxu1 %v50_v10 }
  0x30   :  { %710 = vmatpush3.bf16.msra.mxu0 %v786_v51 }
  0x31   :  { %742 = vmatpush3.bf16.msra.mxu1 %v786_v51  ;;  %711 = vmatprep.subr.bf16.mxu0 %v787_v60 }
  0x32   :  { %735 = vmatprep.subr.bf16.mxu1 %v787_v60 }
  0x34   :  { %712 = vmatpush3.bf16.msra.mxu0 %v788_v1 }
  0x35   :  { %743 = vmatpush3.bf16.msra.mxu1 %v788_v1  ;;  %713 = vmatprep.subr.bf16.mxu0 %v789_v2 }
  0x36   :  { %736 = vmatprep.subr.bf16.mxu1 %v789_v2 }
  0x38   :  { %714 = vmatpush3.bf16.msra.mxu0 %v790_v5 }
  0x39   :  { %744 = vmatpush3.bf16.msra.mxu1 %v790_v5  ;;  %715 = vmatprep.subr.bf16.mxu0 %v791_v9 }
  0x3a   :  { %737 = vmatprep.subr.bf16.mxu1 %v791_v9 }
  0x3c   :  { %716 = vmatpush3.bf16.msra.mxu0 %v792_v11 }
  0x3d   :  { %745 = vmatpush3.bf16.msra.mxu1 %v792_v11  ;;  %717 = vmatprep.subr.bf16.mxu0 %v793_v12 }
  0x3e   :  { %738 = vmatprep.subr.bf16.mxu1 %v793_v12 }
  0x40   :  { %718 = vmatpush3.bf16.msra.mxu0 %v794_v13 }
  0x41   :  { %746 = vmatpush3.bf16.msra.mxu1 %v794_v13 }
  0x43   :  { %573 = vmatmul.mubr.bf16.vlgmr.msra.gmra.mrb[8].mxu0 %v43_v18 }
  0x44   :  { %581 = vmatmul.mubr.bf16.vlgmr.msra.gmra.mrb[8].mxu1 %v49_v19 }
  0xf6   :  { %v663_v20 = vpop.f32.mrb[0].mxu0 }
  0xf7   :  { %v691_v21 = vpop.f32.mrb[0].mxu1  ;;  %v664_v23 = vpop.f32.mrb[1].mxu0 }
  0xf8   :  { %v665_v24 = vadd.f32 %v664_v23, %v663_v20  ;;  %v692_v25 = vpop.f32.mrb[1].mxu1  ;;  %v666_v26 = vpop.f32.mrb[2].mxu0 }
  0xf9   :  { %v693_v27 = vadd.f32 %v692_v25, %v691_v21  ;;  %v694_v28 = vpop.f32.mrb[2].mxu1  ;;  %v667_v29 = vpop.f32.mrb[3].mxu0 }
  0xfa   :  { %v477_v30 = vadd.f32 %v665_v24, %v598_v22  ;;  %v668_v31 = vadd.f32 %v667_v29, %v666_v26  ;;  %v695_v32 = vpop.f32.mrb[3].mxu1 }
  0xfb   :  { %v696_v33 = vadd.f32 %v695_v32, %v694_v28 }
  0xfc   :  { %v526_v34 = vadd.f32 %v693_v27, %v477_v30  ;;  %v480_v35 = vadd.f32 %v668_v31, %v598_v22 }
  0xfe   :  { %v529_v36 = vadd.f32 %v696_v33, %v480_v35  ;;  %v669_v37 = vpop.f32.mrb[4].mxu0 }
  0xff   :  { %v670_v38 = vpop.f32.mrb[5].mxu0  ;;  %v697_v41 = vpop.f32.mrb[4].mxu1 }
 0x100   :  { %v671_v39 = vadd.f32 %v670_v38, %v669_v37  ;;  %v672_v40 = vpop.f32.mrb[6].mxu0  ;;  %v698_v45 = vpop.f32.mrb[5].mxu1 }
 0x101   :  { %v673_v42 = vpop.f32.mrb[7].mxu0  ;;  %v699_v46 = vadd.f32 %v698_v45, %v697_v41  ;;  %v700_v47 = vpop.f32.mrb[6].mxu1 }
 0x102   :  { %v485_v43 = vadd.f32 %v671_v39, %v598_v22  ;;  %v674_v44 = vadd.f32 %v673_v42, %v672_v40  ;;  %v701_v49 = vpop.f32.mrb[7].mxu1 }
 0x103   :  { %v702_v51 = vadd.f32 %v701_v49, %v700_v47 }
 0x104   :  { %v488_v48 = vadd.f32 %v674_v44, %v598_v22  ;;  %v534_v50 = vadd.f32 %v699_v46, %v485_v43 }
 0x106   :  { %v537_v52 = vadd.f32 %v702_v51, %v488_v48 }
 0x116   :  { %v719_v53 = vpop.f32.mrb[8].mxu0 }
 0x117   :  { %v725_v54 = vpop.f32.mrb[8].mxu1  ;;  %v720_v55 = vpop.f32.mrb[9].mxu0 }
 0x118   :  { %v721_v56 = vadd.f32 %v720_v55, %v719_v53  ;;  %v726_v57 = vpop.f32.mrb[9].mxu1  ;;  %v722_v58 = vpop.f32.mrb[10].mxu0 }
 0x119   :  { %v727_v59 = vadd.f32 %v726_v57, %v725_v54  ;;  %v728_v60 = vpop.f32.mrb[10].mxu1  ;;  %v723_v61 = vpop.f32.mrb[11].mxu0 }
 0x11a   :  { %v575_v62 = vadd.f32 %v721_v56, %v526_v34  ;;  %v724_v63 = vadd.f32 %v723_v61, %v722_v58  ;;  %v729_v0 = vpop.f32.mrb[11].mxu1 }
 0x11b   :  { %v583_v1 = vadd.f32 %v727_v59, %v534_v50  ;;  %v730_v2 = vadd.f32 %v729_v0, %v728_v60 }
 0x11c   :  { %590 = vst.msk [vmem:[%s1049_s3] sm:$0xff] %vm589_vm0, %v575_v62  ;;  %v578_v3 = vadd.f32 %v724_v63, %v529_v36 }
 0x11d   :  { %592 = vst.msk [vmem:[%s1049_s3 + $0x10] sm:$0xff] %vm589_vm0, %v583_v1  ;;  %v586_v4 = vadd.f32 %v730_v2, %v537_v52 }
 0x11e   :  { %591 = vst.msk [vmem:[%s1049_s3 + $0x8] sm:$0xff] %vm589_vm0, %v578_v3 }
 0x11f   :  { %593 = vst.msk [vmem:[%s1049_s3 + $0x18] sm:$0xff] %vm589_vm0, %v586_v4 }

// kernel: _lambda_.7
= control target key start
LH: loop header
LB: loop body
LE: loop exit
PB: predicated region body
PF: predicated region fallthrough
CT: control target
= control target key end

     0   :  { %vm72_vm0 = vcmask 261120   ;;  %s1374_s15 = smov 112   ;;  %s1375_s16 = smov 104   ;;  %v1376_v18 = vmov 0.0   ;;  %vm1377_vm1 = vmmov 0   ;;  %vm175_vm2 = vcmask 1043456   ;;  %s1661_s2 = inlined_call_operand.vmem [shape: bf16[32,96], index: 2, kind: input, shape index: {}]   ;;  %s1662_s0 = inlined_call_operand.vmem [shape: f32[32,32], index: 0, kind: input, shape index: {}]   ;;  %s1663_s1 = inlined_call_operand.vmem [shape: f32[16,32], index: 1, kind: input, shape index: {}]   ;;  %s1664_s3 = inlined_call_operand.vmem [shape: bf16[32,32], index: 3, kind: input, shape index: {}]   ;;  %s1665_s6 = inlined_call_operand.vmem [shape: bf16[32,128], index: 6, kind: input, shape index: {}]   ;;  %s1666_s8 = inlined_call_operand.vmem [shape: bf16[128,32], index: 8, kind: input, shape index: {}]   ;;  %s1667_s4 = inlined_call_operand.vmem [shape: f32[1,32], index: 4, kind: input, shape index: {}]   ;;  %s1668_s5 = inlined_call_operand.vmem [shape: f32[1,32], index: 5, kind: input, shape index: {}]   ;;  %s1669_s7 = inlined_call_operand.vmem [shape: f32[1,128], index: 7, kind: input, shape index: {}]   ;;  %s1670_s9 = inlined_call_operand.vmem [shape: f32[1,32], index: 9, kind: input, shape index: {}]   ;;  %s1671_s10 = inlined_call_operand.vmem [shape: f32[1,32], index: 10, kind: input, shape index: {}]   ;;  %s1672_s11 = inlined_call_operand.vmem [shape: f32[1,32], index: 11, kind: input, shape index: {}]   ;;  %s1673_s12 = inlined_call_operand.vmem [shape: f32[32,32], index: 12, kind: output, shape index: {}]  }
   0x1   :  { %v1310_v0 = vld [vmem:[%s1661_s2] sm:$0xff]   ;;  %v1311_v1 = vld [vmem:[%s1661_s2 + $0x8] sm:$0xff]   ;;  %s1372_s2 = smov 96   ;;  %1210 = vmatprep.subr.bf16.mxu0 %v1376_v18  ;;  %1212 = vmatprep.mubr.msk.bf16.mxu0 %vm1377_vm1, %v1376_v18  ;;  %vm171_vm3 = vcmask 64512   ;;  %vm222_vm4 = vcmask 130048   ;;  %s1378_s17 = smov 64  }
   0x2   :  { %1190 = vmatprep.subr.bf16.mxu1 %v1310_v0  ;;  %v1459_v2 = vld [vmem:[%s1662_s0] sm:$0xff]  ;;  %v1464_v3 = vld [vmem:[%s1662_s0 + $0x8] sm:$0xff]  ;;  %s1379_s18 = smov 56   ;;  %s1380_s19 = smov 48   ;;  %vm689_vm5 = vcmask 195584  }
   0x3   :  { %v46_v4 = vld [vmem:[%s1663_s1] sm:$0xff]  ;;  %1191 = vmatpush3.bf16.msra.mxu1 %v1310_v0  ;;  %v47_v5 = vld [vmem:[%s1663_s1 + $0x8] sm:$0xff]  ;;  %v59_v9 = vpack.c.bf16 %v1464_v3, %v1459_v2  ;;  %s1373_s1 = smov 120   ;;  %s1381_s20 = smov 40  }
   0x4   :  { %v48_v6 = vadd.f32 %v46_v4, %v1459_v2  ;;  %1192 = vmatprep.subr.bf16.mxu1 %v1311_v1  ;;  %v49_v7 = vadd.f32 %v47_v5, %v1464_v3  ;;  %s1382_s23 = smov 8   ;;  %s1383_s26 = smov 16  }
   0x5   :  { %s1384_s27 = smov 24  }
   0x6   :  { %v58_v8 = vpack.c.bf16 %v49_v7, %v48_v6 }
   0x7   :  { %1193 = vmatpush3.bf16.msra.mxu1 %v1311_v1 }
   0x8   :  { %1194 = vmatprep.mubr.msk.bf16.mxu1 %vm72_vm0, %v58_v8  ;;  %1198 = vmatprep.subr.bf16.mxu1 %v1376_v18 }
   0xa   :  { %1195 = vmatmul.mubr.msk.bf16.vlgmr.msra.gmra.mrb[0].mxu1 %vm72_vm0, %v59_v9 }
   0xb   :  { %1200 = vmatprep.mubr.msk.bf16.mxu1 %vm1377_vm1, %v1376_v18 }
  0xdd   :  { %v1196_v10 = vpop.f32.mrb[0].mxu1 }
  0xde   :  { %v113_v11 = vpop.f32.mrb[1].mxu1 }
  0xdf   :  { %132 = vrot.lane.b32.xlu0 %v113_v11, %s1372_s2  ;;  %v1197_v12 = vpop.f32.mrb[2].mxu1 }
  0xe0   :  { %v1478_v13 = vpack.c.bf16 %v1197_v12, %v1196_v10  ;;  %v116_v14 = vpop.f32.mrb[3].mxu1 }
  0xe1   :  { %v128_v15 = vpack.c.bf16 %v116_v14, %v113_v11 }
  0xe3   :  { %134 = vrot.lane.b32.xlu0 %v116_v14, %s1372_s2  ;;  %296 = vrot.lane.b32.xlu1 %v128_v15, %s1373_s1 }
  0xe7   :  { %418 = vrot.lane.b32.xlu1 %v128_v15, %s1374_s15 }
  0xeb   :  { %540 = vrot.lane.b32.xlu1 %v128_v15, %s1375_s16 }
 0x151   :  { %v133_v16 = vpop.permute.xlu0 %132 }
 0x152   :  { %138 = vxpose.xlu0.b32.start [1/2] (short) (narrow) %v133_v16, 32 }
 0x155   :  { %v135_v17 = vpop.permute.xlu0 %134  ;;  %v297_v27 = vpop.permute.xlu1 %296 }
 0x156   :  { %139 = vxpose.xlu0.b32.end [2/2] (short) (narrow) %v135_v17, 32 }
 0x159   :  { %v419_v32 = vpop.permute.xlu1 %418 }
 0x15d   :  { %v541_v33 = vpop.permute.xlu1 %540 }
 0x1d2   :  { %v154_v19 = vpop.trf.xlu0 }
 0x1d3   :  { %v170_v20 = vpack.c.bf16 %v154_v19, %v154_v19 }
 0x1d5   :  { %v177_v21 = vsel %vm175_vm2, %v170_v20, 0 }
 0x1d6   :  { %1199 = vmatpush3.bf16.msra.mxu1 %v177_v21  ;;  %v155_v22 = vpop.trf.xlu0 }
 0x1d7   :  { %v294_v23 = vpack.c.bf16 %v155_v22, %v155_v22  ;;  %1204 = vmatprep.subr.bf16.mxu1 %v1376_v18 }
 0x1d9   :  { %1201 = vmatmul.mubr.msk.bf16.vlgmr.msra.gmra.mrb[4].mxu1 %vm171_vm3, %v128_v15  ;;  %v302_v24 = vsel %vm175_vm2, %v294_v23, 0 }
 0x1da   :  { %1211 = vmatpush3.bf16.msra.mxu0 %v302_v24  ;;  %v156_v25 = vpop.trf.xlu0  ;;  %1206 = vmatprep.mubr.msk.bf16.mxu1 %vm1377_vm1, %v1376_v18 }
 0x1db   :  { %v417_v26 = vpack.c.bf16 %v156_v25, %v156_v25  ;;  %1222 = vmatprep.subr.bf16.mxu0 %v1376_v18 }
 0x1dd   :  { %1213 = vmatmul.mubr.msk.bf16.vlgmr.msra.gmra.mrb[0].mxu0 %vm171_vm3, %v297_v27  ;;  %v424_v28 = vsel %vm175_vm2, %v417_v26, 0 }
 0x1de   :  { %1223 = vmatpush3.bf16.msra.mxu0 %v424_v28  ;;  %1224 = vmatprep.mubr.msk.bf16.mxu0 %vm1377_vm1, %v1376_v18  ;;  %v157_v29 = vpop.trf.xlu0 }
 0x1df   :  { %v539_v30 = vpack.c.bf16 %v157_v29, %v157_v29  ;;  %1234 = vmatprep.subr.bf16.mxu0 %v1376_v18 }
 0x1e1   :  { %v546_v31 = vsel %vm175_vm2, %v539_v30, 0 }
 0x1e5   :  { %1225 = vmatmul.mubr.msk.bf16.vlgmr.msra.gmra.mrb[4].mxu0 %vm171_vm3, %v419_v32 }
 0x1e6   :  { %1235 = vmatpush3.bf16.msra.mxu0 %v546_v31  ;;  %1236 = vmatprep.mubr.msk.bf16.mxu0 %vm1377_vm1, %v1376_v18 }
 0x1e7   :  { %1246 = vmatprep.subr.bf16.mxu0 %v1376_v18 }
 0x1ed   :  { %1237 = vmatmul.mubr.msk.bf16.vlgmr.msra.gmra.mrb[8].mxu0 %vm171_vm3, %v541_v33 }
 0x1ee   :  { %1250 = vmatprep.mubr.msk.bf16.mxu0 %vm1377_vm1, %v1376_v18 }
 0x2ac   :  { %v213_v34 = vpop.f32.mrb[4].mxu1 }
 0x2ad   :  { %v220_v35 = vmul.f32 0.35355338, %v213_v34  ;;  %v1202_v36 = vpop.f32.mrb[5].mxu1 }
 0x2ae   :  { %v216_v37 = vpop.f32.mrb[6].mxu1 }
 0x2af   :  { %v221_v38 = vmul.f32 0.35355338, %v216_v37  ;;  %v1203_v39 = vpop.f32.mrb[7].mxu1  ;;  %v223_v40 = vsel %vm222_vm4, %v220_v35, -inf }
 0x2b0   :  { %v338_v41 = vpop.f32.mrb[0].mxu0  ;;  %224 = vmax.xlane.f32.xlu1 %v223_v40 }
 0x2b1   :  { %v345_v42 = vmul.f32 0.35355338, %v338_v41  ;;  %v1214_v43 = vpop.f32.mrb[1].mxu0  ;;  %v226_v44 = vsel %vm222_vm4, %v221_v38, -inf }
 0x2b2   :  { %v341_v45 = vpop.f32.mrb[2].mxu0  ;;  %227 = vmax.xlane.f32.xlu0 %v226_v44 }
 0x2b3   :  { %v346_v46 = vmul.f32 0.35355338, %v341_v45  ;;  %v1215_v47 = vpop.f32.mrb[3].mxu0  ;;  %v347_v48 = vsel %vm222_vm4, %v345_v42, -inf }
 0x2b4   :  { %348 = vmax.xlane.f32.xlu1 %v347_v48 }
 0x2b5   :  { %v350_v49 = vsel %vm222_vm4, %v346_v46, -inf }
 0x2b8   :  { %v460_v50 = vpop.f32.mrb[4].mxu0  ;;  %351 = vmax.xlane.f32.xlu1 %v350_v49 }
 0x2b9   :  { %v467_v51 = vmul.f32 0.35355338, %v460_v50  ;;  %v1226_v52 = vpop.f32.mrb[5].mxu0 }
 0x2ba   :  { %v463_v53 = vpop.f32.mrb[6].mxu0 }
 0x2bb   :  { %v468_v54 = vmul.f32 0.35355338, %v463_v53  ;;  %v1227_v55 = vpop.f32.mrb[7].mxu0  ;;  %v469_v56 = vsel %vm222_vm4, %v467_v51, -inf }
 0x2bc   :  { %470 = vmax.xlane.f32.xlu1 %v469_v56 }
 0x2bd   :  { %v472_v57 = vsel %vm222_vm4, %v468_v54, -inf }
 0x2c0   :  { %v582_v58 = vpop.f32.mrb[8].mxu0  ;;  %473 = vmax.xlane.f32.xlu1 %v472_v57 }
 0x2c1   :  { %v589_v59 = vmul.f32 0.35355338, %v582_v58  ;;  %v1238_v60 = vpop.f32.mrb[9].mxu0 }
 0x2c2   :  { %v585_v61 = vpop.f32.mrb[10].mxu0 }
 0x2c3   :  { %v590_v62 = vmul.f32 0.35355338, %v585_v61  ;;  %v1239_v63 = vpop.f32.mrb[11].mxu0  ;;  %v591_v0 = vsel %vm222_vm4, %v589_v59, -inf }
 0x2c4   :  { %592 = vmax.xlane.f32.xlu1 %v591_v0 }
 0x2c5   :  { %v594_v1 = vsel %vm222_vm4, %v590_v62, -inf }
 0x2c8   :  { %595 = vmax.xlane.f32.xlu1 %v594_v1  ;;  %247 = vrot.lane.b32.xlu0 %v1478_v13, %s1378_s17 }
 0x2d9   :  { %370 = vrot.lane.b32.xlu1 %v1478_v13, %s1379_s18 }
 0x33d   :  { %v225_v4 = vpop.xlane.xlu1 %224 }
 0x33e   :  { %v229_v5 = vsub.f32 %v220_v35, %v225_v4 }
 0x33f   :  { %v228_v6 = vpop.xlane.xlu0 %227 }
 0x340   :  { %v231_v7 = vmul.f32 1.442695, %v229_v5  ;;  %v230_v8 = vsub.f32 %v221_v38, %v228_v6 }
 0x341   :  { %v349_v9 = vpop.xlane.xlu1 %348 }
 0x342   :  { %1324 = vpow2.f32 %v231_v7  ;;  %v233_v10 = vmul.f32 1.442695, %v230_v8  ;;  %v353_v11 = vsub.f32 %v345_v42, %v349_v9 }
 0x343   :  { %v248_v12 = vpop.permute.xlu0 %247 }
 0x344   :  { %1326 = vpow2.f32 %v233_v10  ;;  %v355_v14 = vmul.f32 1.442695, %v353_v11  ;;  %1205 = vmatpush3.bf16.msra.mxu1 %v248_v12 }
 0x345   :  { %v352_v15 = vpop.xlane.xlu1 %351  ;;  %1216 = vmatprep.subr.bf16.mxu1 %v1376_v18 }
 0x346   :  { %v354_v16 = vsub.f32 %v346_v46, %v352_v15  ;;  %1328 = vpow2.f32 %v355_v14 }
 0x348   :  { %v357_v17 = vmul.f32 1.442695, %v354_v16 }
 0x349   :  { %v471_v19 = vpop.xlane.xlu1 %470 }
 0x34a   :  { %v475_v20 = vsub.f32 %v467_v51, %v471_v19  ;;  %1330 = vpow2.f32 %v357_v17 }
 0x34c   :  { %v1325_v21 = vpop.eup %1324  ;;  %v477_v22 = vmul.f32 1.442695, %v475_v20 }
 0x34d   :  { %v474_v23 = vpop.xlane.xlu1 %473  ;;  %v235_v24 = vsel %vm222_vm4, %v1325_v21, 0.0 }
 0x34e   :  { %v1327_v25 = vpop.eup %1326  ;;  %v476_v26 = vsub.f32 %v468_v54, %v474_v23  ;;  %236 = vadd.xlane.f32.xlu1 %v235_v24  ;;  %1332 = vpow2.f32 %v477_v22 }
 0x34f   :  { %v238_v29 = vsel %vm222_vm4, %v1327_v25, 0.0 }
 0x350   :  { %v479_v27 = vmul.f32 1.442695, %v476_v26  ;;  %v1329_v30 = vpop.eup %1328  ;;  %v1312_v26 = vld [vmem:[%s1664_s3] sm:$0xff]  }
 0x351   :  { %v593_v28 = vpop.xlane.xlu1 %592  ;;  %v359_v34 = vsel %vm222_vm4, %v1329_v30, 0.0  ;;  %1247 = vmatpush3.bf16.msra.mxu0 %v1312_v26  ;;  %v1316_v26 = vld [vmem:[%s1666_s8] sm:$0xff]  }
 0x352   :  { %v597_v31 = vsub.f32 %v589_v59, %v593_v28  ;;  %239 = vadd.xlane.f32.xlu1 %v238_v29  ;;  %1334 = vpow2.f32 %v479_v27  ;;  %1248 = vmatprep.subr.bf16.mxu0 %v1376_v18  ;;  %v1313_v29 = vld [vmem:[%s1664_s3 + $0x8] sm:$0xff]  }
 0x354   :  { %v599_v32 = vmul.f32 1.442695, %v597_v31  ;;  %v1331_v35 = vpop.eup %1330 }
 0x355   :  { %v596_v33 = vpop.xlane.xlu1 %595  ;;  %v362_v38 = vsel %vm222_vm4, %v1331_v35, 0.0  ;;  %1249 = vmatpush3.bf16.msra.mxu0 %v1313_v29  ;;  %v1319_v29 = vld [vmem:[%s1666_s8 + $0x18] sm:$0xff]  }
 0x356   :  { %1336 = vpow2.f32 %v599_v32  ;;  %v598_v36 = vsub.f32 %v590_v62, %v596_v33  ;;  %360 = vadd.xlane.f32.xlu1 %v359_v34  ;;  %1262 = vmatprep.subr.bf16.mxu0 %v1316_v26 }
 0x358   :  { %v601_v37 = vmul.f32 1.442695, %v598_v36  ;;  %v1333_v39 = vpop.eup %1332 }
 0x359   :  { %v481_v40 = vsel %vm222_vm4, %v1333_v39, 0.0  ;;  %v371_v47 = vpop.permute.xlu1 %370 }
 0x35a   :  { %1338 = vpow2.f32 %v601_v37  ;;  %363 = vadd.xlane.f32.xlu1 %v362_v38 }
 0x35c   :  { %v1335_v41 = vpop.eup %1334 }
 0x35d   :  { %v484_v44 = vsel %vm222_vm4, %v1335_v41, 0.0 }
 0x35e   :  { %482 = vadd.xlane.f32.xlu1 %v481_v40 }
 0x360   :  { %v1337_v42 = vpop.eup %1336 }
 0x361   :  { %v603_v43 = vsel %vm222_vm4, %v1337_v42, 0.0 }
 0x362   :  { %604 = vadd.xlane.f32.xlu0 %v603_v43  ;;  %485 = vadd.xlane.f32.xlu1 %v484_v44 }
 0x364   :  { %v1339_v45 = vpop.eup %1338 }
 0x365   :  { %v606_v46 = vsel %vm222_vm4, %v1339_v45, 0.0 }
 0x366   :  { %607 = vadd.xlane.f32.xlu1 %v606_v46 }
 0x377   :  { %492 = vrot.lane.b32.xlu1 %v1478_v13, %s1380_s19 }
 0x378   :  { %614 = vrot.lane.b32.xlu0 %v1478_v13, %s1381_s20 }
 0x3db   :  { %v237_v48 = vpop.xlane.xlu1 %236 }
 0x3dc   :  { %1340 = vrcp.f32 %v237_v48 }
 0x3df   :  { %v240_v49 = vpop.xlane.xlu1 %239 }
 0x3e0   :  { %1342 = vrcp.f32 %v240_v49 }
 0x3e3   :  { %v361_v50 = vpop.xlane.xlu1 %360 }
 0x3e4   :  { %1344 = vrcp.f32 %v361_v50 }
 0x3e6   :  { %v1341_v52 = vpop.eup %1340 }
 0x3e7   :  { %v364_v51 = vpop.xlane.xlu1 %363  ;;  %v243_v54 = vmul.f32 %v1341_v52, %v1325_v21 }
 0x3e8   :  { %1346 = vrcp.f32 %v364_v51 }
 0x3ea   :  { %v1343_v53 = vpop.eup %1342 }
 0x3eb   :  { %v244_v55 = vmul.f32 %v1343_v53, %v1327_v25  ;;  %v483_v56 = vpop.xlane.xlu1 %482  ;;  %v44_v53 = vld [vmem:[%s1662_s0 + $0x10] sm:$0xff] }
 0x3ec   :  { %1348 = vrcp.f32 %v483_v56 }
 0x3ed   :  { %v245_v57 = vpack.c.bf16 %v244_v55, %v243_v54 }
 0x3ee   :  { %v1345_v13 = vpop.eup %1344 }
 0x3ef   :  { %v486_v58 = vpop.xlane.xlu1 %485  ;;  %1207 = vmatmul.mubr.msk.bf16.vlgmr.msra.gmra.mrb[8].mxu1 %vm222_vm4, %v245_v57  ;;  %v367_v60 = vmul.f32 %v1345_v13, %v1329_v30  ;;  %v605_v62 = vpop.xlane.xlu0 %604 }
 0x3f0   :  { %1350 = vrcp.f32 %v486_v58  ;;  %1217 = vmatpush3.bf16.msra.mxu1 %v371_v47  ;;  %1218 = vmatprep.mubr.msk.bf16.mxu1 %vm1377_vm1, %v1376_v18 }
 0x3f1   :  { %1228 = vmatprep.subr.bf16.mxu1 %v1376_v18 }
 0x3f2   :  { %v1347_v59 = vpop.eup %1346 }
 0x3f3   :  { %v368_v61 = vmul.f32 %v1347_v59, %v1331_v35  ;;  %v608_v63 = vpop.xlane.xlu1 %607  ;;  %v615_v10 = vpop.permute.xlu0 %614 }
 0x3f4   :  { %1352 = vrcp.f32 %v608_v63 }
 0x3f5   :  { %v369_v0 = vpack.c.bf16 %v368_v61, %v367_v60  ;;  %1354 = vrcp.f32 %v605_v62  ;;  %v45_v61 = vld [vmem:[%s1662_s0 + $0x18] sm:$0xff] }
 0x3f6   :  { %v1349_v4 = vpop.eup %1348 }
 0x3f7   :  { %v493_v1 = vpop.permute.xlu1 %492  ;;  %1219 = vmatmul.mubr.msk.bf16.vlgmr.msra.gmra.mrb[12].mxu1 %vm222_vm4, %v369_v0  ;;  %v489_v6 = vmul.f32 %v1349_v4, %v1333_v39 }
 0x3f8   :  { %1229 = vmatpush3.bf16.msra.mxu1 %v493_v1  ;;  %1230 = vmatprep.mubr.msk.bf16.mxu1 %vm1377_vm1, %v1376_v18 }
 0x3f9   :  { %1240 = vmatprep.subr.bf16.mxu1 %v1376_v18 }
 0x3fa   :  { %v1351_v5 = vpop.eup %1350 }
 0x3fb   :  { %v490_v7 = vmul.f32 %v1351_v5, %v1335_v41 }
 0x3fd   :  { %v491_v8 = vpack.c.bf16 %v490_v7, %v489_v6 }
 0x3fe   :  { %v1353_v9 = vpop.eup %1352 }
 0x3ff   :  { %1231 = vmatmul.mubr.msk.bf16.vlgmr.msra.gmra.mrb[16].mxu1 %vm222_vm4, %v491_v8  ;;  %v1355_v11 = vpop.eup %1354  ;;  %v612_v12 = vmul.f32 %v1353_v9, %v1339_v45 }
 0x400   :  { %1241 = vmatpush3.bf16.msra.mxu1 %v615_v10  ;;  %1242 = vmatprep.mubr.msk.bf16.mxu1 %vm1377_vm1, %v1376_v18  ;;  %v611_v14 = vmul.f32 %v1355_v11, %v1337_v42 }
 0x402   :  { %v613_v15 = vpack.c.bf16 %v612_v12, %v611_v14 }
 0x407   :  { %1243 = vmatmul.mubr.msk.bf16.vlgmr.msra.gmra.mrb[20].mxu1 %vm222_vm4, %v613_v15 }
 0x4c2   :  { %v287_v16 = vpop.f32.mrb[8].mxu1 }
 0x4c3   :  { %v1208_v17 = vpop.f32.mrb[9].mxu1 }
 0x4c4   :  { %v290_v19 = vpop.f32.mrb[10].mxu1 }
 0x4c5   :  { %v1209_v20 = vpop.f32.mrb[11].mxu1 }
 0x4ca   :  { %v410_v21 = vpop.f32.mrb[12].mxu1 }
 0x4cb   :  { %v1220_v22 = vpop.f32.mrb[13].mxu1 }
 0x4cc   :  { %v413_v23 = vpop.f32.mrb[14].mxu1 }
 0x4cd   :  { %v1295_v24 = vpack.i.bf16 %v413_v23, %v410_v21  ;;  %v1221_v25 = vpop.f32.mrb[15].mxu1 }
 0x4ce   :  { %v1315_v25 = vld [vmem:[%s1665_s6 + $0x8] sm:$0xff]  }
 0x4cf   :  { %1296 = vrot.lane.b32.xlu1 %v1295_v24, %s1382_s23  ;;  %v1314_v24 = vld [vmem:[%s1665_s6] sm:$0xff]  }
 0x4d0   :  { %1254 = vmatprep.subr.bf16.mxu1 %v1314_v24 }
 0x4d1   :  { %1255 = vmatpush3.bf16.msra.mxu1 %v1314_v24 }
 0x4d2   :  { %v532_v27 = vpop.f32.mrb[16].mxu1  ;;  %1256 = vmatprep.subr.bf16.mxu1 %v1315_v25 }
 0x4d3   :  { %v1232_v28 = vpop.f32.mrb[17].mxu1 }
 0x4d4   :  { %v535_v30 = vpop.f32.mrb[18].mxu1  ;;  %v1318_v28 = vld [vmem:[%s1666_s8 + $0x10] sm:$0xff]  }
 0x4d5   :  { %v1300_v31 = vpack.i.bf16 %v535_v30, %v532_v27  ;;  %v1233_v32 = vpop.f32.mrb[19].mxu1  ;;  %1257 = vmatpush3.bf16.msra.mxu1 %v1315_v25  ;;  %v1317_v27 = vld [vmem:[%s1666_s8 + $0x8] sm:$0xff]   ;;  %v1320_v30 = vld [vmem:[%s1666_s8 + $0x20] sm:$0xff]  }
 0x4d7   :  { %1301 = vrot.lane.b32.xlu0 %v1300_v31, %s1383_s26  ;;  %v1321_v31 = vld [vmem:[%s1666_s8 + $0x28] sm:$0xff]  }
 0x4da   :  { %v654_v33 = vpop.f32.mrb[20].mxu1 }
 0x4db   :  { %v1244_v34 = vpop.f32.mrb[21].mxu1 }
 0x4dc   :  { %v657_v35 = vpop.f32.mrb[22].mxu1 }
 0x4dd   :  { %v1305_v36 = vpack.i.bf16 %v657_v35, %v654_v33  ;;  %v1245_v37 = vpop.f32.mrb[23].mxu1 }
 0x4df   :  { %1306 = vrot.lane.b32.xlu1 %v1305_v36, %s1384_s27 }
 0x541   :  { %v1297_v18 = vpop.permute.xlu1 %1296 }
 0x542   :  { %v1299_v39 = vunpack.i.h.bf16 %v1297_v18  ;;  %v1298_v40 = vunpack.i.l.bf16 %v1297_v18 }
 0x544   :  { %v686_v44 = vsel %vm171_vm3, %v290_v19, %v1299_v39  ;;  %v685_v45 = vsel %vm171_vm3, %v287_v16, %v1298_v40 }
 0x549   :  { %v1302_v38 = vpop.permute.xlu0 %1301 }
 0x54a   :  { %v1304_v41 = vunpack.i.h.bf16 %v1302_v38  ;;  %v1303_v42 = vunpack.i.l.bf16 %v1302_v38 }
 0x54c   :  { %v688_v48 = vsel %vm222_vm4, %v686_v44, %v1304_v41  ;;  %v687_v49 = vsel %vm222_vm4, %v685_v45, %v1303_v42  ;;  %v1135_v44 = vld [vmem:[%s1667_s4] ss:$0 sm:$0xff] }
 0x551   :  { %v1307_v43 = vpop.permute.xlu1 %1306 }
 0x552   :  { %v1309_v46 = vunpack.i.h.bf16 %v1307_v43  ;;  %v1308_v47 = vunpack.i.l.bf16 %v1307_v43 }
 0x554   :  { %v691_v50 = vsel %vm689_vm5, %v688_v48, %v1309_v46  ;;  %v690_v51 = vsel %vm689_vm5, %v687_v49, %v1308_v47 }
 0x555   :  { %v692_v52 = vpack.c.bf16 %v691_v50, %v690_v51  ;;  %v1136_v50 = vld [vmem:[%s1668_s5] ss:$0 sm:$0xff] }
 0x557   :  { %1251 = vmatmul.mubr.msk.bf16.vlgmr.msra.gmra.mrb[12].mxu0 %vm72_vm0, %v692_v52 }
 0x558   :  { %1263 = vmatpush3.bf16.msra.mxu0 %v1316_v26 }
 0x559   :  { %1264 = vmatprep.subr.bf16.mxu0 %v1317_v27 }
 0x55c   :  { %1265 = vmatpush3.bf16.msra.mxu0 %v1317_v27 }
 0x55d   :  { %1266 = vmatprep.subr.bf16.mxu0 %v1318_v28 }
 0x560   :  { %1267 = vmatpush3.bf16.msra.mxu0 %v1318_v28 }
 0x561   :  { %1268 = vmatprep.subr.bf16.mxu0 %v1319_v29 }
 0x564   :  { %1269 = vmatpush3.bf16.msra.mxu0 %v1319_v29 }
 0x565   :  { %1270 = vmatprep.subr.bf16.mxu0 %v1320_v30 }
 0x568   :  { %1271 = vmatpush3.bf16.msra.mxu0 %v1320_v30 }
 0x569   :  { %1272 = vmatprep.subr.bf16.mxu0 %v1321_v31 }
 0x56c   :  { %1273 = vmatpush3.bf16.msra.mxu0 %v1321_v31 }
 0x62a   :  { %v742_v54 = vpop.f32.mrb[12].mxu0 }
 0x62b   :  { %v749_v55 = vadd.f32 %v742_v54, %v1459_v2  ;;  %v1252_v56 = vpop.f32.mrb[13].mxu0  ;;  %v751_v58 = vadd.f32 %v742_v54, %v44_v53 }
 0x62c   :  { %v745_v57 = vpop.f32.mrb[14].mxu0 }
 0x62d   :  { %v750_v13 = vadd.f32 %v745_v57, %v1464_v3  ;;  %v1253_v59 = vpop.f32.mrb[15].mxu0  ;;  %v755_v60 = vsel %vm72_vm0, %v749_v55, 0.0  ;;  %v752_v63 = vadd.f32 %v745_v57, %v45_v61  ;;  %v761_v0 = vsel %vm72_vm0, %v751_v58, 0.0 }
 0x62e   :  { %756 = vadd.xlane.f32.xlu0 %v755_v60 }
 0x62f   :  { %v758_v62 = vsel %vm72_vm0, %v750_v13, 0.0  ;;  %v764_v2 = vsel %vm72_vm0, %v752_v63, 0.0 }
 0x630   :  { %759 = vadd.xlane.f32.xlu1 %v758_v62  ;;  %v1322_v62 = vld [vmem:[%s1666_s8 + $0x30] sm:$0xff]  }
 0x631   :  { %1274 = vmatprep.subr.bf16.mxu0 %v1322_v62 }
 0x632   :  { %762 = vadd.xlane.f32.xlu0 %v761_v0  ;;  %1275 = vmatpush3.bf16.msra.mxu0 %v1322_v62  ;;  %v1137_v0 = vld [vmem:[%s1669_s7] ss:$0 sm:$0xff] }
 0x636   :  { %765 = vadd.xlane.f32.xlu0 %v764_v2 }
 0x6bb   :  { %v757_v1 = vpop.xlane.xlu0 %756 }
 0x6bc   :  { %v768_v3 = vmul.f32 0.03125, %v757_v1 }
 0x6bd   :  { %v760_v4 = vpop.xlane.xlu1 %759 }
 0x6be   :  { %v1563_v5 = vsub.f32 %v749_v55, %v768_v3  ;;  %v769_v6 = vmul.f32 0.03125, %v760_v4 }
 0x6bf   :  { %v763_v7 = vpop.xlane.xlu0 %762 }
 0x6c0   :  { %v1565_v8 = vsub.f32 %v750_v13, %v769_v6  ;;  %v770_v9 = vmul.f32 0.03125, %v763_v7  ;;  %v776_v10 = vmul.f32 %v1563_v5, %v1563_v5 }
 0x6c2   :  { %v1569_v11 = vsub.f32 %v751_v58, %v770_v9  ;;  %v780_v12 = vsel %vm72_vm0, %v776_v10, 0.0  ;;  %v777_v14 = vmul.f32 %v1565_v8, %v1565_v8 }
 0x6c3   :  { %v766_v15 = vpop.xlane.xlu0 %765  ;;  %781 = vadd.xlane.f32.xlu1 %v780_v12 }
 0x6c4   :  { %v771_v16 = vmul.f32 0.03125, %v766_v15  ;;  %v783_v17 = vsel %vm72_vm0, %v777_v14, 0.0  ;;  %v778_v19 = vmul.f32 %v1569_v11, %v1569_v11 }
 0x6c5   :  { %784 = vadd.xlane.f32.xlu0 %v783_v17 }
 0x6c6   :  { %v1577_v20 = vsub.f32 %v752_v63, %v771_v16  ;;  %v786_v21 = vsel %vm72_vm0, %v778_v19, 0.0  ;;  %v1323_v63 = vld [vmem:[%s1666_s8 + $0x38] sm:$0xff]   ;;  %v1142_v16 = vld [vmem:[%s1670_s9] ss:$0 sm:$0xff] }
 0x6c7   :  { %787 = vadd.xlane.f32.xlu1 %v786_v21  ;;  %1276 = vmatprep.subr.bf16.mxu0 %v1323_v63 }
 0x6c8   :  { %v779_v22 = vmul.f32 %v1577_v20, %v1577_v20  ;;  %1277 = vmatpush3.bf16.msra.mxu0 %v1323_v63 }
 0x6ca   :  { %v789_v23 = vsel %vm72_vm0, %v779_v22, 0.0 }
 0x6cb   :  { %790 = vadd.xlane.f32.xlu0 %v789_v23 }
 0x750   :  { %v782_v32 = vpop.xlane.xlu1 %781 }
 0x751   :  { %v792_v33 = vmul.f32 0.03125, %v782_v32 }
 0x752   :  { %v785_v34 = vpop.xlane.xlu0 %784 }
 0x753   :  { %v796_v35 = vadd.f32 1e-05, %v792_v33  ;;  %v793_v36 = vmul.f32 0.03125, %v785_v34 }
 0x754   :  { %v788_v37 = vpop.xlane.xlu1 %787 }
 0x755   :  { %1356 = vrsqrt.f32 %v796_v35  ;;  %v797_v18 = vadd.f32 1e-05, %v793_v36  ;;  %v794_v38 = vmul.f32 0.03125, %v788_v37 }
 0x757   :  { %1358 = vrsqrt.f32 %v797_v18  ;;  %v798_v39 = vadd.f32 1e-05, %v794_v38 }
 0x758   :  { %v791_v40 = vpop.xlane.xlu0 %790 }
 0x759   :  { %1360 = vrsqrt.f32 %v798_v39  ;;  %v795_v41 = vmul.f32 0.03125, %v791_v40 }
 0x75b   :  { %v799_v42 = vadd.f32 1e-05, %v795_v41 }
 0x75d   :  { %1362 = vrsqrt.f32 %v799_v42 }
 0x75f   :  { %v1357_v43 = vpop.eup %1356 }
 0x760   :  { %v804_v45 = vmul.f32 %v1357_v43, %v1563_v5 }
 0x761   :  { %v1359_v46 = vpop.eup %1358 }
 0x762   :  { %v805_v47 = vmul.f32 %v1359_v46, %v1565_v8  ;;  %v814_v48 = vmul.f32 %v1135_v44, %v804_v45 }
 0x763   :  { %v1361_v49 = vpop.eup %1360 }
 0x764   :  { %v806_v51 = vmul.f32 %v1361_v49, %v1569_v11  ;;  %v815_v52 = vmul.f32 %v1135_v44, %v805_v47  ;;  %v824_v53 = vadd.f32 %v1136_v50, %v814_v48 }
 0x766   :  { %v825_v54 = vadd.f32 %v1136_v50, %v815_v52  ;;  %v816_v56 = vmul.f32 %v1135_v44, %v806_v51 }
 0x767   :  { %v1363_v55 = vpop.eup %1362 }
 0x768   :  { %v807_v57 = vmul.f32 %v1363_v55, %v1577_v20  ;;  %v850_v58 = vpack.c.bf16 %v825_v54, %v824_v53  ;;  %v826_v59 = vadd.f32 %v1136_v50, %v816_v56 }
 0x76a   :  { %v817_v13 = vmul.f32 %v1135_v44, %v807_v57  ;;  %1258 = vmatprep.mubr.msk.bf16.mxu1 %vm72_vm0, %v850_v58 }
 0x76c   :  { %v827_v60 = vadd.f32 %v1136_v50, %v817_v13 }
 0x76e   :  { %v851_v61 = vpack.c.bf16 %v827_v60, %v826_v59 }
 0x770   :  { %1259 = vmatmul.mubr.msk.bf16.vlgmr.msra.gmra.mrb[24].mxu1 %vm72_vm0, %v851_v61 }
 0x843   :  { %v1260_v2 = vpop.f32.mrb[24].mxu1 }
 0x844   :  { %v919_v1 = vadd.f32 %v1260_v2, %v1137_v0  ;;  %v910_v3 = vpop.f32.mrb[25].mxu1  ;;  %v1151_v2 = vld [vmem:[%s1671_s10] ss:$0 sm:$0xff] }
 0x845   :  { %v911_v4 = vadd.f32 %v1137_v0, %v910_v3  ;;  %v1261_v5 = vpop.f32.mrb[26].mxu1 }
 0x846   :  { %v922_v6 = vadd.f32 %v1261_v5, %v1137_v0  ;;  %v913_v7 = vpop.f32.mrb[27].mxu1  ;;  %v927_v9 = vmax.f32 %v919_v1, 0.0 }
 0x847   :  { %v914_v8 = vadd.f32 %v1137_v0, %v913_v7  ;;  %v925_v11 = vmax.f32 %v911_v4, 0.0  ;;  %v1152_v4 = vld [vmem:[%s1672_s11] ss:$0 sm:$0xff] }
 0x848   :  { %v928_v10 = vmax.f32 %v922_v6, 0.0 }
 0x849   :  { %v926_v12 = vmax.f32 %v914_v8, 0.0 }
 0x84a   :  { %v930_v14 = vpack.c.bf16 %v928_v10, %v927_v9 }
 0x84b   :  { %v929_v15 = vpack.c.bf16 %v926_v12, %v925_v11 }
 0x84d   :  { %1278 = vmatprep.mubr.bf16.mxu0 %v929_v15 }
 0x84e   :  { %1279 = vmatmul.mubr.bf16.vlgmr.msra.gmra.mrb[16].mxu0 %v930_v14 }
 0x921   :  { %v1280_v17 = vpop.f32.mrb[16].mxu0 }
 0x922   :  { %v1019_v19 = vpop.f32.mrb[17].mxu0  ;;  %v1028_v20 = vadd.f32 %v1280_v17, %v1142_v16 }
 0x923   :  { %v1020_v21 = vadd.f32 %v1142_v16, %v1019_v19  ;;  %v1281_v22 = vpop.f32.mrb[18].mxu0 }
 0x924   :  { %v1022_v23 = vpop.f32.mrb[19].mxu0  ;;  %v1031_v24 = vadd.f32 %v1281_v22, %v1142_v16  ;;  %v1036_v29 = vadd.f32 %v1028_v20, %v826_v59 }
 0x925   :  { %v1023_v25 = vadd.f32 %v1142_v16, %v1022_v23  ;;  %v1034_v26 = vadd.f32 %v1020_v21, %v824_v53 }
 0x926   :  { %v1037_v31 = vadd.f32 %v1031_v24, %v827_v60  ;;  %v1046_v32 = vsel %vm72_vm0, %v1036_v29, 0.0 }
 0x927   :  { %v1040_v27 = vsel %vm72_vm0, %v1034_v26, 0.0  ;;  %v1035_v28 = vadd.f32 %v1023_v25, %v825_v54 }
 0x928   :  { %1041 = vadd.xlane.f32.xlu1 %v1040_v27  ;;  %v1049_v33 = vsel %vm72_vm0, %v1037_v31, 0.0 }
 0x929   :  { %v1043_v30 = vsel %vm72_vm0, %v1035_v28, 0.0 }
 0x92a   :  { %1044 = vadd.xlane.f32.xlu0 %v1043_v30 }
 0x92c   :  { %1047 = vadd.xlane.f32.xlu1 %v1046_v32 }
 0x92e   :  { %1050 = vadd.xlane.f32.xlu0 %v1049_v33 }
 0x9b5   :  { %v1042_v34 = vpop.xlane.xlu1 %1041 }
 0x9b6   :  { %v1052_v35 = vmul.f32 0.03125, %v1042_v34 }
 0x9b7   :  { %v1045_v36 = vpop.xlane.xlu0 %1044 }
 0x9b8   :  { %v1056_v37 = vsub.f32 %v1034_v26, %v1052_v35  ;;  %v1053_v18 = vmul.f32 0.03125, %v1045_v36 }
 0x9b9   :  { %v1048_v38 = vpop.xlane.xlu1 %1047 }
 0x9ba   :  { %v1057_v39 = vsub.f32 %v1035_v28, %v1053_v18  ;;  %v1054_v40 = vmul.f32 0.03125, %v1048_v38  ;;  %v1060_v41 = vmul.f32 %v1056_v37, %v1056_v37 }
 0x9bb   :  { %v1051_v42 = vpop.xlane.xlu0 %1050 }
 0x9bc   :  { %v1058_v43 = vsub.f32 %v1036_v29, %v1054_v40  ;;  %v1055_v44 = vmul.f32 0.03125, %v1051_v42  ;;  %v1064_v45 = vsel %vm72_vm0, %v1060_v41, 0.0  ;;  %v1061_v46 = vmul.f32 %v1057_v39, %v1057_v39 }
 0x9bd   :  { %1065 = vadd.xlane.f32.xlu1 %v1064_v45 }
 0x9be   :  { %v1059_v47 = vsub.f32 %v1037_v31, %v1055_v44  ;;  %v1067_v48 = vsel %vm72_vm0, %v1061_v46, 0.0  ;;  %v1062_v49 = vmul.f32 %v1058_v43, %v1058_v43 }
 0x9bf   :  { %1068 = vadd.xlane.f32.xlu0 %v1067_v48 }
 0x9c0   :  { %v1070_v50 = vsel %vm72_vm0, %v1062_v49, 0.0  ;;  %v1063_v51 = vmul.f32 %v1059_v47, %v1059_v47 }
 0x9c1   :  { %1071 = vadd.xlane.f32.xlu1 %v1070_v50 }
 0x9c2   :  { %v1073_v52 = vsel %vm72_vm0, %v1063_v51, 0.0 }
 0x9c3   :  { %1074 = vadd.xlane.f32.xlu0 %v1073_v52 }
 0xa4a   :  { %v1066_v53 = vpop.xlane.xlu1 %1065 }
 0xa4b   :  { %v1076_v54 = vmul.f32 0.03125, %v1066_v53 }
 0xa4c   :  { %v1069_v55 = vpop.xlane.xlu0 %1068 }
 0xa4d   :  { %v1080_v56 = vadd.f32 1e-05, %v1076_v54  ;;  %v1077_v57 = vmul.f32 0.03125, %v1069_v55 }
 0xa4e   :  { %v1072_v58 = vpop.xlane.xlu1 %1071 }
 0xa4f   :  { %1364 = vrsqrt.f32 %v1080_v56  ;;  %v1081_v13 = vadd.f32 1e-05, %v1077_v57  ;;  %v1078_v59 = vmul.f32 0.03125, %v1072_v58 }
 0xa50   :  { %v1075_v60 = vpop.xlane.xlu0 %1074 }
 0xa51   :  { %1366 = vrsqrt.f32 %v1081_v13  ;;  %v1082_v61 = vadd.f32 1e-05, %v1078_v59  ;;  %v1079_v62 = vmul.f32 0.03125, %v1075_v60 }
 0xa53   :  { %1368 = vrsqrt.f32 %v1082_v61  ;;  %v1083_v63 = vadd.f32 1e-05, %v1079_v62 }
 0xa55   :  { %1370 = vrsqrt.f32 %v1083_v63 }
 0xa59   :  { %v1365_v0 = vpop.eup %1364 }
 0xa5a   :  { %v1088_v1 = vmul.f32 %v1365_v0, %v1056_v37 }
 0xa5b   :  { %v1367_v3 = vpop.eup %1366 }
 0xa5c   :  { %v1098_v5 = vmul.f32 %v1151_v2, %v1088_v1  ;;  %v1089_v6 = vmul.f32 %v1367_v3, %v1057_v39 }
 0xa5d   :  { %v1369_v7 = vpop.eup %1368 }
 0xa5e   :  { %v1108_v8 = vadd.f32 %v1152_v4, %v1098_v5  ;;  %v1099_v9 = vmul.f32 %v1151_v2, %v1089_v6  ;;  %v1090_v10 = vmul.f32 %v1369_v7, %v1058_v43 }
 0xa5f   :  { %v1371_v11 = vpop.eup %1370 }
 0xa60   :  { %1112 = vst.msk [vmem:[%s1673_s12] sm:$0xff] %vm72_vm0, %v1108_v8  ;;  %v1109_v12 = vadd.f32 %v1152_v4, %v1099_v9  ;;  %v1100_v14 = vmul.f32 %v1151_v2, %v1090_v10  ;;  %v1091_v15 = vmul.f32 %v1371_v11, %v1059_v47 }
 0xa62   :  { %1113 = vst.msk [vmem:[%s1673_s12 + $0x8] sm:$0xff] %vm72_vm0, %v1109_v12  ;;  %v1110_v16 = vadd.f32 %v1152_v4, %v1100_v14  ;;  %v1101_v17 = vmul.f32 %v1151_v2, %v1091_v15 }
 0xa64   :  { %1114 = vst.msk [vmem:[%s1673_s12 + $0x10] sm:$0xff] %vm72_vm0, %v1110_v16  ;;  %v1111_v19 = vadd.f32 %v1152_v4, %v1101_v17 }
 0xa66   :  { %1115 = vst.msk [vmem:[%s1673_s12 + $0x18] sm:$0xff] %vm72_vm0, %v1111_v19 }

// kernel: _lambda_.11
= control target key start
LH: loop header
LB: loop body
LE: loop exit
PB: predicated region body
PF: predicated region fallthrough
CT: control target
= control target key end

     0   :  { %v484_v1 = vmov 0.0   ;;  %vm485_vm0 = vmmov 0   ;;  %vm62_vm1 = vcmask 261120   ;;  %s618_s0 = inlined_call_operand.vmem [shape: f32[16,32], index: 0, kind: input, shape index: {}]   ;;  %s619_s1 = inlined_call_operand.vmem [shape: bf16[32,32], index: 1, kind: input, shape index: {}]   ;;  %s620_s2 = inlined_call_operand.vmem [shape: f32[1,32], index: 2, kind: input, shape index: {}]   ;;  %s621_s3 = inlined_call_operand.vmem [shape: bf16[32,32], index: 3, kind: input, shape index: {}]   ;;  %s622_s4 = inlined_call_operand.vmem [shape: f32[1,32], index: 4, kind: input, shape index: {}]   ;;  %s623_s5 = inlined_call_operand.vmem [shape: bf16[32,4], index: 5, kind: input, shape index: {}]   ;;  %s624_s6 = inlined_call_operand.vmem [shape: f32[1,4], index: 6, kind: input, shape index: {}]   ;;  %s625_s7 = inlined_call_operand.vmem [shape: bf16[32,9], index: 7, kind: input, shape index: {}]   ;;  %s626_s8 = inlined_call_operand.vmem [shape: f32[1,9], index: 8, kind: input, shape index: {}]   ;;  %s627_s9 = inlined_call_operand.vmem [shape: f32[16,4], index: 9, kind: output, shape index: {0}]   ;;  %s628_s10 = inlined_call_operand.hbm [shape: f32[16,9], index: 10, kind: output, shape index: {1}]  }
   0x1   :  { %v436_v0 = vld [vmem:[%s619_s1] sm:$0xff]   ;;  %399 = vmatprep.subr.bf16.mxu0 %v484_v1  ;;  %407 = vmatprep.subr.bf16.mxu1 %v484_v1  ;;  %v437_v2 = vld [vmem:[%s619_s1 + $0x8] sm:$0xff]  }
   0x2   :  { %400 = vmatpush3.bf16.msra.mxu0 %v436_v0  ;;  %403 = vmatprep.mubr.msk.bf16.mxu0 %vm485_vm0, %v484_v1  ;;  %v36_v3 = vld [vmem:[%s618_s0] sm:$0xff]  ;;  %v37_v4 = vld [vmem:[%s618_s0 + $0x8] sm:$0xff] }
   0x3   :  { %401 = vmatprep.subr.bf16.mxu0 %v484_v1  ;;  %411 = vmatprep.mubr.msk.bf16.mxu1 %vm485_vm0, %v484_v1  ;;  %v38_v5 = vpack.c.bf16 %v37_v4, %v36_v3 }
   0x6   :  { %402 = vmatpush3.bf16.msra.mxu0 %v437_v2 }
   0x7   :  { %415 = vmatprep.subr.bf16.mxu0 %v484_v1 }
   0x8   :  { %16 = vsyncpa [#allocation3], 0  ;;  %v438_v6 = vld [vmem:[%s621_s3] sm:$0xff]   ;;  %v439_v7 = vld [vmem:[%s621_s3 + $0x8] sm:$0xff]   ;;  %vm326_vm2 = vcmask 72704   ;;  %vm259_vm3 = vcmask 31744  }
   0x9   :  { %404 = vmatmul.mubr.msk.bf16.vlgmr.msra.gmra.mrb[0].mxu0 %vm62_vm1, %v38_v5  ;;  %408 = vmatpush3.bf16.msra.mxu1 %v438_v6  ;;  %v371_v8 = vld [vmem:[%s620_s2] ss:$0 sm:$0xff]  ;;  %v441_v19 = vld [vmem:[%s625_s7 + $0x8] sm:$0xff]   ;;  %s486_s16 = smov [#allocation2]  }
   0xa   :  { %419 = vmatprep.mubr.msk.bf16.mxu0 %vm485_vm0, %v484_v1  ;;  %409 = vmatprep.subr.bf16.mxu1 %v484_v1  ;;  %v440_v17 = vld [vmem:[%s625_s7] sm:$0xff]   ;;  %v443_v21 = vld [vmem:[%s623_s5 + $0x8] sm:$0xff]   ;;  %s358_s17 = sshll.u32 %s486_s16, 4  ;;  %s359_s17 = int_to_ptr.vmem [resolvable:$true] %s358_s17 }
   0xb   :  { %v442_v20 = vld [vmem:[%s623_s5] sm:$0xff]   ;;  %s460_s18 = scalar_lea.vmem %s359_s17, 256  ;;  %p465_p1 = scmp.lt.s32.totalorder %s359_s17, %s359_s17 }
   0xc   :  { %416 = vmatpush3.bf16.msra.mxu0 %v442_v20  ;;  %v375_v22 = vld [vmem:[%s622_s4] ss:$0 sm:$0xff]  ;;  %p461_p0 = scmp.ne.s32.totalorder %s359_s17, %s460_s18  ;;  %p466_p2 = scmp.lt.s32.totalorder %s460_s18, %s460_s18 }
   0xd   :  { %410 = vmatpush3.bf16.msra.mxu1 %v439_v7  ;;  %417 = vmatprep.subr.bf16.mxu0 %v484_v1  ;;  %v383_v31 = vld [vmem:[%s626_s8] ss:$0 sm:$0xff] }
   0xe   :  { %423 = vmatprep.subr.bf16.mxu1 %v484_v1  ;;  %v379_v51 = vld [vmem:[%s624_s6] ss:$0 sm:$0xff]  ;;  %p467_p3 = por %p466_p2, %p465_p1 }
  0x10   :  { %418 = vmatpush3.bf16.msra.mxu0 %v443_v21  ;;  %p468_p4 = pnand %p467_p3, %p461_p0 }
  0xdc   :  { %v100_v9 = vpop.f32.mrb[0].mxu0 }
  0xdd   :  { %v101_v10 = vadd.f32 %v371_v8, %v100_v9  ;;  %v405_v11 = vpop.f32.mrb[1].mxu0 }
  0xde   :  { %v103_v12 = vpop.f32.mrb[2].mxu0 }
  0xdf   :  { %v104_v13 = vadd.f32 %v371_v8, %v103_v12  ;;  %v406_v14 = vpop.f32.mrb[3].mxu0  ;;  %v107_v15 = vmax.f32 %v101_v10, 0.0 }
  0xe1   :  { %v108_v16 = vmax.f32 %v104_v13, 0.0 }
  0xe3   :  { %v109_v18 = vpack.c.bf16 %v108_v16, %v107_v15 }
  0xe5   :  { %412 = vmatmul.mubr.msk.bf16.vlgmr.msra.gmra.mrb[0].mxu1 %vm62_vm1, %v109_v18 }
  0xe6   :  { %424 = vmatpush3.bf16.msra.mxu1 %v440_v17  ;;  %427 = vmatprep.mubr.msk.bf16.mxu1 %vm485_vm0, %v484_v1 }
  0xe7   :  { %425 = vmatprep.subr.bf16.mxu1 %v484_v1 }
  0xea   :  { %426 = vmatpush3.bf16.msra.mxu1 %v441_v19 }
  0xed   :  { %428 = vmatmul.mubr.msk.bf16.vlgmr.msra.gmra.mrb[4].mxu1 %vm62_vm1, %v38_v5 }
 0x1b8   :  { %v170_v23 = vpop.f32.mrb[0].mxu1 }
 0x1b9   :  { %v171_v24 = vadd.f32 %v375_v22, %v170_v23  ;;  %v413_v25 = vpop.f32.mrb[1].mxu1 }
 0x1ba   :  { %v173_v26 = vpop.f32.mrb[2].mxu1 }
 0x1bb   :  { %v174_v27 = vadd.f32 %v375_v22, %v173_v26  ;;  %v414_v28 = vpop.f32.mrb[3].mxu1  ;;  %v177_v29 = vmax.f32 %v171_v24, 0.0 }
 0x1bd   :  { %v178_v30 = vmax.f32 %v174_v27, 0.0 }
 0x1bf   :  { %v179_v32 = vpack.c.bf16 %v178_v30, %v177_v29 }
 0x1c0   :  { %v319_v33 = vpop.f32.mrb[4].mxu1 }
 0x1c1   :  { %v320_v34 = vadd.f32 %v383_v31, %v319_v33  ;;  %420 = vmatmul.mubr.msk.bf16.vlgmr.msra.gmra.mrb[4].mxu0 %vm62_vm1, %v179_v32  ;;  %v429_v35 = vpop.f32.mrb[5].mxu1 }
 0x1c2   :  { %v322_v36 = vpop.f32.mrb[6].mxu1 }
 0x1c3   :  { %v323_v37 = vadd.f32 %v383_v31, %v322_v36  ;;  %v430_v38 = vpop.f32.mrb[7].mxu1  ;;  %v327_v39 = vsel %vm326_vm2, %v320_v34, -inf }
 0x1c4   :  { %328 = vmax.xlane.f32.xlu0 %v327_v39 }
 0x1c5   :  { %v330_v40 = vsel %vm326_vm2, %v323_v37, -inf }
 0x1c8   :  { %331 = vmax.xlane.f32.xlu0 %v330_v40 }
 0x251   :  { %v329_v41 = vpop.xlane.xlu0 %328 }
 0x252   :  { %v333_v42 = vsub.f32 %v320_v34, %v329_v41 }
 0x254   :  { %v335_v43 = vmul.f32 1.442695, %v333_v42 }
 0x255   :  { %v332_v44 = vpop.xlane.xlu0 %331 }
 0x256   :  { %444 = vpow2.f32 %v335_v43  ;;  %v334_v45 = vsub.f32 %v323_v37, %v332_v44 }
 0x258   :  { %v337_v46 = vmul.f32 1.442695, %v334_v45 }
 0x25a   :  { %446 = vpow2.f32 %v337_v46 }
 0x260   :  { %v445_v47 = vpop.eup %444 }
 0x261   :  { %v339_v48 = vsel %vm326_vm2, %v445_v47, 0.0 }
 0x262   :  { %340 = vadd.xlane.f32.xlu1 %v339_v48 }
 0x264   :  { %v447_v49 = vpop.eup %446 }
 0x265   :  { %v342_v50 = vsel %vm326_vm2, %v447_v49, 0.0 }
 0x266   :  { %343 = vadd.xlane.f32.xlu1 %v342_v50 }
 0x294   :  { %v240_v52 = vpop.f32.mrb[4].mxu0 }
 0x295   :  { %v241_v53 = vadd.f32 %v379_v51, %v240_v52  ;;  %v421_v54 = vpop.f32.mrb[5].mxu0 }
 0x296   :  { %v243_v55 = vpop.f32.mrb[6].mxu0 }
 0x297   :  { %v247_v56 = vsub.f32 0.0, %v241_v53  ;;  %v244_v57 = vadd.f32 %v379_v51, %v243_v55  ;;  %v422_v58 = vpop.f32.mrb[7].mxu0 }
 0x299   :  { %v249_v59 = vmul.f32 1.442695, %v247_v56  ;;  %v248_v60 = vsub.f32 0.0, %v244_v57 }
 0x29b   :  { %448 = vpow2.f32 %v249_v59  ;;  %v251_v61 = vmul.f32 1.442695, %v248_v60 }
 0x29d   :  { %450 = vpow2.f32 %v251_v61 }
 0x2a5   :  { %v449_v62 = vpop.eup %448 }
 0x2a6   :  { %v253_v63 = vadd.f32 1.0, %v449_v62 }
 0x2a7   :  { %v451_v0 = vpop.eup %450 }
 0x2a8   :  { %452 = vrcp.f32 %v253_v63  ;;  %v254_v1 = vadd.f32 1.0, %v451_v0 }
 0x2aa   :  { %454 = vrcp.f32 %v254_v1 }
 0x2b2   :  { %v453_v2 = vpop.eup %452 }
 0x2b3   :  { %260 = vst.msk [vmem:[%s627_s9] sm:$0xff] %vm259_vm3, %v453_v2 }
 0x2b4   :  { %v455_v3 = vpop.eup %454 }
 0x2b5   :  { %261 = vst.msk [vmem:[%s627_s9 + $0x8] sm:$0xff] %vm259_vm3, %v455_v3 }
 0x2ef   :  { %v341_v4 = vpop.xlane.xlu1 %340 }
 0x2f0   :  { %456 = vrcp.f32 %v341_v4 }
 0x2f3   :  { %v344_v5 = vpop.xlane.xlu1 %343 }
 0x2f4   :  { %458 = vrcp.f32 %v344_v5 }
 0x2fa   :  { %v457_v6 = vpop.eup %456 }
 0x2fb   :  { %v347_v7 = vmul.f32 %v457_v6, %v445_v47 }
 0x2fd   :  { %349 = vst.msk [vmem:[#allocation2] sm:$0xff] %vm326_vm2, %v347_v7 }
 0x2fe   :  { %v459_v8 = vpop.eup %458 }
 0x2ff   :  { %v348_v9 = vmul.f32 %v459_v8, %v447_v49 }
 0x301   :  { %350 = vst.msk [vmem:[#allocation2 + $0x8] sm:$0xff] %vm326_vm2, %v348_v9 }
 0x302   :  { %471 = shalt.err (!%p468_p4)
}
 0x303   :  { %s472_s20 = scalar_lea.hbm %s628_s10, 256 }
 0x304   :  { %p473_p5 = scmp.ne.s32.totalorder %s628_s10, %s472_s20  ;;  %p476_p6 = scmp.lt.u32.totalorder %s472_s20, %s628_s10 }
 0x306   :  { %p478_p7 = pnand %p476_p6, %p473_p5 }
 0x308   :  { %481 = shalt.err (!%p478_p7)
}
 0x309   :  { %s487_s23 = smov 128   ;;  %s488_s24 = smov 8  }
 0x30a   :  { %364 = dma.vmem_to_hbm [thread:$0]  %s359_s17, 256, %s628_s10, [#allocation3], %s487_s23, %s487_s23, %s488_s24  }
 0x30b   :  { %482 = dma.done.wait [#allocation3], 256  }
 0x30c   :  { %483 = vsyncadd [#allocation3], 4294967040 }
 0x30d   :  { %370 = vsyncpa [#allocation3], 1 }

// kernel: _lambda_.9
= control target key start
LH: loop header
LB: loop body
LE: loop exit
PB: predicated region body
PF: predicated region fallthrough
CT: control target
= control target key end

     0   :  { %v2033_v0 = vmov 0.0   ;;  %vm2034_vm0 = vmmov 0   ;;  %vm89_vm1 = vcmask 261120   ;;  %s2035_s23 = smov 96   ;;  %vm177_vm2 = vcmask 1043456   ;;  %s2036_s24 = smov 64   ;;  %s2454_s4 = inlined_call_operand.vmem [shape: bf16[32,96], index: 4, kind: input, shape index: {}]   ;;  %s2455_s0 = inlined_call_operand.vmem [shape: f32[16,32], index: 0, kind: input, shape index: {}]   ;;  %s2456_s1 = inlined_call_operand.vmem [shape: f32[8,32], index: 1, kind: input, shape index: {}]   ;;  %s2457_s5 = inlined_call_operand.vmem [shape: bf16[32,32], index: 5, kind: input, shape index: {}]   ;;  %s2458_s8 = inlined_call_operand.vmem [shape: bf16[32,96], index: 8, kind: input, shape index: {}]   ;;  %s2459_s2 = inlined_call_operand.vmem [shape: f32[16,32], index: 2, kind: input, shape index: {}]   ;;  %s2460_s3 = inlined_call_operand.vmem [shape: f32[16,32], index: 3, kind: input, shape index: {}]   ;;  %s2461_s6 = inlined_call_operand.vmem [shape: f32[1,32], index: 6, kind: input, shape index: {}]   ;;  %s2462_s7 = inlined_call_operand.vmem [shape: f32[1,32], index: 7, kind: input, shape index: {}]   ;;  %s2463_s9 = inlined_call_operand.vmem [shape: bf16[32,32], index: 9, kind: input, shape index: {}]   ;;  %s2464_s12 = inlined_call_operand.vmem [shape: bf16[32,128], index: 12, kind: input, shape index: {}]   ;;  %s2465_s14 = inlined_call_operand.vmem [shape: bf16[128,32], index: 14, kind: input, shape index: {}]   ;;  %s2466_s10 = inlined_call_operand.vmem [shape: f32[1,32], index: 10, kind: input, shape index: {}]   ;;  %s2467_s11 = inlined_call_operand.vmem [shape: f32[1,32], index: 11, kind: input, shape index: {}]   ;;  %s2468_s13 = inlined_call_operand.vmem [shape: f32[1,128], index: 13, kind: input, shape index: {}]   ;;  %s2469_s15 = inlined_call_operand.vmem [shape: f32[1,32], index: 15, kind: input, shape index: {}]   ;;  %s2470_s16 = inlined_call_operand.vmem [shape: f32[1,32], index: 16, kind: input, shape index: {}]   ;;  %s2471_s17 = inlined_call_operand.vmem [shape: f32[1,32], index: 17, kind: input, shape index: {}]   ;;  %s2472_s18 = inlined_call_operand.vmem [shape: f32[16,32], index: 18, kind: output, shape index: {}]  }
   0x1   :  { %2475 = sst [smem:[#allocation2_spill]] %s2454_s4  ;;  %1791 = vmatprep.subr.bf16.mxu0 %v2033_v0  ;;  %1795 = vmatprep.mubr.msk.bf16.mxu0 %vm2034_vm0, %v2033_v0  ;;  %vm173_vm3 = vcmask 64512   ;;  %s2037_s25 = smov 120   ;;  %vm627_vm4 = vcmask 130048   ;;  %vm629_vm5 = vcmask 195584  }
   0x2   :  { %2476 = sst [smem:[#allocation3_spill]] %s2455_s0  ;;  %s2478_s29 = sld [smem:[#allocation2_spill]]  ;;  %1817 = vmatprep.subr.bf16.mxu1 %v2033_v0  ;;  %1819 = vmatprep.mubr.msk.bf16.mxu1 %vm2034_vm0, %v2033_v0 }
   0x3   :  { %2477 = sst [smem:[#allocation4_spill]] %s2456_s1  ;;  %s2479_s20 = sld [smem:[#allocation3_spill]] }
   0x4   :  { %s2480_s1 = sld [smem:[#allocation4_spill]]  ;;  %s2038_s26 = smov 112  }
   0x5   :  { %s2039_s27 = smov 104   ;;  %s2040_s28 = smov 48  }
   0x6   :  { %s2042_s30 = smov 40   ;;  %s2043_s0 = smov 8  }
   0x8   :  { %v1971_v1 = vld [vmem:[%s2478_s29] sm:$0xff]   ;;  %v1972_v2 = vld [vmem:[%s2478_s29 + $0x8] sm:$0xff]   ;;  %s2041_s29 = smov 56  }
   0x9   :  { %1792 = vmatpush3.bf16.msra.mxu0 %v1971_v1  ;;  %v2159_v3 = vld [vmem:[%s2479_s20] sm:$0xff] }
   0xa   :  { %v2164_v4 = vld [vmem:[%s2480_s1] sm:$0xff]  ;;  %1793 = vmatprep.subr.bf16.mxu0 %v2033_v0  ;;  %s2044_s1 = smov 16  }
   0xb   :  { %v67_v5 = vadd.f32 %v2164_v4, %v2159_v3 }
   0xd   :  { %v76_v6 = vpack.c.bf16 %v2159_v3, %v67_v5  ;;  %1794 = vmatpush3.bf16.msra.mxu0 %v1972_v2 }
   0xe   :  { %1799 = vmatprep.subr.bf16.mxu0 %v2033_v0 }
  0x10   :  { %1796 = vmatmul.mubr.msk.bf16.vlgmr.msra.gmra.mrb[0].mxu0 %vm89_vm1, %v76_v6 }
  0x11   :  { %1801 = vmatprep.mubr.msk.bf16.mxu0 %vm2034_vm0, %v2033_v0 }
  0xe3   :  { %v127_v7 = vpop.f32.mrb[0].mxu0 }
  0xe4   :  { %137 = vrot.lane.b32.xlu0 %v127_v7, %s2035_s23  ;;  %v1797_v8 = vpop.f32.mrb[1].mxu0  ;;  %v134_v15 = vpack.c.bf16 %v127_v7, %v127_v7 }
  0xe5   :  { %v130_v9 = vpop.f32.mrb[2].mxu0 }
  0xe6   :  { %v1798_v10 = vpop.f32.mrb[3].mxu0  ;;  %v2182_v27 = vpack.c.bf16 %v130_v9, %v130_v9 }
 0x156   :  { %v138_v11 = vpop.permute.xlu0 %137 }
 0x157   :  { %140 = vxpose.xlu0.b32.start.end [1/1] (short) (narrow) %v138_v11, 32 }
 0x1d7   :  { %v156_v12 = vpop.trf.xlu0 }
 0x1d8   :  { %v172_v13 = vpack.c.bf16 %v156_v12, %v156_v12 }
 0x1da   :  { %v179_v14 = vsel %vm177_vm2, %v172_v13, 0 }
 0x1db   :  { %1800 = vmatpush3.bf16.msra.mxu0 %v179_v14  ;;  %v157_v31 = vpop.trf.xlu0 }
 0x1dc   :  { %1805 = vmatprep.subr.bf16.mxu0 %v2033_v0  ;;  %v283_v32 = vpack.c.bf16 %v157_v31, %v157_v31 }
 0x1de   :  { %1802 = vmatmul.mubr.msk.bf16.vlgmr.msra.gmra.mrb[4].mxu0 %vm173_vm3, %v134_v15  ;;  %v291_v36 = vsel %vm177_vm2, %v283_v32, 0 }
 0x1df   :  { %1807 = vmatprep.mubr.msk.bf16.mxu0 %vm2034_vm0, %v2033_v0  ;;  %v158_v37 = vpop.trf.xlu0 }
 0x1e0   :  { %v394_v38 = vpack.c.bf16 %v158_v37, %v158_v37 }
 0x1e2   :  { %v401_v39 = vsel %vm177_vm2, %v394_v38, 0 }
 0x1e3   :  { %v159_v41 = vpop.trf.xlu0 }
 0x1e4   :  { %v504_v42 = vpack.c.bf16 %v159_v41, %v159_v41 }
 0x1e6   :  { %v511_v43 = vsel %vm177_vm2, %v504_v42, 0 }
 0x2b1   :  { %v215_v16 = vpop.f32.mrb[4].mxu0 }
 0x2b2   :  { %v221_v17 = vmul.f32 0.35355338, %v215_v16  ;;  %v1803_v18 = vpop.f32.mrb[5].mxu0 }
 0x2b3   :  { %v218_v19 = vpop.f32.mrb[6].mxu0 }
 0x2b4   :  { %v1804_v20 = vpop.f32.mrb[7].mxu0  ;;  %v222_v21 = vsel %vm173_vm3, %v221_v17, -inf }
 0x2b5   :  { %223 = vmax.xlane.f32.xlu1 %v222_v21 }
 0x342   :  { %v224_v22 = vpop.xlane.xlu1 %223 }
 0x343   :  { %v225_v23 = vsub.f32 %v221_v17, %v224_v22 }
 0x345   :  { %v226_v24 = vmul.f32 1.442695, %v225_v23 }
 0x347   :  { %1989 = vpow2.f32 %v226_v24 }
 0x351   :  { %v1990_v25 = vpop.eup %1989 }
 0x352   :  { %v228_v26 = vsel %vm173_vm3, %v1990_v25, 0.0 }
 0x353   :  { %229 = vadd.xlane.f32.xlu1 %v228_v26 }
 0x364   :  { %235 = vrot.lane.b32.xlu1 %v2182_v27, %s2036_s24  ;;  %s2045_s24 = smov 24  }
 0x368   :  { %285 = vrot.lane.b32.xlu1 %v134_v15, %s2037_s25 }
 0x36c   :  { %395 = vrot.lane.b32.xlu1 %v134_v15, %s2038_s26 }
 0x370   :  { %505 = vrot.lane.b32.xlu1 %v134_v15, %s2039_s27 }
 0x3e0   :  { %v230_v28 = vpop.xlane.xlu1 %229 }
 0x3e1   :  { %1991 = vrcp.f32 %v230_v28 }
 0x3e4   :  { %v236_v29 = vpop.permute.xlu1 %235 }
 0x3e5   :  { %v241_v30 = vsel %vm177_vm2, %v236_v29, 0 }
 0x3e6   :  { %1806 = vmatpush3.bf16.msra.mxu0 %v241_v30 }
 0x3e7   :  { %1811 = vmatprep.subr.bf16.mxu0 %v2033_v0 }
 0x3e8   :  { %v286_v40 = vpop.permute.xlu1 %285 }
 0x3eb   :  { %v1992_v33 = vpop.eup %1991 }
 0x3ec   :  { %v232_v34 = vmul.f32 %v1992_v33, %v1990_v25  ;;  %v396_v44 = vpop.permute.xlu1 %395 }
 0x3ee   :  { %v233_v35 = vpack.c.bf16 %v232_v34, %v232_v34 }
 0x3f0   :  { %1808 = vmatmul.mubr.msk.bf16.vlgmr.msra.gmra.mrb[8].mxu0 %vm173_vm3, %v233_v35  ;;  %v506_v45 = vpop.permute.xlu1 %505 }
 0x3f1   :  { %1812 = vmatpush3.bf16.msra.mxu0 %v291_v36  ;;  %1813 = vmatprep.mubr.msk.bf16.mxu0 %vm2034_vm0, %v2033_v0 }
 0x3f2   :  { %1823 = vmatprep.subr.bf16.mxu0 %v2033_v0 }
 0x3f8   :  { %1814 = vmatmul.mubr.msk.bf16.vlgmr.msra.gmra.mrb[12].mxu0 %vm173_vm3, %v286_v40  ;;  %v1973_v40 = vld [vmem:[%s2457_s5] sm:$0xff]  }
 0x3f9   :  { %1824 = vmatpush3.bf16.msra.mxu0 %v401_v39  ;;  %1825 = vmatprep.mubr.msk.bf16.mxu0 %vm2034_vm0, %v2033_v0 }
 0x3fa   :  { %1835 = vmatprep.subr.bf16.mxu0 %v2033_v0 }
 0x400   :  { %1826 = vmatmul.mubr.msk.bf16.vlgmr.msra.gmra.mrb[16].mxu0 %vm173_vm3, %v396_v44 }
 0x401   :  { %1836 = vmatpush3.bf16.msra.mxu0 %v511_v43  ;;  %1837 = vmatprep.mubr.msk.bf16.mxu0 %vm2034_vm0, %v2033_v0 }
 0x402   :  { %1847 = vmatprep.subr.bf16.mxu0 %v2033_v0 }
 0x408   :  { %1838 = vmatmul.mubr.msk.bf16.vlgmr.msra.gmra.mrb[20].mxu0 %vm173_vm3, %v506_v45  ;;  %v1974_v45 = vld [vmem:[%s2457_s5 + $0x8] sm:$0xff]  }
 0x409   :  { %1851 = vmatprep.mubr.msk.bf16.mxu0 %vm2034_vm0, %v2033_v0  ;;  %1848 = vmatpush3.bf16.msra.mxu0 %v1973_v40 }
 0x40a   :  { %1849 = vmatprep.subr.bf16.mxu0 %v2033_v0 }
 0x40d   :  { %1850 = vmatpush3.bf16.msra.mxu0 %v1974_v45 }
 0x40e   :  { %1863 = vmatprep.subr.bf16.mxu0 %v2033_v0 }
 0x4c3   :  { %v2208_v46 = vpop.f32.mrb[8].mxu0 }
 0x4c4   :  { %v1809_v47 = vpop.f32.mrb[9].mxu0 }
 0x4c5   :  { %v280_v48 = vpop.f32.mrb[10].mxu0 }
 0x4c6   :  { %v1810_v49 = vpop.f32.mrb[11].mxu0 }
 0x4cb   :  { %v327_v50 = vpop.f32.mrb[12].mxu0 }
 0x4cc   :  { %v333_v51 = vmul.f32 0.35355338, %v327_v50  ;;  %v1815_v52 = vpop.f32.mrb[13].mxu0 }
 0x4cd   :  { %v330_v53 = vpop.f32.mrb[14].mxu0 }
 0x4ce   :  { %v1816_v54 = vpop.f32.mrb[15].mxu0  ;;  %v334_v55 = vsel %vm173_vm3, %v333_v51, -inf }
 0x4cf   :  { %335 = vmax.xlane.f32.xlu0 %v334_v55 }
 0x4d3   :  { %v437_v56 = vpop.f32.mrb[16].mxu0 }
 0x4d4   :  { %v443_v57 = vmul.f32 0.35355338, %v437_v56  ;;  %v1827_v58 = vpop.f32.mrb[17].mxu0 }
 0x4d5   :  { %v440_v59 = vpop.f32.mrb[18].mxu0 }
 0x4d6   :  { %v1828_v60 = vpop.f32.mrb[19].mxu0  ;;  %v444_v61 = vsel %vm173_vm3, %v443_v57, -inf }
 0x4d7   :  { %445 = vmax.xlane.f32.xlu1 %v444_v61 }
 0x4db   :  { %v547_v62 = vpop.f32.mrb[20].mxu0 }
 0x4dc   :  { %v553_v63 = vmul.f32 0.35355338, %v547_v62  ;;  %v1839_v1 = vpop.f32.mrb[21].mxu0 }
 0x4dd   :  { %v550_v2 = vpop.f32.mrb[22].mxu0 }
 0x4de   :  { %v1840_v5 = vpop.f32.mrb[23].mxu0  ;;  %v554_v6 = vsel %vm173_vm3, %v553_v63, -inf }
 0x4df   :  { %555 = vmax.xlane.f32.xlu1 %v554_v6  ;;  %v1975_v6 = vld [vmem:[%s2458_s8] sm:$0xff]  }
 0x4e5   :  { %456 = vrot.lane.b32.xlu0 %v2182_v27, %s2040_s28 }
 0x4f0   :  { %346 = vrot.lane.b32.xlu1 %v2182_v27, %s2041_s29 }
 0x55c   :  { %v336_v7 = vpop.xlane.xlu0 %335 }
 0x55d   :  { %v337_v8 = vsub.f32 %v333_v51, %v336_v7  ;;  %v1976_v7 = vld [vmem:[%s2458_s8 + $0x8] sm:$0xff]  }
 0x55f   :  { %v338_v9 = vmul.f32 1.442695, %v337_v8 }
 0x560   :  { %v457_v29 = vpop.permute.xlu0 %456 }
 0x561   :  { %1993 = vpow2.f32 %v338_v9  ;;  %v462_v31 = vsel %vm177_vm2, %v457_v29, 0  ;;  %v2290_v29 = vld [vmem:[%s2462_s7] ss:$0 sm:$0xff]  ;;  %s2047_s7 = smov 88  }
 0x564   :  { %v446_v10 = vpop.xlane.xlu1 %445 }
 0x565   :  { %v447_v11 = vsub.f32 %v443_v57, %v446_v10 }
 0x567   :  { %v448_v12 = vmul.f32 1.442695, %v447_v11 }
 0x569   :  { %1995 = vpow2.f32 %v448_v12 }
 0x56b   :  { %v1994_v13 = vpop.eup %1993 }
 0x56c   :  { %v556_v14 = vpop.xlane.xlu1 %555  ;;  %v340_v15 = vsel %vm173_vm3, %v1994_v13, 0.0 }
 0x56d   :  { %v557_v16 = vsub.f32 %v553_v63, %v556_v14  ;;  %341 = vadd.xlane.f32.xlu1 %v340_v15  ;;  %v64_v14 = vld [vmem:[%s2459_s2 + $0x8] sm:$0xff]  ;;  %v65_v15 = vld [vmem:[%s2460_s3] sm:$0xff] }
 0x56f   :  { %v558_v17 = vmul.f32 1.442695, %v557_v16  ;;  %v66_v16 = vld [vmem:[%s2460_s3 + $0x8] sm:$0xff] }
 0x570   :  { %v347_v18 = vpop.permute.xlu1 %346 }
 0x571   :  { %1997 = vpow2.f32 %v558_v17  ;;  %v352_v19 = vsel %vm177_vm2, %v347_v18, 0 }
 0x572   :  { %1818 = vmatpush3.bf16.msra.mxu1 %v352_v19  ;;  %v736_v19 = vadd.f32 %v66_v16, %v64_v14 }
 0x573   :  { %v1996_v20 = vpop.eup %1995  ;;  %1829 = vmatprep.subr.bf16.mxu1 %v2033_v0 }
 0x574   :  { %v450_v21 = vsel %vm173_vm3, %v1996_v20, 0.0 }
 0x575   :  { %451 = vadd.xlane.f32.xlu1 %v450_v21 }
 0x57b   :  { %v1998_v22 = vpop.eup %1997 }
 0x57c   :  { %v560_v23 = vsel %vm173_vm3, %v1998_v22, 0.0 }
 0x57d   :  { %561 = vadd.xlane.f32.xlu1 %v560_v23 }
 0x58e   :  { %566 = vrot.lane.b32.xlu1 %v2182_v27, %s2042_s30 }
 0x5fa   :  { %v342_v24 = vpop.xlane.xlu1 %341 }
 0x5fb   :  { %1999 = vrcp.f32 %v342_v24 }
 0x602   :  { %v452_v25 = vpop.xlane.xlu1 %451 }
 0x603   :  { %2001 = vrcp.f32 %v452_v25 }
 0x605   :  { %v2000_v26 = vpop.eup %1999 }
 0x606   :  { %v344_v28 = vmul.f32 %v2000_v26, %v1994_v13  ;;  %v63_v13 = vld [vmem:[%s2459_s2] sm:$0xff] }
 0x607   :  { %v735_v17 = vadd.f32 %v65_v15, %v63_v13  ;;  %v746_v18 = vpack.c.bf16 %v64_v14, %v63_v13  ;;  %v2285_v26 = vld [vmem:[%s2461_s6] ss:$0 sm:$0xff]  ;;  %s2046_s6 = smov 72  }
 0x608   :  { %v345_v30 = vpack.c.bf16 %v344_v28, %v344_v28 }
 0x60a   :  { %1820 = vmatmul.mubr.msk.bf16.vlgmr.msra.gmra.mrb[0].mxu1 %vm173_vm3, %v345_v30  ;;  %v562_v32 = vpop.xlane.xlu1 %561 }
 0x60b   :  { %1830 = vmatpush3.bf16.msra.mxu1 %v462_v31  ;;  %2003 = vrcp.f32 %v562_v32  ;;  %1831 = vmatprep.mubr.msk.bf16.mxu1 %vm2034_vm0, %v2033_v0 }
 0x60c   :  { %1841 = vmatprep.subr.bf16.mxu1 %v2033_v0 }
 0x60d   :  { %v2002_v27 = vpop.eup %2001 }
 0x60e   :  { %v454_v33 = vmul.f32 %v2002_v27, %v1996_v20  ;;  %v567_v34 = vpop.permute.xlu1 %566  ;;  %v745_v20 = vpack.c.bf16 %v736_v19, %v735_v17 }
 0x60f   :  { %v572_v36 = vsel %vm177_vm2, %v567_v34, 0 }
 0x610   :  { %v455_v35 = vpack.c.bf16 %v454_v33, %v454_v33 }
 0x612   :  { %1832 = vmatmul.mubr.msk.bf16.vlgmr.msra.gmra.mrb[4].mxu1 %vm173_vm3, %v455_v35 }
 0x613   :  { %1842 = vmatpush3.bf16.msra.mxu1 %v572_v36  ;;  %1843 = vmatprep.mubr.msk.bf16.mxu1 %vm2034_vm0, %v2033_v0 }
 0x615   :  { %v2004_v37 = vpop.eup %2003 }
 0x616   :  { %v564_v38 = vmul.f32 %v2004_v37, %v1998_v22 }
 0x618   :  { %v565_v39 = vpack.c.bf16 %v564_v38, %v564_v38 }
 0x61a   :  { %1844 = vmatmul.mubr.msk.bf16.vlgmr.msra.gmra.mrb[8].mxu1 %vm173_vm3, %v565_v39 }
 0x61b   :  { %1859 = vmatprep.mubr.msk.bf16.mxu1 %vm89_vm1, %v745_v20 }
 0x6dd   :  { %v388_v41 = vpop.f32.mrb[0].mxu1 }
 0x6de   :  { %615 = vrot.lane.b32.xlu1 %v388_v41, %s2043_s0  ;;  %v1821_v42 = vpop.f32.mrb[1].mxu1 }
 0x6df   :  { %v391_v43 = vpop.f32.mrb[2].mxu1 }
 0x6e0   :  { %v1822_v44 = vpop.f32.mrb[3].mxu1 }
 0x6e5   :  { %v498_v47 = vpop.f32.mrb[4].mxu1 }
 0x6e6   :  { %619 = vrot.lane.b32.xlu0 %v498_v47, %s2044_s1  ;;  %v1833_v48 = vpop.f32.mrb[5].mxu1 }
 0x6e7   :  { %v501_v49 = vpop.f32.mrb[6].mxu1 }
 0x6e8   :  { %v1834_v50 = vpop.f32.mrb[7].mxu1 }
 0x6ed   :  { %v608_v51 = vpop.f32.mrb[8].mxu1 }
 0x6ee   :  { %623 = vrot.lane.b32.xlu1 %v608_v51, %s2045_s24  ;;  %v1845_v52 = vpop.f32.mrb[9].mxu1 }
 0x6ef   :  { %v611_v53 = vpop.f32.mrb[10].mxu1 }
 0x6f0   :  { %v1846_v54 = vpop.f32.mrb[11].mxu1 }
 0x750   :  { %v616_v55 = vpop.permute.xlu1 %615 }
 0x751   :  { %v626_v57 = vsel %vm173_vm3, %v2208_v46, %v616_v55 }
 0x758   :  { %v620_v56 = vpop.permute.xlu0 %619 }
 0x759   :  { %v628_v58 = vsel %vm627_vm4, %v626_v57, %v620_v56 }
 0x760   :  { %v624_v59 = vpop.permute.xlu1 %623 }
 0x761   :  { %v630_v60 = vsel %vm629_vm5, %v628_v58, %v624_v59 }
 0x762   :  { %v631_v61 = vpack.c.bf16 %v630_v60, %v630_v60 }
 0x764   :  { %1852 = vmatmul.mubr.msk.bf16.vlgmr.msra.gmra.mrb[24].mxu0 %vm89_vm1, %v631_v61 }
 0x765   :  { %1867 = vmatprep.mubr.msk.bf16.mxu0 %vm2034_vm0, %v2033_v0  ;;  %1864 = vmatpush3.bf16.msra.mxu0 %v1975_v6 }
 0x766   :  { %1865 = vmatprep.subr.bf16.mxu0 %v2033_v0 }
 0x769   :  { %1866 = vmatpush3.bf16.msra.mxu0 %v1976_v7 }
 0x76a   :  { %1877 = vmatprep.subr.bf16.mxu0 %v2033_v0 }
 0x837   :  { %v2249_v62 = vpop.f32.mrb[24].mxu0 }
 0x838   :  { %v687_v63 = vadd.f32 %v2249_v62, %v2159_v3  ;;  %v1853_v1 = vpop.f32.mrb[25].mxu0 }
 0x839   :  { %v684_v2 = vpop.f32.mrb[26].mxu0 }
 0x83a   :  { %v1854_v5 = vpop.f32.mrb[27].mxu0  ;;  %v691_v46 = vsel %vm89_vm1, %v687_v63, 0.0 }
 0x83b   :  { %692 = vadd.xlane.f32.xlu0 %v691_v46 }
 0x851   :  { %757 = vrot.lane.b32.xlu0 %v1975_v6, %s2035_s23 }
 0x8c8   :  { %v693_v3 = vpop.xlane.xlu0 %692 }
 0x8c9   :  { %v698_v8 = vmul.f32 0.03125, %v693_v3 }
 0x8cb   :  { %v700_v9 = vsub.f32 %v687_v63, %v698_v8 }
 0x8cc   :  { %v758_v12 = vpop.permute.xlu0 %757 }
 0x8cd   :  { %v702_v10 = vmul.f32 %v700_v9, %v700_v9  ;;  %1855 = vmatprep.subr.bf16.mxu1 %v758_v12 }
 0x8ce   :  { %1856 = vmatpush3.bf16.msra.mxu1 %v758_v12 }
 0x8cf   :  { %v704_v11 = vsel %vm89_vm1, %v702_v10, 0.0 }
 0x8d0   :  { %705 = vadd.xlane.f32.xlu1 %v704_v11 }
 0x8e1   :  { %759 = vrot.lane.b32.xlu1 %v1976_v7, %s2035_s23 }
 0x95d   :  { %v706_v21 = vpop.xlane.xlu1 %705 }
 0x95e   :  { %v710_v22 = vmul.f32 0.03125, %v706_v21 }
 0x960   :  { %v712_v23 = vadd.f32 1e-05, %v710_v22 }
 0x961   :  { %v760_v24 = vpop.permute.xlu1 %759 }
 0x962   :  { %2005 = vrsqrt.f32 %v712_v23  ;;  %1857 = vmatprep.subr.bf16.mxu1 %v760_v24 }
 0x963   :  { %1858 = vmatpush3.bf16.msra.mxu1 %v760_v24 }
 0x964   :  { %1871 = vmatprep.subr.bf16.mxu1 %v2033_v0 }
 0x966   :  { %1860 = vmatmul.mubr.msk.bf16.vlgmr.msra.gmra.mrb[12].mxu1 %vm89_vm1, %v746_v18 }
 0x967   :  { %1873 = vmatprep.mubr.msk.bf16.mxu1 %vm2034_vm0, %v2033_v0 }
 0x96c   :  { %v2006_v25 = vpop.eup %2005 }
 0x96d   :  { %v716_v28 = vmul.f32 %v2006_v25, %v700_v9 }
 0x96f   :  { %v724_v30 = vmul.f32 %v2285_v26, %v716_v28 }
 0x971   :  { %v2294_v31 = vadd.f32 %v2290_v29, %v724_v30 }
 0x973   :  { %v734_v32 = vadd.f32 %v2294_v31, %v2164_v4 }
 0x975   :  { %v818_v27 = vpack.c.bf16 %v734_v32, %v734_v32 }
 0x977   :  { %1868 = vmatmul.mubr.msk.bf16.vlgmr.msra.gmra.mrb[28].mxu0 %vm89_vm1, %v818_v27 }
 0x978   :  { %1879 = vmatprep.mubr.msk.bf16.mxu0 %vm2034_vm0, %v2033_v0 }
 0xa39   :  { %v1861_v33 = vpop.f32.mrb[12].mxu1 }
 0xa3a   :  { %v803_v34 = vpop.f32.mrb[13].mxu1 }
 0xa3b   :  { %v1862_v35 = vpop.f32.mrb[14].mxu1 }
 0xa3c   :  { %v2301_v36 = vpack.c.bf16 %v1862_v35, %v1861_v33  ;;  %v806_v37 = vpop.f32.mrb[15].mxu1 }
 0xa4a   :  { %v858_v38 = vpop.f32.mrb[28].mxu0 }
 0xa4b   :  { %v864_v39 = vpack.c.bf16 %v858_v38, %v858_v38  ;;  %v1869_v40 = vpop.f32.mrb[29].mxu0 }
 0xa4c   :  { %v861_v41 = vpop.f32.mrb[30].mxu0 }
 0xa4d   :  { %1115 = vrot.lane.b32.xlu1 %v864_v39, %s2038_s26  ;;  %1007 = vrot.lane.b32.xlu0 %v864_v39, %s2037_s25  ;;  %v1870_v4 = vpop.f32.mrb[31].mxu0 }
 0xa51   :  { %1223 = vrot.lane.b32.xlu1 %v864_v39, %s2039_s27 }
 0xa6b   :  { %866 = vxpose.xlu0.b32.start [1/2] (short) (narrow) %v803_v34, 32 }
 0xa6f   :  { %867 = vxpose.xlu0.b32.end [2/2] (short) (narrow) %v806_v37, 32 }
 0xabf   :  { %v1008_v42 = vpop.permute.xlu0 %1007  ;;  %v1116_v56 = vpop.permute.xlu1 %1115 }
 0xac3   :  { %v1224_v57 = vpop.permute.xlu1 %1223 }
 0xaeb   :  { %v882_v43 = vpop.trf.xlu0 }
 0xaec   :  { %v898_v44 = vpack.c.bf16 %v882_v43, %v882_v43 }
 0xaee   :  { %v903_v45 = vsel %vm177_vm2, %v898_v44, 0 }
 0xaef   :  { %1872 = vmatpush3.bf16.msra.mxu1 %v903_v45  ;;  %v883_v47 = vpop.trf.xlu0 }
 0xaf0   :  { %v1005_v48 = vpack.c.bf16 %v883_v47, %v883_v47  ;;  %1883 = vmatprep.subr.bf16.mxu1 %v2033_v0 }
 0xaf2   :  { %1874 = vmatmul.mubr.msk.bf16.vlgmr.msra.gmra.mrb[16].mxu1 %vm173_vm3, %v864_v39  ;;  %v1013_v49 = vsel %vm177_vm2, %v1005_v48, 0 }
 0xaf3   :  { %1884 = vmatpush3.bf16.msra.mxu1 %v1013_v49  ;;  %1885 = vmatprep.mubr.msk.bf16.mxu1 %vm2034_vm0, %v2033_v0  ;;  %v884_v50 = vpop.trf.xlu0 }
 0xaf4   :  { %v1114_v51 = vpack.c.bf16 %v884_v50, %v884_v50  ;;  %1895 = vmatprep.subr.bf16.mxu1 %v2033_v0 }
 0xaf6   :  { %v1121_v52 = vsel %vm177_vm2, %v1114_v51, 0 }
 0xaf7   :  { %v885_v53 = vpop.trf.xlu0 }
 0xaf8   :  { %v1222_v54 = vpack.c.bf16 %v885_v53, %v885_v53 }
 0xafa   :  { %1886 = vmatmul.mubr.msk.bf16.vlgmr.msra.gmra.mrb[20].mxu1 %vm173_vm3, %v1008_v42  ;;  %v1229_v55 = vsel %vm177_vm2, %v1222_v54, 0 }
 0xafb   :  { %1896 = vmatpush3.bf16.msra.mxu1 %v1121_v52  ;;  %1897 = vmatprep.mubr.msk.bf16.mxu1 %vm2034_vm0, %v2033_v0 }
 0xafc   :  { %1907 = vmatprep.subr.bf16.mxu1 %v2033_v0 }
 0xb02   :  { %1898 = vmatmul.mubr.msk.bf16.vlgmr.msra.gmra.mrb[24].mxu1 %vm173_vm3, %v1116_v56 }
 0xb03   :  { %1908 = vmatpush3.bf16.msra.mxu1 %v1229_v55  ;;  %1909 = vmatprep.mubr.msk.bf16.mxu1 %vm2034_vm0, %v2033_v0 }
 0xb04   :  { %1919 = vmatprep.subr.bf16.mxu1 %v2033_v0 }
 0xb0a   :  { %1910 = vmatmul.mubr.msk.bf16.vlgmr.msra.gmra.mrb[28].mxu1 %vm173_vm3, %v1224_v57 }
 0xb0b   :  { %1923 = vmatprep.mubr.msk.bf16.mxu1 %vm2034_vm0, %v2033_v0 }
 0xbc5   :  { %v939_v58 = vpop.f32.mrb[16].mxu1 }
 0xbc6   :  { %v945_v59 = vmul.f32 0.35355338, %v939_v58  ;;  %v1875_v60 = vpop.f32.mrb[17].mxu1 }
 0xbc7   :  { %v942_v61 = vpop.f32.mrb[18].mxu1 }
 0xbc8   :  { %v1876_v63 = vpop.f32.mrb[19].mxu1  ;;  %v946_v1 = vsel %vm627_vm4, %v945_v59, -inf }
 0xbc9   :  { %947 = vmax.xlane.f32.xlu1 %v946_v1 }
 0xbcd   :  { %v1049_v2 = vpop.f32.mrb[20].mxu1 }
 0xbce   :  { %v1055_v5 = vmul.f32 0.35355338, %v1049_v2  ;;  %v1887_v46 = vpop.f32.mrb[21].mxu1 }
 0xbcf   :  { %v1052_v6 = vpop.f32.mrb[22].mxu1 }
 0xbd0   :  { %v1888_v7 = vpop.f32.mrb[23].mxu1  ;;  %v1056_v3 = vsel %vm627_vm4, %v1055_v5, -inf  ;;  %v1977_v6 = vld [vmem:[%s2463_s9] sm:$0xff]  }
 0xbd1   :  { %1057 = vmax.xlane.f32.xlu0 %v1056_v3  ;;  %1920 = vmatpush3.bf16.msra.mxu1 %v1977_v6 }
 0xbd2   :  { %1921 = vmatprep.subr.bf16.mxu1 %v2033_v0 }
 0xbd5   :  { %v1157_v8 = vpop.f32.mrb[24].mxu1 }
 0xbd6   :  { %v1163_v9 = vmul.f32 0.35355338, %v1157_v8  ;;  %v1899_v10 = vpop.f32.mrb[25].mxu1 }
 0xbd7   :  { %v1160_v11 = vpop.f32.mrb[26].mxu1  ;;  %v1978_v10 = vld [vmem:[%s2463_s9 + $0x8] sm:$0xff]  }
 0xbd8   :  { %v1900_v12 = vpop.f32.mrb[27].mxu1  ;;  %v1164_v13 = vsel %vm627_vm4, %v1163_v9, -inf  ;;  %1922 = vmatpush3.bf16.msra.mxu1 %v1978_v10 }
 0xbd9   :  { %1165 = vmax.xlane.f32.xlu1 %v1164_v13  ;;  %1935 = vmatprep.subr.bf16.mxu1 %v2033_v0 }
 0xbdd   :  { %v1265_v14 = vpop.f32.mrb[28].mxu1 }
 0xbde   :  { %v1271_v15 = vmul.f32 0.35355338, %v1265_v14  ;;  %v1911_v16 = vpop.f32.mrb[29].mxu1 }
 0xbdf   :  { %v1268_v17 = vpop.f32.mrb[30].mxu1 }
 0xbe0   :  { %v1912_v18 = vpop.f32.mrb[31].mxu1  ;;  %v1272_v19 = vsel %vm627_vm4, %v1271_v15, -inf }
 0xbe1   :  { %1273 = vmax.xlane.f32.xlu1 %v1272_v19  ;;  %v61_v19 = vld [vmem:[%s2479_s20 + $0x8] sm:$0xff] }
 0xbe7   :  { %1284 = vrot.lane.b32.xlu0 %v2301_v36, %s2046_s6 }
 0xbf2   :  { %959 = vrot.lane.b32.xlu1 %v2301_v36, %s2035_s23  ;;  %s2048_s23 = smov 80  }
 0xbf6   :  { %1068 = vrot.lane.b32.xlu1 %v2301_v36, %s2047_s7 }
 0xc56   :  { %v948_v20 = vpop.xlane.xlu1 %947 }
 0xc57   :  { %v949_v21 = vsub.f32 %v945_v59, %v948_v20  ;;  %v688_v20 = vadd.f32 %v2249_v62, %v61_v19 }
 0xc59   :  { %v950_v22 = vmul.f32 1.442695, %v949_v21  ;;  %v694_v21 = vsel %vm89_vm1, %v688_v20, 0.0 }
 0xc5b   :  { %2007 = vpow2.f32 %v950_v22 }
 0xc5e   :  { %v1058_v23 = vpop.xlane.xlu0 %1057 }
 0xc5f   :  { %v1059_v24 = vsub.f32 %v1055_v5, %v1058_v23 }
 0xc61   :  { %v1060_v25 = vmul.f32 1.442695, %v1059_v24 }
 0xc62   :  { %v1285_v59 = vpop.permute.xlu0 %1284 }
 0xc63   :  { %2009 = vpow2.f32 %v1060_v25 }
 0xc65   :  { %v2008_v28 = vpop.eup %2007 }
 0xc66   :  { %v1166_v30 = vpop.xlane.xlu1 %1165  ;;  %v952_v32 = vsel %vm627_vm4, %v2008_v28, 0.0 }
 0xc67   :  { %v1167_v27 = vsub.f32 %v1163_v9, %v1166_v30  ;;  %953 = vadd.xlane.f32.xlu1 %v952_v32 }
 0xc69   :  { %v1168_v33 = vmul.f32 1.442695, %v1167_v27 }
 0xc6b   :  { %2011 = vpow2.f32 %v1168_v33 }
 0xc6d   :  { %v2010_v34 = vpop.eup %2009 }
 0xc6e   :  { %v1274_v35 = vpop.xlane.xlu1 %1273  ;;  %v1062_v37 = vsel %vm627_vm4, %v2010_v34, 0.0 }
 0xc6f   :  { %v1275_v38 = vsub.f32 %v1271_v15, %v1274_v35  ;;  %1063 = vadd.xlane.f32.xlu1 %v1062_v37 }
 0xc71   :  { %v1276_v39 = vmul.f32 1.442695, %v1275_v38 }
 0xc72   :  { %v960_v40 = vpop.permute.xlu1 %959 }
 0xc73   :  { %2013 = vpow2.f32 %v1276_v39  ;;  %1878 = vmatpush3.bf16.msra.mxu0 %v960_v40 }
 0xc74   :  { %1889 = vmatprep.subr.bf16.mxu0 %v2033_v0 }
 0xc75   :  { %v2012_v41 = vpop.eup %2011 }
 0xc76   :  { %v1170_v4 = vsel %vm627_vm4, %v2012_v41, 0.0  ;;  %v1069_v44 = vpop.permute.xlu1 %1068 }
 0xc77   :  { %1171 = vadd.xlane.f32.xlu1 %v1170_v4 }
 0xc7d   :  { %v2014_v42 = vpop.eup %2013 }
 0xc7e   :  { %v1278_v43 = vsel %vm627_vm4, %v2014_v42, 0.0 }
 0xc7f   :  { %1279 = vadd.xlane.f32.xlu1 %v1278_v43 }
 0xc90   :  { %1176 = vrot.lane.b32.xlu1 %v2301_v36, %s2048_s23 }
 0xcf4   :  { %v954_v45 = vpop.xlane.xlu1 %953 }
 0xcf5   :  { %2015 = vrcp.f32 %v954_v45 }
 0xcfc   :  { %v1064_v47 = vpop.xlane.xlu1 %1063 }
 0xcfd   :  { %2017 = vrcp.f32 %v1064_v47 }
 0xcff   :  { %v2016_v48 = vpop.eup %2015 }
 0xd00   :  { %v956_v49 = vmul.f32 %v2016_v48, %v2008_v28 }
 0xd02   :  { %v957_v50 = vpack.c.bf16 %v956_v49, %v956_v49 }
 0xd04   :  { %1880 = vmatmul.mubr.msk.bf16.vlgmr.msra.gmra.mrb[32].mxu0 %vm627_vm4, %v957_v50  ;;  %v1172_v51 = vpop.xlane.xlu1 %1171 }
 0xd05   :  { %1890 = vmatpush3.bf16.msra.mxu0 %v1069_v44  ;;  %2019 = vrcp.f32 %v1172_v51  ;;  %1891 = vmatprep.mubr.msk.bf16.mxu0 %vm2034_vm0, %v2033_v0 }
 0xd06   :  { %1901 = vmatprep.subr.bf16.mxu0 %v2033_v0 }
 0xd07   :  { %v2018_v52 = vpop.eup %2017 }
 0xd08   :  { %v1066_v36 = vmul.f32 %v2018_v52, %v2010_v34 }
 0xd0a   :  { %v1067_v53 = vpack.c.bf16 %v1066_v36, %v1066_v36 }
 0xd0c   :  { %1892 = vmatmul.mubr.msk.bf16.vlgmr.msra.gmra.mrb[36].mxu0 %vm627_vm4, %v1067_v53  ;;  %v1280_v54 = vpop.xlane.xlu1 %1279 }
 0xd0d   :  { %2021 = vrcp.f32 %v1280_v54  ;;  %1903 = vmatprep.mubr.msk.bf16.mxu0 %vm2034_vm0, %v2033_v0 }
 0xd0f   :  { %v2020_v55 = vpop.eup %2019 }
 0xd10   :  { %v1174_v56 = vmul.f32 %v2020_v55, %v2012_v41  ;;  %v1177_v57 = vpop.permute.xlu1 %1176 }
 0xd11   :  { %1902 = vmatpush3.bf16.msra.mxu0 %v1177_v57 }
 0xd12   :  { %v1175_v58 = vpack.c.bf16 %v1174_v56, %v1174_v56  ;;  %1913 = vmatprep.subr.bf16.mxu0 %v2033_v0 }
 0xd14   :  { %1904 = vmatmul.mubr.msk.bf16.vlgmr.msra.gmra.mrb[40].mxu0 %vm627_vm4, %v1175_v58 }
 0xd15   :  { %1914 = vmatpush3.bf16.msra.mxu0 %v1285_v59  ;;  %1915 = vmatprep.mubr.msk.bf16.mxu0 %vm2034_vm0, %v2033_v0 }
 0xd16   :  { %1927 = vmatprep.subr.bf16.mxu0 %v2033_v0 }
 0xd17   :  { %v2022_v60 = vpop.eup %2021 }
 0xd18   :  { %v1282_v61 = vmul.f32 %v2022_v60, %v2014_v42  ;;  %v1981_v60 = vld [vmem:[%s2465_s14] sm:$0xff]  }
 0xd1a   :  { %v1283_v63 = vpack.c.bf16 %v1282_v61, %v1282_v61  ;;  %v1982_v61 = vld [vmem:[%s2465_s14 + $0x8] sm:$0xff]  }
 0xd1c   :  { %1916 = vmatmul.mubr.msk.bf16.vlgmr.msra.gmra.mrb[44].mxu0 %vm627_vm4, %v1283_v63  ;;  %v1983_v63 = vld [vmem:[%s2465_s14 + $0x10] sm:$0xff]  }
 0xd1d   :  { %1931 = vmatprep.mubr.msk.bf16.mxu0 %vm2034_vm0, %v2033_v0 }
 0xdd7   :  { %v999_v1 = vpop.f32.mrb[32].mxu0 }
 0xdd8   :  { %v1881_v2 = vpop.f32.mrb[33].mxu0 }
 0xdd9   :  { %v1002_v5 = vpop.f32.mrb[34].mxu0  ;;  %v1985_v2 = vld [vmem:[%s2465_s14 + $0x20] sm:$0xff]  }
 0xdda   :  { %v1882_v46 = vpop.f32.mrb[35].mxu0  ;;  %v1986_v5 = vld [vmem:[%s2465_s14 + $0x28] sm:$0xff]  }
 0xddf   :  { %v1108_v7 = vpop.f32.mrb[36].mxu0 }
 0xde0   :  { %1331 = vrot.lane.b32.xlu1 %v1108_v7, %s2043_s0  ;;  %v1893_v3 = vpop.f32.mrb[37].mxu0 }
 0xde1   :  { %v1111_v8 = vpop.f32.mrb[38].mxu0 }
 0xde2   :  { %v1894_v9 = vpop.f32.mrb[39].mxu0 }
 0xde7   :  { %v1216_v11 = vpop.f32.mrb[40].mxu0 }
 0xde8   :  { %1335 = vrot.lane.b32.xlu1 %v1216_v11, %s2044_s1  ;;  %v1905_v12 = vpop.f32.mrb[41].mxu0 }
 0xde9   :  { %v1219_v13 = vpop.f32.mrb[42].mxu0  ;;  %v1714_v12 = vld [vmem:[%s2466_s10] ss:$0 sm:$0xff] }
 0xdea   :  { %v1906_v14 = vpop.f32.mrb[43].mxu0 }
 0xdef   :  { %v1324_v15 = vpop.f32.mrb[44].mxu0 }
 0xdf0   :  { %1339 = vrot.lane.b32.xlu1 %v1324_v15, %s2045_s24  ;;  %v1917_v16 = vpop.f32.mrb[45].mxu0 }
 0xdf1   :  { %v1327_v17 = vpop.f32.mrb[46].mxu0  ;;  %v1715_v16 = vld [vmem:[%s2467_s11] ss:$0 sm:$0xff] }
 0xdf2   :  { %v1918_v18 = vpop.f32.mrb[47].mxu0 }
 0xe14   :  { %695 = vadd.xlane.f32.xlu1 %v694_v21  ;;  %v1987_v21 = vld [vmem:[%s2465_s14 + $0x30] sm:$0xff]  }
 0xe52   :  { %v1332_v22 = vpop.permute.xlu1 %1331 }
 0xe53   :  { %v1342_v24 = vsel %vm173_vm3, %v999_v1, %v1332_v22  ;;  %v1984_v1 = vld [vmem:[%s2465_s14 + $0x18] sm:$0xff]  }
 0xe54   :  { %v1988_v22 = vld [vmem:[%s2465_s14 + $0x38] sm:$0xff]  }
 0xe5a   :  { %v1336_v23 = vpop.permute.xlu1 %1335 }
 0xe5b   :  { %v1343_v25 = vsel %vm627_vm4, %v1342_v24, %v1336_v23  ;;  %v1716_v23 = vld [vmem:[%s2468_s13] ss:$0 sm:$0xff] }
 0xe62   :  { %v1340_v28 = vpop.permute.xlu1 %1339 }
 0xe63   :  { %v1344_v30 = vsel %vm629_vm5, %v1343_v25, %v1340_v28 }
 0xe64   :  { %v1345_v32 = vpack.c.bf16 %v1344_v30, %v1344_v30 }
 0xe66   :  { %1924 = vmatmul.mubr.msk.bf16.vlgmr.msra.gmra.mrb[32].mxu1 %vm89_vm1, %v1345_v32 }
 0xe67   :  { %1951 = vmatprep.mubr.msk.bf16.mxu1 %vm2034_vm0, %v2033_v0  ;;  %1936 = vmatpush3.bf16.msra.mxu1 %v1981_v60 }
 0xe68   :  { %1937 = vmatprep.subr.bf16.mxu1 %v2033_v0 }
 0xe6b   :  { %1938 = vmatpush3.bf16.msra.mxu1 %v1982_v61 }
 0xe6c   :  { %1939 = vmatprep.subr.bf16.mxu1 %v2033_v0 }
 0xe6f   :  { %1940 = vmatpush3.bf16.msra.mxu1 %v1983_v63  ;;  %v1730_v63 = vld [vmem:[%s2471_s17] ss:$0 sm:$0xff] }
 0xe70   :  { %1941 = vmatprep.subr.bf16.mxu1 %v2033_v0 }
 0xe73   :  { %1942 = vmatpush3.bf16.msra.mxu1 %v1984_v1 }
 0xe74   :  { %1943 = vmatprep.subr.bf16.mxu1 %v2033_v0 }
 0xe77   :  { %1944 = vmatpush3.bf16.msra.mxu1 %v1985_v2 }
 0xe78   :  { %1945 = vmatprep.subr.bf16.mxu1 %v2033_v0 }
 0xe7b   :  { %1946 = vmatpush3.bf16.msra.mxu1 %v1986_v5 }
 0xe7c   :  { %1947 = vmatprep.subr.bf16.mxu1 %v2033_v0 }
 0xe7f   :  { %1948 = vmatpush3.bf16.msra.mxu1 %v1987_v21 }
 0xe80   :  { %1949 = vmatprep.subr.bf16.mxu1 %v2033_v0 }
 0xe83   :  { %1950 = vmatpush3.bf16.msra.mxu1 %v1988_v22 }
 0xea1   :  { %v696_v27 = vpop.xlane.xlu1 %695 }
 0xea2   :  { %v699_v62 = vmul.f32 0.03125, %v696_v27 }
 0xea4   :  { %v701_v33 = vsub.f32 %v688_v20, %v699_v62 }
 0xea6   :  { %v703_v34 = vmul.f32 %v701_v33, %v701_v33 }
 0xea8   :  { %v707_v35 = vsel %vm89_vm1, %v703_v34, 0.0 }
 0xea9   :  { %708 = vadd.xlane.f32.xlu0 %v707_v35 }
 0xf36   :  { %v709_v37 = vpop.xlane.xlu0 %708 }
 0xf37   :  { %v711_v38 = vmul.f32 0.03125, %v709_v37 }
 0xf39   :  { %v713_v39 = vadd.f32 1e-05, %v711_v38  ;;  %v1395_v40 = vpop.f32.mrb[32].mxu1 }
 0xf3a   :  { %v1401_v41 = vadd.f32 %v1395_v40, %v2294_v31  ;;  %v1925_v4 = vpop.f32.mrb[33].mxu1 }
 0xf3b   :  { %2023 = vrsqrt.f32 %v713_v39  ;;  %v1398_v42 = vpop.f32.mrb[34].mxu1 }
 0xf3c   :  { %v1926_v43 = vpop.f32.mrb[35].mxu1  ;;  %v1405_v44 = vsel %vm89_vm1, %v1401_v41, 0.0 }
 0xf3d   :  { %1406 = vadd.xlane.f32.xlu1 %v1405_v44 }
 0xf45   :  { %v2024_v45 = vpop.eup %2023 }
 0xf46   :  { %v717_v47 = vmul.f32 %v2024_v45, %v701_v33 }
 0xf48   :  { %v725_v48 = vmul.f32 %v2285_v26, %v717_v47  ;;  %v1979_v26 = vld [vmem:[%s2464_s12] sm:$0xff]  }
 0xf49   :  { %1928 = vmatpush3.bf16.msra.mxu0 %v1979_v26 }
 0xf4a   :  { %v733_v49 = vadd.f32 %v2290_v29, %v725_v48  ;;  %v1980_v29 = vld [vmem:[%s2464_s12 + $0x8] sm:$0xff]   ;;  %1929 = vmatprep.subr.bf16.mxu0 %v2033_v0  ;;  %v1720_v0 = vld [vmem:[%s2469_s15] ss:$0 sm:$0xff] }
 0xf4c   :  { %v1402_v50 = vadd.f32 %v1395_v40, %v733_v49 }
 0xf4d   :  { %1930 = vmatpush3.bf16.msra.mxu0 %v1980_v29  ;;  %v1729_v29 = vld [vmem:[%s2470_s16] ss:$0 sm:$0xff] }
 0xf4e   :  { %v1408_v51 = vsel %vm89_vm1, %v1402_v50, 0.0 }
 0xf4f   :  { %1409 = vadd.xlane.f32.xlu0 %v1408_v51 }
 0xfca   :  { %v1407_v52 = vpop.xlane.xlu1 %1406 }
 0xfcb   :  { %v1411_v36 = vmul.f32 0.03125, %v1407_v52 }
 0xfcd   :  { %v1413_v31 = vsub.f32 %v1401_v41, %v1411_v36 }
 0xfcf   :  { %v1415_v53 = vmul.f32 %v1413_v31, %v1413_v31 }
 0xfd1   :  { %v1417_v54 = vsel %vm89_vm1, %v1415_v53, 0.0 }
 0xfd2   :  { %1418 = vadd.xlane.f32.xlu1 %v1417_v54 }
 0xfdc   :  { %v1410_v55 = vpop.xlane.xlu0 %1409 }
 0xfdd   :  { %v1412_v56 = vmul.f32 0.03125, %v1410_v55 }
 0xfdf   :  { %v1414_v57 = vsub.f32 %v1402_v50, %v1412_v56 }
 0xfe1   :  { %v1416_v58 = vmul.f32 %v1414_v57, %v1414_v57 }
 0xfe3   :  { %v1420_v59 = vsel %vm89_vm1, %v1416_v58, 0.0 }
 0xfe4   :  { %1421 = vadd.xlane.f32.xlu0 %v1420_v59 }
0x105f   :  { %v1419_v46 = vpop.xlane.xlu1 %1418 }
0x1060   :  { %v1423_v6 = vmul.f32 0.03125, %v1419_v46 }
0x1062   :  { %v1425_v7 = vadd.f32 1e-05, %v1423_v6 }
0x1064   :  { %2025 = vrsqrt.f32 %v1425_v7 }
0x106e   :  { %v2026_v10 = vpop.eup %2025 }
0x106f   :  { %v1429_v11 = vmul.f32 %v2026_v10, %v1413_v31 }
0x1071   :  { %v1422_v3 = vpop.xlane.xlu0 %1421  ;;  %v1437_v14 = vmul.f32 %v1714_v12, %v1429_v11 }
0x1072   :  { %v1424_v8 = vmul.f32 0.03125, %v1422_v3 }
0x1073   :  { %v1445_v18 = vadd.f32 %v1715_v16, %v1437_v14 }
0x1074   :  { %v1426_v9 = vadd.f32 1e-05, %v1424_v8 }
0x1076   :  { %2027 = vrsqrt.f32 %v1426_v9 }
0x1080   :  { %v2028_v13 = vpop.eup %2027 }
0x1081   :  { %v1430_v15 = vmul.f32 %v2028_v13, %v1414_v57 }
0x1083   :  { %v1438_v17 = vmul.f32 %v1714_v12, %v1430_v15 }
0x1085   :  { %v1446_v19 = vadd.f32 %v1715_v16, %v1438_v17 }
0x1087   :  { %v1469_v20 = vpack.c.bf16 %v1446_v19, %v1445_v18 }
0x1089   :  { %1932 = vmatmul.mubr.msk.bf16.vlgmr.msra.gmra.mrb[48].mxu0 %vm89_vm1, %v1469_v20 }
0x115c   :  { %v1525_v24 = vpop.f32.mrb[48].mxu0 }
0x115d   :  { %v1526_v25 = vadd.f32 %v1716_v23, %v1525_v24  ;;  %v1933_v28 = vpop.f32.mrb[49].mxu0 }
0x115e   :  { %v1528_v30 = vpop.f32.mrb[50].mxu0 }
0x115f   :  { %v1529_v32 = vadd.f32 %v1716_v23, %v1528_v30  ;;  %v1934_v27 = vpop.f32.mrb[51].mxu0  ;;  %v1532_v62 = vmax.f32 %v1526_v25, 0.0 }
0x1161   :  { %v1533_v33 = vmax.f32 %v1529_v32, 0.0 }
0x1163   :  { %v1534_v34 = vpack.c.bf16 %v1533_v33, %v1532_v62 }
0x1165   :  { %1952 = vmatmul.mubr.bf16.vlgmr.msra.gmra.mrb[36].mxu1 %v1534_v34 }
0x1238   :  { %v1623_v35 = vpop.f32.mrb[36].mxu1 }
0x1239   :  { %v1624_v37 = vadd.f32 %v1720_v0, %v1623_v35  ;;  %v1953_v38 = vpop.f32.mrb[37].mxu1 }
0x123a   :  { %v1626_v39 = vpop.f32.mrb[38].mxu1 }
0x123b   :  { %v1627_v40 = vadd.f32 %v1720_v0, %v1626_v39  ;;  %v1954_v41 = vpop.f32.mrb[39].mxu1  ;;  %v1630_v4 = vadd.f32 %v1624_v37, %v1445_v18 }
0x123d   :  { %v1634_v42 = vsel %vm89_vm1, %v1630_v4, 0.0  ;;  %v1631_v43 = vadd.f32 %v1627_v40, %v1446_v19 }
0x123e   :  { %1635 = vadd.xlane.f32.xlu1 %v1634_v42 }
0x123f   :  { %v1637_v44 = vsel %vm89_vm1, %v1631_v43, 0.0 }
0x1240   :  { %1638 = vadd.xlane.f32.xlu0 %v1637_v44 }
0x12cb   :  { %v1636_v45 = vpop.xlane.xlu1 %1635 }
0x12cc   :  { %v1640_v47 = vmul.f32 0.03125, %v1636_v45 }
0x12cd   :  { %v1639_v48 = vpop.xlane.xlu0 %1638 }
0x12ce   :  { %v1642_v49 = vsub.f32 %v1630_v4, %v1640_v47  ;;  %v1641_v50 = vmul.f32 0.03125, %v1639_v48 }
0x12d0   :  { %v1643_v51 = vsub.f32 %v1631_v43, %v1641_v50  ;;  %v1644_v52 = vmul.f32 %v1642_v49, %v1642_v49 }
0x12d2   :  { %v1646_v36 = vsel %vm89_vm1, %v1644_v52, 0.0  ;;  %v1645_v31 = vmul.f32 %v1643_v51, %v1643_v51 }
0x12d3   :  { %1647 = vadd.xlane.f32.xlu1 %v1646_v36 }
0x12d4   :  { %v1649_v53 = vsel %vm89_vm1, %v1645_v31, 0.0 }
0x12d5   :  { %1650 = vadd.xlane.f32.xlu0 %v1649_v53 }
0x1360   :  { %v1648_v54 = vpop.xlane.xlu1 %1647 }
0x1361   :  { %v1652_v55 = vmul.f32 0.03125, %v1648_v54 }
0x1362   :  { %v1651_v56 = vpop.xlane.xlu0 %1650 }
0x1363   :  { %v1654_v57 = vadd.f32 1e-05, %v1652_v55  ;;  %v1653_v58 = vmul.f32 0.03125, %v1651_v56 }
0x1365   :  { %2029 = vrsqrt.f32 %v1654_v57  ;;  %v1655_v59 = vadd.f32 1e-05, %v1653_v58 }
0x1367   :  { %2031 = vrsqrt.f32 %v1655_v59 }
0x136f   :  { %v2030_v26 = vpop.eup %2029 }
0x1370   :  { %v1658_v60 = vmul.f32 %v2030_v26, %v1642_v49 }
0x1371   :  { %v2032_v61 = vpop.eup %2031 }
0x1372   :  { %v1666_v1 = vmul.f32 %v1729_v29, %v1658_v60  ;;  %v1659_v2 = vmul.f32 %v2032_v61, %v1643_v51 }
0x1374   :  { %v1674_v5 = vadd.f32 %v1730_v63, %v1666_v1  ;;  %v1667_v46 = vmul.f32 %v1729_v29, %v1659_v2 }
0x1376   :  { %1676 = vst.msk [vmem:[%s2472_s18] sm:$0xff] %vm89_vm1, %v1674_v5  ;;  %v1675_v6 = vadd.f32 %v1730_v63, %v1667_v46 }
0x1378   :  { %1677 = vst.msk [vmem:[%s2472_s18 + $0x8] sm:$0xff] %vm89_vm1, %v1675_v6 }

</bundles_post_ra>
